<compile_context>
chip_gen: v5e
topology: v5e:2x2
jax: 0.10.0
libtpu: 0.0.40
codegen_flags: <defaults>
</compile_context>

<pallas_src>
import jax
import jax.numpy as jnp
from jax import lax
from jax.experimental import pallas as pl
from jax.experimental.pallas import tpu as pltpu


# ----------------------------------------------------------------------------
# Pallas kernel: one block of B_blk batch elements per grid step.
# inputs : x_pad (B,Hp,Wp,Ci) bf16, w1 (9,Ci,Co) bf16, b1 (1,Co) f32,
#          w2 (9,Co,Co) bf16, wsc (Ci,Co) bf16, bout=(b2+bsc) (1,Co) f32
# output : out (B,Ho,Wo,Co) f32
# scratch: ypad (B,Hp,Wp,Co) bf16 (zero-padded staging for conv2),
#          hpool (B,Ho,W,Co) f32 (H-pooled staging for the strided W-pool reads)
# ----------------------------------------------------------------------------
def _first_disc_blk_kernel(xpad_ref, w1_ref, b1_ref, w2_ref, wsc_ref, bout_ref,
                           out_ref, ypad_ref, hp_ref):
    B, Hp, Wp, Ci = xpad_ref.shape
    H, W = Hp - 2, Wp - 2
    _, Ho, Wo, Co = out_ref.shape
    M = B * H * W

    x = xpad_ref[...]                                   # (B,Hp,Wp,Ci) bf16

    # ---- conv1: 3x3 (pad already applied) as 9 shifted matmuls, f32 accumulate
    acc1 = None
    patch_c = None                                      # center tap == unpadded x
    for dy in range(3):
        for dx in range(3):
            patch = x[:, dy:dy + H, dx:dx + W, :].reshape(M, Ci)
            if dy == 1 and dx == 1:
                patch_c = patch
            d = jnp.dot(patch, w1_ref[dy * 3 + dx],
                        preferred_element_type=jnp.float32)
            acc1 = d if acc1 is None else acc1 + d
    y1 = jnp.maximum(acc1 + b1_ref[...], 0.0).astype(ypad_ref.dtype)  # (M,Co)

    # ---- stage y1 into the zero-padded scratch for conv2.
    # Only the border is zeroed (interior fully overwritten). Re-zero each step
    # so correctness never depends on grid order / megacore partitioning.
    ypad_ref[:, 0:1, :, :] = jnp.zeros((B, 1, Wp, Co), ypad_ref.dtype)
    ypad_ref[:, Hp - 1:Hp, :, :] = jnp.zeros((B, 1, Wp, Co), ypad_ref.dtype)
    ypad_ref[:, :, 0:1, :] = jnp.zeros((B, Hp, 1, Co), ypad_ref.dtype)
    ypad_ref[:, :, Wp - 1:Wp, :] = jnp.zeros((B, Hp, 1, Co), ypad_ref.dtype)
    ypad_ref[:, 1:1 + H, 1:1 + W, :] = y1.reshape(B, H, W, Co)
    yp = ypad_ref[...]                                  # (B,Hp,Wp,Co) bf16

    # ---- conv2: 3x3 as 9 shifted matmuls, f32 accumulate (bias deferred)
    acc2 = None
    for dy in range(3):
        for dx in range(3):
            patch = yp[:, dy:dy + H, dx:dx + W, :].reshape(M, Co)
            d = jnp.dot(patch, w2_ref[dy * 3 + dx],
                        preferred_element_type=jnp.float32)
            acc2 = d if acc2 is None else acc2 + d

    # ---- shortcut 1x1 conv at full resolution (avg-pool commutes with 1x1 conv)
    acc2 = acc2 + jnp.dot(patch_c, wsc_ref[...],
                          preferred_element_type=jnp.float32)   # (M,Co) f32

    # ---- AvgPool2d(2):
    #   H pairs: reshape splits the (untiled) H axis -> cheap slab adds.
    #   W pairs: stage into a scratch and read with sublane stride 2.
    s5 = acc2.reshape(B, Ho, 2, W, Co)
    hp_ref[...] = s5[:, :, 0, :, :] + s5[:, :, 1, :, :]          # (B,Ho,W,Co)
    wsum = (hp_ref[:, :, pl.ds(0, Wo, stride=2), :]
            + hp_ref[:, :, pl.ds(1, Wo, stride=2), :])           # (B,Ho,Wo,Co)

    # combined bias (b2 + bsc) added after pooling (biases commute with avg-pool)
    out_ref[...] = (0.25 * wsum + bout_ref[...]).astype(out_ref.dtype)


# ----------------------------------------------------------------------------
# JAX glue
# ----------------------------------------------------------------------------
def spectral_normalize(w, key, n_power_iterations=1, eps=1e-12):
    """PyTorch-style spectral norm (one power iteration) on an (oc,ic,kh,kw)
    conv weight.  NOTE: a real PyTorch SpectralNorm persists `u` as a buffer
    across forwards; here it is drawn fresh, which only matters across steps
    (kernel and reference below consume the same normalized weights)."""
    oc = w.shape[0]
    w_mat = w.reshape(oc, -1)
    u = jax.random.normal(key, (oc,), dtype=w.dtype)
    u = u / (jnp.linalg.norm(u) + eps)
    v = None
    for _ in range(n_power_iterations):
        v = w_mat.T @ u
        v = v / (jnp.linalg.norm(v) + eps)
        u = w_mat @ v
        u = u / (jnp.linalg.norm(u) + eps)
    sigma = u @ (w_mat @ v)
    return w / sigma


def _pick_batch_block(n, h, w, ci, co):
    """Largest divisor of n that (a) fits a rough per-step VMEM budget,
    (b) is <= 8, (c) leaves >= 2 grid steps when n >= 2 (v7x has 2 TCs)."""
    hp, wp = h + 2, w + 2
    ho, wo = h // 2, w // 2
    per_img = (
        2 * 2 * hp * wp * ci        # x_pad block (bf16, double-buffered)
        + 2 * hp * wp * co          # ypad scratch (bf16)
        + 4 * ho * w * co           # H-pooled scratch (f32)
        + 2 * 4 * ho * wo * co      # out block (f32, double-buffered)
        + 6 * 4 * h * w * co        # live f32 temporaries (acc1/acc2/y1/...)
    )
    budget = 12 * 1024 * 1024
    cap = max(1, min(8, budget // max(per_img, 1)))
    cap = min(int(cap), n)
    if n >= 2:
        cap = min(cap, max(1, n // 2))
    for b in range(cap, 0, -1):
        if n % b == 0:
            return b
    return 1


def first_disc_blk(x_nchw, params, *, compute_dtype=jnp.bfloat16):
    """x_nchw: (N, Ci, H, W) float32 with H, W even.  params are spectral-norm'd
    PyTorch-layout weights: w1 (Co,Ci,3,3), b1 (Co,), w2 (Co,Co,3,3), b2 (Co,),
    wsc (Co,Ci,1,1), bsc (Co,).  Returns (N, Co, H//2, W//2) float32."""
    w1, b1, w2, b2, wsc, bsc = params
    N, Ci, H, W = x_nchw.shape
    Co = w1.shape[0]
    assert H % 2 == 0 and W % 2 == 0, "AvgPool2d(2) path requires even H, W"
    Ho, Wo = H // 2, W // 2
    Hp, Wp = H + 2, W + 2

    # NCHW -> NHWC, zero-pad spatial dims by 1, cast activations to bf16
    x_nhwc = jnp.transpose(x_nchw, (0, 2, 3, 1)).astype(jnp.float32)
    x_pad = jnp.pad(x_nhwc, ((0, 0), (1, 1), (1, 1), (0, 0))).astype(compute_dtype)

    # PyTorch OIHW -> (kh*kw, Cin, Cout), bf16 matmul operands, f32 biases
    w1_k = jnp.transpose(w1, (2, 3, 1, 0)).reshape(9, Ci, Co).astype(compute_dtype)
    w2_k = jnp.transpose(w2, (2, 3, 1, 0)).reshape(9, Co, Co).astype(compute_dtype)
    wsc_k = wsc.reshape(Co, Ci).T.astype(compute_dtype)          # (Ci, Co)
    b1_k = b1.reshape(1, Co).astype(jnp.float32)
    bout_k = (b2 + bsc).reshape(1, Co).astype(jnp.float32)       # biases commute w/ pool

    b_blk = _pick_batch_block(N, H, W, Ci, Co)
    grid = (N // b_blk,)

    out_nhwc = pl.pallas_call(
        _first_disc_blk_kernel,
        out_shape=jax.ShapeDtypeStruct((N, Ho, Wo, Co), jnp.float32),
        grid_spec=pltpu.PrefetchScalarGridSpec(
            num_scalar_prefetch=0,
            grid=grid,
            in_specs=[
                pl.BlockSpec((b_blk, Hp, Wp, Ci), lambda b: (b, 0, 0, 0)),
                pl.BlockSpec((9, Ci, Co), lambda b: (0, 0, 0)),
                pl.BlockSpec((1, Co), lambda b: (0, 0)),
                pl.BlockSpec((9, Co, Co), lambda b: (0, 0, 0)),
                pl.BlockSpec((Ci, Co), lambda b: (0, 0)),
                pl.BlockSpec((1, Co), lambda b: (0, 0)),
            ],
            out_specs=pl.BlockSpec((b_blk, Ho, Wo, Co), lambda b: (b, 0, 0, 0)),
            scratch_shapes=[
                pltpu.VMEM((b_blk, Hp, Wp, Co), compute_dtype),   # padded y1
                pltpu.VMEM((b_blk, Ho, W, Co), jnp.float32),      # H-pooled staging
            ],
        ),
        compiler_params=pltpu.CompilerParams(
            dimension_semantics=("parallel",),
            vmem_limit_bytes=32 * 1024 * 1024,
        ),
    )(x_pad, w1_k, b1_k, w2_k, wsc_k, bout_k)

    return jnp.transpose(out_nhwc, (0, 3, 1, 2))                  # back to NCHW


# ----------------------------------------------------------------------------
# Pure-JAX f32 reference (verification only)
# ----------------------------------------------------------------------------
def _avgpool2_nchw(x):
    N, C, H, W = x.shape
    return x.reshape(N, C, H // 2, 2, W // 2, 2).mean(axis=(3, 5))


def _ref_forward(x, w1, b1, w2, b2, wsc, bsc):
    dn = ("NCHW", "OIHW", "NCHW")
    y = lax.conv_general_dilated(x, w1, (1, 1), ((1, 1), (1, 1)),
                                 dimension_numbers=dn) + b1[None, :, None, None]
    y = jnp.maximum(y, 0.0)
    y = lax.conv_general_dilated(y, w2, (1, 1), ((1, 1), (1, 1)),
                                 dimension_numbers=dn) + b2[None, :, None, None]
    y = _avgpool2_nchw(y)
    s = _avgpool2_nchw(x)
    s = lax.conv_general_dilated(s, wsc, (1, 1), ((0, 0), (0, 0)),
                                 dimension_numbers=dn) + bsc[None, :, None, None]
    return y + s


# ----------------------------------------------------------------------------
if __name__ == "__main__":
    key = jax.random.PRNGKey(0)
    keys = jax.random.split(key, 10)

    N, Ci, Co, H, W = 2, 4, 8, 16, 16
    x = jax.random.normal(keys[0], (N, Ci, H, W), jnp.float32)

    def conv_init(kw, kb, shape):
        fan_in = shape[1] * shape[2] * shape[3]
        bound = 1.0 / jnp.sqrt(float(fan_in))
        w = jax.random.uniform(kw, shape, jnp.float32, -bound, bound)
        b = jax.random.uniform(kb, (shape[0],), jnp.float32, -bound, bound)
        return w, b

    w1_raw, b1 = conv_init(keys[1], keys[2], (Co, Ci, 3, 3))
    w2_raw, b2 = conv_init(keys[3], keys[4], (Co, Co, 3, 3))
    wsc_raw, bsc = conv_init(keys[5], keys[6], (Co, Ci, 1, 1))

    # SpectralNorm(conv): weight divided by spectral-norm estimate (1 power iter)
    w1 = spectral_normalize(w1_raw, keys[7])
    w2 = spectral_normalize(w2_raw, keys[8])
    wsc = spectral_normalize(wsc_raw, keys[9])

    params = (w1, b1, w2, b2, wsc, bsc)

    out = first_disc_blk(x, params)
    out = jax.block_until_ready(out)

    ref = _ref_forward(x, *params)
    err = float(jnp.max(jnp.abs(out - ref)))
    assert out.shape == (N, Co, H // 2, W // 2), out.shape
    # Tolerance relaxed deliberately: matmul operands run in bf16 on the MXU
    # (f32 accumulation); reference is pure f32.
    assert jnp.allclose(out, ref, atol=5e-2, rtol=5e-2), f"max abs err {err}"

    print("KERNEL_OK")
</pallas_src>

<mosaic_0001>
module attributes {stable_mosaic.version = 11 : i64} {
  func.func @_first_disc_blk_kernel(%arg0: i32, %arg1: memref<1x18x18x4xbf16, #tpu.memory_space<vmem>>, %arg2: memref<9x4x8xbf16, #tpu.memory_space<vmem>>, %arg3: memref<1x8xf32, #tpu.memory_space<vmem>>, %arg4: memref<9x8x8xbf16, #tpu.memory_space<vmem>>, %arg5: memref<4x8xbf16, #tpu.memory_space<vmem>>, %arg6: memref<1x8xf32, #tpu.memory_space<vmem>>, %arg7: memref<1x8x8x8xf32, #tpu.memory_space<vmem>>, %arg8: memref<1x18x18x8xbf16, #tpu.memory_space<vmem>>, %arg9: memref<1x8x16x8xf32, #tpu.memory_space<vmem>>) attributes {dimension_semantics = [#tpu.dimension_semantics<parallel>], iteration_bounds = array<i64: 2>, scalar_prefetch = 0 : i64, scratch_operands = 2 : i64, tpu.core_type = #tpu.core_type<tc>, window_params = [{transform_indices = @transform_0, window_bounds = array<i64: 1, 18, 18, 4>}, {pipeline_mode = #tpu.pipeline_mode<synchronous>, transform_indices = @transform_1, window_bounds = array<i64: 9, 4, 8>}, {pipeline_mode = #tpu.pipeline_mode<synchronous>, transform_indices = @transform_2, window_bounds = array<i64: 1, 8>}, {pipeline_mode = #tpu.pipeline_mode<synchronous>, transform_indices = @transform_3, window_bounds = array<i64: 9, 8, 8>}, {pipeline_mode = #tpu.pipeline_mode<synchronous>, transform_indices = @transform_4, window_bounds = array<i64: 4, 8>}, {pipeline_mode = #tpu.pipeline_mode<synchronous>, transform_indices = @transform_5, window_bounds = array<i64: 1, 8>}, {transform_indices = @transform_6, window_bounds = array<i64: 1, 8, 8, 8>}]} {
    %c0 = arith.constant 0 : index
    %c0_0 = arith.constant 0 : index
    %c0_1 = arith.constant 0 : index
    %c0_2 = arith.constant 0 : index
    %0 = vector.load %arg1[%c0, %c0_0, %c0_1, %c0_2] : memref<1x18x18x4xbf16, #tpu.memory_space<vmem>>, vector<1x18x18x4xbf16>
    %1 = vector.extract_strided_slice %0 {offsets = [0, 0, 0, 0], sizes = [1, 16, 16, 4], strides = [1, 1, 1, 1]} : vector<1x18x18x4xbf16> to vector<1x16x16x4xbf16>
    %2 = vector.shape_cast %1 : vector<1x16x16x4xbf16> to vector<256x4xbf16>
    %c0_3 = arith.constant 0 : index
    %c0_4 = arith.constant 0 : index
    %c0_5 = arith.constant 0 : index
    %3 = vector.load %arg2[%c0_3, %c0_4, %c0_5] : memref<9x4x8xbf16, #tpu.memory_space<vmem>>, vector<1x4x8xbf16>
    %4 = vector.shape_cast %3 : vector<1x4x8xbf16> to vector<4x8xbf16>
    %cst = arith.constant dense<0.000000e+00> : vector<256x8xf32>
    %5 = tpu.matmul %2, %4, %cst {dimension_numbers = #tpu.dot_dimension_numbers<[1], [0], [0], [1], [0, 0, 1, 1], [], []>} : vector<256x4xbf16>, vector<4x8xbf16>, vector<256x8xf32> -> vector<256x8xf32>
    %6 = vector.extract_strided_slice %0 {offsets = [0, 0, 1, 0], sizes = [1, 16, 16, 4], strides = [1, 1, 1, 1]} : vector<1x18x18x4xbf16> to vector<1x16x16x4xbf16>
    %7 = vector.shape_cast %6 : vector<1x16x16x4xbf16> to vector<256x4xbf16>
    %c1 = arith.constant 1 : index
    %c0_6 = arith.constant 0 : index
    %c0_7 = arith.constant 0 : index
    %8 = vector.load %arg2[%c1, %c0_6, %c0_7] : memref<9x4x8xbf16, #tpu.memory_space<vmem>>, vector<1x4x8xbf16>
    %9 = vector.shape_cast %8 : vector<1x4x8xbf16> to vector<4x8xbf16>
    %cst_8 = arith.constant dense<0.000000e+00> : vector<256x8xf32>
    %10 = tpu.matmul %7, %9, %cst_8 {dimension_numbers = #tpu.dot_dimension_numbers<[1], [0], [0], [1], [0, 0, 1, 1], [], []>} : vector<256x4xbf16>, vector<4x8xbf16>, vector<256x8xf32> -> vector<256x8xf32>
    %11 = arith.addf %5, %10 : vector<256x8xf32>
    %12 = vector.extract_strided_slice %0 {offsets = [0, 0, 2, 0], sizes = [1, 16, 16, 4], strides = [1, 1, 1, 1]} : vector<1x18x18x4xbf16> to vector<1x16x16x4xbf16>
    %13 = vector.shape_cast %12 : vector<1x16x16x4xbf16> to vector<256x4xbf16>
    %c2 = arith.constant 2 : index
    %c0_9 = arith.constant 0 : index
    %c0_10 = arith.constant 0 : index
    %14 = vector.load %arg2[%c2, %c0_9, %c0_10] : memref<9x4x8xbf16, #tpu.memory_space<vmem>>, vector<1x4x8xbf16>
    %15 = vector.shape_cast %14 : vector<1x4x8xbf16> to vector<4x8xbf16>
    %cst_11 = arith.constant dense<0.000000e+00> : vector<256x8xf32>
    %16 = tpu.matmul %13, %15, %cst_11 {dimension_numbers = #tpu.dot_dimension_numbers<[1], [0], [0], [1], [0, 0, 1, 1], [], []>} : vector<256x4xbf16>, vector<4x8xbf16>, vector<256x8xf32> -> vector<256x8xf32>
    %17 = arith.addf %11, %16 : vector<256x8xf32>
    %18 = vector.extract_strided_slice %0 {offsets = [0, 1, 0, 0], sizes = [1, 16, 16, 4], strides = [1, 1, 1, 1]} : vector<1x18x18x4xbf16> to vector<1x16x16x4xbf16>
    %19 = vector.shape_cast %18 : vector<1x16x16x4xbf16> to vector<256x4xbf16>
    %c3 = arith.constant 3 : index
    %c0_12 = arith.constant 0 : index
    %c0_13 = arith.constant 0 : index
    %20 = vector.load %arg2[%c3, %c0_12, %c0_13] : memref<9x4x8xbf16, #tpu.memory_space<vmem>>, vector<1x4x8xbf16>
    %21 = vector.shape_cast %20 : vector<1x4x8xbf16> to vector<4x8xbf16>
    %cst_14 = arith.constant dense<0.000000e+00> : vector<256x8xf32>
    %22 = tpu.matmul %19, %21, %cst_14 {dimension_numbers = #tpu.dot_dimension_numbers<[1], [0], [0], [1], [0, 0, 1, 1], [], []>} : vector<256x4xbf16>, vector<4x8xbf16>, vector<256x8xf32> -> vector<256x8xf32>
    %23 = arith.addf %17, %22 : vector<256x8xf32>
    %24 = vector.extract_strided_slice %0 {offsets = [0, 1, 1, 0], sizes = [1, 16, 16, 4], strides = [1, 1, 1, 1]} : vector<1x18x18x4xbf16> to vector<1x16x16x4xbf16>
    %25 = vector.shape_cast %24 : vector<1x16x16x4xbf16> to vector<256x4xbf16>
    %c4 = arith.constant 4 : index
    %c0_15 = arith.constant 0 : index
    %c0_16 = arith.constant 0 : index
    %26 = vector.load %arg2[%c4, %c0_15, %c0_16] : memref<9x4x8xbf16, #tpu.memory_space<vmem>>, vector<1x4x8xbf16>
    %27 = vector.shape_cast %26 : vector<1x4x8xbf16> to vector<4x8xbf16>
    %cst_17 = arith.constant dense<0.000000e+00> : vector<256x8xf32>
    %28 = tpu.matmul %25, %27, %cst_17 {dimension_numbers = #tpu.dot_dimension_numbers<[1], [0], [0], [1], [0, 0, 1, 1], [], []>} : vector<256x4xbf16>, vector<4x8xbf16>, vector<256x8xf32> -> vector<256x8xf32>
    %29 = arith.addf %23, %28 : vector<256x8xf32>
    %30 = vector.extract_strided_slice %0 {offsets = [0, 1, 2, 0], sizes = [1, 16, 16, 4], strides = [1, 1, 1, 1]} : vector<1x18x18x4xbf16> to vector<1x16x16x4xbf16>
    %31 = vector.shape_cast %30 : vector<1x16x16x4xbf16> to vector<256x4xbf16>
    %c5 = arith.constant 5 : index
    %c0_18 = arith.constant 0 : index
    %c0_19 = arith.constant 0 : index
    %32 = vector.load %arg2[%c5, %c0_18, %c0_19] : memref<9x4x8xbf16, #tpu.memory_space<vmem>>, vector<1x4x8xbf16>
    %33 = vector.shape_cast %32 : vector<1x4x8xbf16> to vector<4x8xbf16>
    %cst_20 = arith.constant dense<0.000000e+00> : vector<256x8xf32>
    %34 = tpu.matmul %31, %33, %cst_20 {dimension_numbers = #tpu.dot_dimension_numbers<[1], [0], [0], [1], [0, 0, 1, 1], [], []>} : vector<256x4xbf16>, vector<4x8xbf16>, vector<256x8xf32> -> vector<256x8xf32>
    %35 = arith.addf %29, %34 : vector<256x8xf32>
    %36 = vector.extract_strided_slice %0 {offsets = [0, 2, 0, 0], sizes = [1, 16, 16, 4], strides = [1, 1, 1, 1]} : vector<1x18x18x4xbf16> to vector<1x16x16x4xbf16>
    %37 = vector.shape_cast %36 : vector<1x16x16x4xbf16> to vector<256x4xbf16>
    %c6 = arith.constant 6 : index
    %c0_21 = arith.constant 0 : index
    %c0_22 = arith.constant 0 : index
    %38 = vector.load %arg2[%c6, %c0_21, %c0_22] : memref<9x4x8xbf16, #tpu.memory_space<vmem>>, vector<1x4x8xbf16>
    %39 = vector.shape_cast %38 : vector<1x4x8xbf16> to vector<4x8xbf16>
    %cst_23 = arith.constant dense<0.000000e+00> : vector<256x8xf32>
    %40 = tpu.matmul %37, %39, %cst_23 {dimension_numbers = #tpu.dot_dimension_numbers<[1], [0], [0], [1], [0, 0, 1, 1], [], []>} : vector<256x4xbf16>, vector<4x8xbf16>, vector<256x8xf32> -> vector<256x8xf32>
    %41 = arith.addf %35, %40 : vector<256x8xf32>
    %42 = vector.extract_strided_slice %0 {offsets = [0, 2, 1, 0], sizes = [1, 16, 16, 4], strides = [1, 1, 1, 1]} : vector<1x18x18x4xbf16> to vector<1x16x16x4xbf16>
    %43 = vector.shape_cast %42 : vector<1x16x16x4xbf16> to vector<256x4xbf16>
    %c7 = arith.constant 7 : index
    %c0_24 = arith.constant 0 : index
    %c0_25 = arith.constant 0 : index
    %44 = vector.load %arg2[%c7, %c0_24, %c0_25] : memref<9x4x8xbf16, #tpu.memory_space<vmem>>, vector<1x4x8xbf16>
    %45 = vector.shape_cast %44 : vector<1x4x8xbf16> to vector<4x8xbf16>
    %cst_26 = arith.constant dense<0.000000e+00> : vector<256x8xf32>
    %46 = tpu.matmul %43, %45, %cst_26 {dimension_numbers = #tpu.dot_dimension_numbers<[1], [0], [0], [1], [0, 0, 1, 1], [], []>} : vector<256x4xbf16>, vector<4x8xbf16>, vector<256x8xf32> -> vector<256x8xf32>
    %47 = arith.addf %41, %46 : vector<256x8xf32>
    %48 = vector.extract_strided_slice %0 {offsets = [0, 2, 2, 0], sizes = [1, 16, 16, 4], strides = [1, 1, 1, 1]} : vector<1x18x18x4xbf16> to vector<1x16x16x4xbf16>
    %49 = vector.shape_cast %48 : vector<1x16x16x4xbf16> to vector<256x4xbf16>
    %c8 = arith.constant 8 : index
    %c0_27 = arith.constant 0 : index
    %c0_28 = arith.constant 0 : index
    %50 = vector.load %arg2[%c8, %c0_27, %c0_28] : memref<9x4x8xbf16, #tpu.memory_space<vmem>>, vector<1x4x8xbf16>
    %51 = vector.shape_cast %50 : vector<1x4x8xbf16> to vector<4x8xbf16>
    %cst_29 = arith.constant dense<0.000000e+00> : vector<256x8xf32>
    %52 = tpu.matmul %49, %51, %cst_29 {dimension_numbers = #tpu.dot_dimension_numbers<[1], [0], [0], [1], [0, 0, 1, 1], [], []>} : vector<256x4xbf16>, vector<4x8xbf16>, vector<256x8xf32> -> vector<256x8xf32>
    %53 = arith.addf %47, %52 : vector<256x8xf32>
    %c0_30 = arith.constant 0 : index
    %c0_31 = arith.constant 0 : index
    %54 = vector.load %arg3[%c0_30, %c0_31] : memref<1x8xf32, #tpu.memory_space<vmem>>, vector<1x8xf32>
    %55 = vector.broadcast %54 : vector<1x8xf32> to vector<256x8xf32>
    %56 = arith.addf %53, %55 : vector<256x8xf32>
    %cst_32 = arith.constant 0.000000e+00 : f32
    %57 = vector.broadcast %cst_32 : f32 to vector<256x8xf32>
    %58 = arith.maximumf %56, %57 : vector<256x8xf32>
    %59 = arith.truncf %58 : vector<256x8xf32> to vector<256x8xbf16>
    %cst_33 = arith.constant 0.000000e+00 : bf16
    %60 = vector.broadcast %cst_33 : bf16 to vector<1x1x18x8xbf16>
    %c0_34 = arith.constant 0 : index
    %c0_35 = arith.constant 0 : index
    %c0_36 = arith.constant 0 : index
    %c0_37 = arith.constant 0 : index
    %61 = vector.load %arg8[%c0_34, %c0_35, %c0_36, %c0_37] : memref<1x18x18x8xbf16, #tpu.memory_space<vmem>>, vector<1x1x18x8xbf16>
    tpu.vector_store %arg8[%c0_34, %c0_35, %c0_36, %c0_37], %60 {strides = array<i32>} : memref<1x18x18x8xbf16, #tpu.memory_space<vmem>>, vector<1x1x18x8xbf16>,
    %cst_38 = arith.constant 0.000000e+00 : bf16
    %62 = vector.broadcast %cst_38 : bf16 to vector<1x1x18x8xbf16>
    %c0_39 = arith.constant 0 : index
    %c17 = arith.constant 17 : index
    %c0_40 = arith.constant 0 : index
    %c0_41 = arith.constant 0 : index
    %63 = vector.load %arg8[%c0_39, %c17, %c0_40, %c0_41] : memref<1x18x18x8xbf16, #tpu.memory_space<vmem>>, vector<1x1x18x8xbf16>
    tpu.vector_store %arg8[%c0_39, %c17, %c0_40, %c0_41], %62 {strides = array<i32>} : memref<1x18x18x8xbf16, #tpu.memory_space<vmem>>, vector<1x1x18x8xbf16>,
    %cst_42 = arith.constant 0.000000e+00 : bf16
    %64 = vector.broadcast %cst_42 : bf16 to vector<1x18x1x8xbf16>
    %c0_43 = arith.constant 0 : index
    %c0_44 = arith.constant 0 : index
    %c0_45 = arith.constant 0 : index
    %c0_46 = arith.constant 0 : index
    %65 = vector.load %arg8[%c0_43, %c0_44, %c0_45, %c0_46] : memref<1x18x18x8xbf16, #tpu.memory_space<vmem>>, vector<1x18x1x8xbf16>
    tpu.vector_store %arg8[%c0_43, %c0_44, %c0_45, %c0_46], %64 {strides = array<i32>} : memref<1x18x18x8xbf16, #tpu.memory_space<vmem>>, vector<1x18x1x8xbf16>,
    %cst_47 = arith.constant 0.000000e+00 : bf16
    %66 = vector.broadcast %cst_47 : bf16 to vector<1x18x1x8xbf16>
    %c0_48 = arith.constant 0 : index
    %c0_49 = arith.constant 0 : index
    %c17_50 = arith.constant 17 : index
    %c0_51 = arith.constant 0 : index
    %67 = vector.load %arg8[%c0_48, %c0_49, %c17_50, %c0_51] : memref<1x18x18x8xbf16, #tpu.memory_space<vmem>>, vector<1x18x1x8xbf16>
    tpu.vector_store %arg8[%c0_48, %c0_49, %c17_50, %c0_51], %66 {strides = array<i32>} : memref<1x18x18x8xbf16, #tpu.memory_space<vmem>>, vector<1x18x1x8xbf16>,
    %68 = vector.shape_cast %59 : vector<256x8xbf16> to vector<1x16x16x8xbf16>
    %c0_52 = arith.constant 0 : index
    %c1_53 = arith.constant 1 : index
    %c1_54 = arith.constant 1 : index
    %c0_55 = arith.constant 0 : index
    %69 = vector.load %arg8[%c0_52, %c1_53, %c1_54, %c0_55] : memref<1x18x18x8xbf16, #tpu.memory_space<vmem>>, vector<1x16x16x8xbf16>
    tpu.vector_store %arg8[%c0_52, %c1_53, %c1_54, %c0_55], %68 {strides = array<i32>} : memref<1x18x18x8xbf16, #tpu.memory_space<vmem>>, vector<1x16x16x8xbf16>,
    %c0_56 = arith.constant 0 : index
    %c0_57 = arith.constant 0 : index
    %c0_58 = arith.constant 0 : index
    %c0_59 = arith.constant 0 : index
    %70 = vector.load %arg8[%c0_56, %c0_57, %c0_58, %c0_59] : memref<1x18x18x8xbf16, #tpu.memory_space<vmem>>, vector<1x18x18x8xbf16>
    %71 = vector.extract_strided_slice %70 {offsets = [0, 0, 0, 0], sizes = [1, 16, 16, 8], strides = [1, 1, 1, 1]} : vector<1x18x18x8xbf16> to vector<1x16x16x8xbf16>
    %72 = vector.shape_cast %71 : vector<1x16x16x8xbf16> to vector<256x8xbf16>
    %c0_60 = arith.constant 0 : index
    %c0_61 = arith.constant 0 : index
    %c0_62 = arith.constant 0 : index
    %73 = vector.load %arg4[%c0_60, %c0_61, %c0_62] : memref<9x8x8xbf16, #tpu.memory_space<vmem>>, vector<1x8x8xbf16>
    %74 = vector.shape_cast %73 : vector<1x8x8xbf16> to vector<8x8xbf16>
    %cst_63 = arith.constant dense<0.000000e+00> : vector<256x8xf32>
    %75 = tpu.matmul %72, %74, %cst_63 {dimension_numbers = #tpu.dot_dimension_numbers<[1], [0], [0], [1], [0, 0, 1, 1], [], []>} : vector<256x8xbf16>, vector<8x8xbf16>, vector<256x8xf32> -> vector<256x8xf32>
    %76 = vector.extract_strided_slice %70 {offsets = [0, 0, 1, 0], sizes = [1, 16, 16, 8], strides = [1, 1, 1, 1]} : vector<1x18x18x8xbf16> to vector<1x16x16x8xbf16>
    %77 = vector.shape_cast %76 : vector<1x16x16x8xbf16> to vector<256x8xbf16>
    %c1_64 = arith.constant 1 : index
    %c0_65 = arith.constant 0 : index
    %c0_66 = arith.constant 0 : index
    %78 = vector.load %arg4[%c1_64, %c0_65, %c0_66] : memref<9x8x8xbf16, #tpu.memory_space<vmem>>, vector<1x8x8xbf16>
    %79 = vector.shape_cast %78 : vector<1x8x8xbf16> to vector<8x8xbf16>
    %cst_67 = arith.constant dense<0.000000e+00> : vector<256x8xf32>
    %80 = tpu.matmul %77, %79, %cst_67 {dimension_numbers = #tpu.dot_dimension_numbers<[1], [0], [0], [1], [0, 0, 1, 1], [], []>} : vector<256x8xbf16>, vector<8x8xbf16>, vector<256x8xf32> -> vector<256x8xf32>
    %81 = arith.addf %75, %80 : vector<256x8xf32>
    %82 = vector.extract_strided_slice %70 {offsets = [0, 0, 2, 0], sizes = [1, 16, 16, 8], strides = [1, 1, 1, 1]} : vector<1x18x18x8xbf16> to vector<1x16x16x8xbf16>
    %83 = vector.shape_cast %82 : vector<1x16x16x8xbf16> to vector<256x8xbf16>
    %c2_68 = arith.constant 2 : index
    %c0_69 = arith.constant 0 : index
    %c0_70 = arith.constant 0 : index
    %84 = vector.load %arg4[%c2_68, %c0_69, %c0_70] : memref<9x8x8xbf16, #tpu.memory_space<vmem>>, vector<1x8x8xbf16>
    %85 = vector.shape_cast %84 : vector<1x8x8xbf16> to vector<8x8xbf16>
    %cst_71 = arith.constant dense<0.000000e+00> : vector<256x8xf32>
    %86 = tpu.matmul %83, %85, %cst_71 {dimension_numbers = #tpu.dot_dimension_numbers<[1], [0], [0], [1], [0, 0, 1, 1], [], []>} : vector<256x8xbf16>, vector<8x8xbf16>, vector<256x8xf32> -> vector<256x8xf32>
    %87 = arith.addf %81, %86 : vector<256x8xf32>
    %88 = vector.extract_strided_slice %70 {offsets = [0, 1, 0, 0], sizes = [1, 16, 16, 8], strides = [1, 1, 1, 1]} : vector<1x18x18x8xbf16> to vector<1x16x16x8xbf16>
    %89 = vector.shape_cast %88 : vector<1x16x16x8xbf16> to vector<256x8xbf16>
    %c3_72 = arith.constant 3 : index
    %c0_73 = arith.constant 0 : index
    %c0_74 = arith.constant 0 : index
    %90 = vector.load %arg4[%c3_72, %c0_73, %c0_74] : memref<9x8x8xbf16, #tpu.memory_space<vmem>>, vector<1x8x8xbf16>
    %91 = vector.shape_cast %90 : vector<1x8x8xbf16> to vector<8x8xbf16>
    %cst_75 = arith.constant dense<0.000000e+00> : vector<256x8xf32>
    %92 = tpu.matmul %89, %91, %cst_75 {dimension_numbers = #tpu.dot_dimension_numbers<[1], [0], [0], [1], [0, 0, 1, 1], [], []>} : vector<256x8xbf16>, vector<8x8xbf16>, vector<256x8xf32> -> vector<256x8xf32>
    %93 = arith.addf %87, %92 : vector<256x8xf32>
    %94 = vector.extract_strided_slice %70 {offsets = [0, 1, 1, 0], sizes = [1, 16, 16, 8], strides = [1, 1, 1, 1]} : vector<1x18x18x8xbf16> to vector<1x16x16x8xbf16>
    %95 = vector.shape_cast %94 : vector<1x16x16x8xbf16> to vector<256x8xbf16>
    %c4_76 = arith.constant 4 : index
    %c0_77 = arith.constant 0 : index
    %c0_78 = arith.constant 0 : index
    %96 = vector.load %arg4[%c4_76, %c0_77, %c0_78] : memref<9x8x8xbf16, #tpu.memory_space<vmem>>, vector<1x8x8xbf16>
    %97 = vector.shape_cast %96 : vector<1x8x8xbf16> to vector<8x8xbf16>
    %cst_79 = arith.constant dense<0.000000e+00> : vector<256x8xf32>
    %98 = tpu.matmul %95, %97, %cst_79 {dimension_numbers = #tpu.dot_dimension_numbers<[1], [0], [0], [1], [0, 0, 1, 1], [], []>} : vector<256x8xbf16>, vector<8x8xbf16>, vector<256x8xf32> -> vector<256x8xf32>
    %99 = arith.addf %93, %98 : vector<256x8xf32>
    %100 = vector.extract_strided_slice %70 {offsets = [0, 1, 2, 0], sizes = [1, 16, 16, 8], strides = [1, 1, 1, 1]} : vector<1x18x18x8xbf16> to vector<1x16x16x8xbf16>
    %101 = vector.shape_cast %100 : vector<1x16x16x8xbf16> to vector<256x8xbf16>
    %c5_80 = arith.constant 5 : index
    %c0_81 = arith.constant 0 : index
    %c0_82 = arith.constant 0 : index
    %102 = vector.load %arg4[%c5_80, %c0_81, %c0_82] : memref<9x8x8xbf16, #tpu.memory_space<vmem>>, vector<1x8x8xbf16>
    %103 = vector.shape_cast %102 : vector<1x8x8xbf16> to vector<8x8xbf16>
    %cst_83 = arith.constant dense<0.000000e+00> : vector<256x8xf32>
    %104 = tpu.matmul %101, %103, %cst_83 {dimension_numbers = #tpu.dot_dimension_numbers<[1], [0], [0], [1], [0, 0, 1, 1], [], []>} : vector<256x8xbf16>, vector<8x8xbf16>, vector<256x8xf32> -> vector<256x8xf32>
    %105 = arith.addf %99, %104 : vector<256x8xf32>
    %106 = vector.extract_strided_slice %70 {offsets = [0, 2, 0, 0], sizes = [1, 16, 16, 8], strides = [1, 1, 1, 1]} : vector<1x18x18x8xbf16> to vector<1x16x16x8xbf16>
    %107 = vector.shape_cast %106 : vector<1x16x16x8xbf16> to vector<256x8xbf16>
    %c6_84 = arith.constant 6 : index
    %c0_85 = arith.constant 0 : index
    %c0_86 = arith.constant 0 : index
    %108 = vector.load %arg4[%c6_84, %c0_85, %c0_86] : memref<9x8x8xbf16, #tpu.memory_space<vmem>>, vector<1x8x8xbf16>
    %109 = vector.shape_cast %108 : vector<1x8x8xbf16> to vector<8x8xbf16>
    %cst_87 = arith.constant dense<0.000000e+00> : vector<256x8xf32>
    %110 = tpu.matmul %107, %109, %cst_87 {dimension_numbers = #tpu.dot_dimension_numbers<[1], [0], [0], [1], [0, 0, 1, 1], [], []>} : vector<256x8xbf16>, vector<8x8xbf16>, vector<256x8xf32> -> vector<256x8xf32>
    %111 = arith.addf %105, %110 : vector<256x8xf32>
    %112 = vector.extract_strided_slice %70 {offsets = [0, 2, 1, 0], sizes = [1, 16, 16, 8], strides = [1, 1, 1, 1]} : vector<1x18x18x8xbf16> to vector<1x16x16x8xbf16>
    %113 = vector.shape_cast %112 : vector<1x16x16x8xbf16> to vector<256x8xbf16>
    %c7_88 = arith.constant 7 : index
    %c0_89 = arith.constant 0 : index
    %c0_90 = arith.constant 0 : index
    %114 = vector.load %arg4[%c7_88, %c0_89, %c0_90] : memref<9x8x8xbf16, #tpu.memory_space<vmem>>, vector<1x8x8xbf16>
    %115 = vector.shape_cast %114 : vector<1x8x8xbf16> to vector<8x8xbf16>
    %cst_91 = arith.constant dense<0.000000e+00> : vector<256x8xf32>
    %116 = tpu.matmul %113, %115, %cst_91 {dimension_numbers = #tpu.dot_dimension_numbers<[1], [0], [0], [1], [0, 0, 1, 1], [], []>} : vector<256x8xbf16>, vector<8x8xbf16>, vector<256x8xf32> -> vector<256x8xf32>
    %117 = arith.addf %111, %116 : vector<256x8xf32>
    %118 = vector.extract_strided_slice %70 {offsets = [0, 2, 2, 0], sizes = [1, 16, 16, 8], strides = [1, 1, 1, 1]} : vector<1x18x18x8xbf16> to vector<1x16x16x8xbf16>
    %119 = vector.shape_cast %118 : vector<1x16x16x8xbf16> to vector<256x8xbf16>
    %c8_92 = arith.constant 8 : index
    %c0_93 = arith.constant 0 : index
    %c0_94 = arith.constant 0 : index
    %120 = vector.load %arg4[%c8_92, %c0_93, %c0_94] : memref<9x8x8xbf16, #tpu.memory_space<vmem>>, vector<1x8x8xbf16>
    %121 = vector.shape_cast %120 : vector<1x8x8xbf16> to vector<8x8xbf16>
    %cst_95 = arith.constant dense<0.000000e+00> : vector<256x8xf32>
    %122 = tpu.matmul %119, %121, %cst_95 {dimension_numbers = #tpu.dot_dimension_numbers<[1], [0], [0], [1], [0, 0, 1, 1], [], []>} : vector<256x8xbf16>, vector<8x8xbf16>, vector<256x8xf32> -> vector<256x8xf32>
    %123 = arith.addf %117, %122 : vector<256x8xf32>
    %c0_96 = arith.constant 0 : index
    %c0_97 = arith.constant 0 : index
    %124 = vector.load %arg5[%c0_96, %c0_97] : memref<4x8xbf16, #tpu.memory_space<vmem>>, vector<4x8xbf16>
    %cst_98 = arith.constant dense<0.000000e+00> : vector<256x8xf32>
    %125 = tpu.matmul %25, %124, %cst_98 {dimension_numbers = #tpu.dot_dimension_numbers<[1], [0], [0], [1], [0, 0, 1, 1], [], []>} : vector<256x4xbf16>, vector<4x8xbf16>, vector<256x8xf32> -> vector<256x8xf32>
    %126 = arith.addf %123, %125 : vector<256x8xf32>
    %127 = vector.shape_cast %126 : vector<256x8xf32> to vector<1x8x2x16x8xf32>
    %128 = vector.extract_strided_slice %127 {offsets = [0, 0, 0, 0, 0], sizes = [1, 8, 1, 16, 8], strides = [1, 1, 1, 1, 1]} : vector<1x8x2x16x8xf32> to vector<1x8x1x16x8xf32>
    %129 = vector.shape_cast %128 : vector<1x8x1x16x8xf32> to vector<1x8x16x8xf32>
    %130 = vector.extract_strided_slice %127 {offsets = [0, 0, 1, 0, 0], sizes = [1, 8, 1, 16, 8], strides = [1, 1, 1, 1, 1]} : vector<1x8x2x16x8xf32> to vector<1x8x1x16x8xf32>
    %131 = vector.shape_cast %130 : vector<1x8x1x16x8xf32> to vector<1x8x16x8xf32>
    %132 = arith.addf %129, %131 : vector<1x8x16x8xf32>
    %c0_99 = arith.constant 0 : index
    %c0_100 = arith.constant 0 : index
    %c0_101 = arith.constant 0 : index
    %c0_102 = arith.constant 0 : index
    %133 = vector.load %arg9[%c0_99, %c0_100, %c0_101, %c0_102] : memref<1x8x16x8xf32, #tpu.memory_space<vmem>>, vector<1x8x16x8xf32>
    tpu.vector_store %arg9[%c0_99, %c0_100, %c0_101, %c0_102], %132 {strides = array<i32>} : memref<1x8x16x8xf32, #tpu.memory_space<vmem>>, vector<1x8x16x8xf32>,
    %c0_103 = arith.constant 0 : index
    %c0_104 = arith.constant 0 : index
    %c0_105 = arith.constant 0 : index
    %c0_106 = arith.constant 0 : index
    %134 = tpu.strided_load %arg9[%c0_103, %c0_104, %c0_105, %c0_106] {strides = array<i32: 1, 1, 2, 1>} : memref<1x8x16x8xf32, #tpu.memory_space<vmem>>, vector<1x8x8x8xf32>
    %c0_107 = arith.constant 0 : index
    %c0_108 = arith.constant 0 : index
    %c1_109 = arith.constant 1 : index
    %c0_110 = arith.constant 0 : index
    %135 = tpu.strided_load %arg9[%c0_107, %c0_108, %c1_109, %c0_110] {strides = array<i32: 1, 1, 2, 1>} : memref<1x8x16x8xf32, #tpu.memory_space<vmem>>, vector<1x8x8x8xf32>
    %136 = arith.addf %134, %135 : vector<1x8x8x8xf32>
    %cst_111 = arith.constant 2.500000e-01 : f32
    %137 = vector.broadcast %cst_111 : f32 to vector<1x8x8x8xf32>
    %138 = arith.mulf %137, %136 : vector<1x8x8x8xf32>
    %c0_112 = arith.constant 0 : index
    %c0_113 = arith.constant 0 : index
    %139 = vector.load %arg6[%c0_112, %c0_113] : memref<1x8xf32, #tpu.memory_space<vmem>>, vector<1x8xf32>
    %140 = vector.shape_cast %139 : vector<1x8xf32> to vector<1x1x1x8xf32>
    %141 = vector.broadcast %140 : vector<1x1x1x8xf32> to vector<1x8x8x8xf32>
    %142 = arith.addf %138, %141 : vector<1x8x8x8xf32>
    %c0_114 = arith.constant 0 : index
    %c0_115 = arith.constant 0 : index
    %c0_116 = arith.constant 0 : index
    %c0_117 = arith.constant 0 : index
    %143 = vector.load %arg7[%c0_114, %c0_115, %c0_116, %c0_117] : memref<1x8x8x8xf32, #tpu.memory_space<vmem>>, vector<1x8x8x8xf32>
    tpu.vector_store %arg7[%c0_114, %c0_115, %c0_116, %c0_117], %142 {strides = array<i32>} : memref<1x8x8x8xf32, #tpu.memory_space<vmem>>, vector<1x8x8x8xf32>,
    return
  }
  func.func @transform_0(%arg0: i32) -> (i32, i32, i32, i32) {
    %c0_i32 = arith.constant 0 : i32
    %c0_i32_0 = arith.constant 0 : i32
    %c0_i32_1 = arith.constant 0 : i32
    %c0_i32_2 = arith.constant 0 : i32
    return %arg0, %c0_i32, %c0_i32_0, %c0_i32_1 : i32, i32, i32, i32
  }
  func.func @transform_1(%arg0: i32) -> (i32, i32, i32) {
    %c0_i32 = arith.constant 0 : i32
    %c0_i32_0 = arith.constant 0 : i32
    %c0_i32_1 = arith.constant 0 : i32
    %c0_i32_2 = arith.constant 0 : i32
    return %c0_i32, %c0_i32_0, %c0_i32_1 : i32, i32, i32
  }
  func.func @transform_2(%arg0: i32) -> (i32, i32) {
    %c0_i32 = arith.constant 0 : i32
    %c0_i32_0 = arith.constant 0 : i32
    %c0_i32_1 = arith.constant 0 : i32
    return %c0_i32, %c0_i32_0 : i32, i32
  }
  func.func @transform_3(%arg0: i32) -> (i32, i32, i32) {
    %c0_i32 = arith.constant 0 : i32
    %c0_i32_0 = arith.constant 0 : i32
    %c0_i32_1 = arith.constant 0 : i32
    %c0_i32_2 = arith.constant 0 : i32
    return %c0_i32, %c0_i32_0, %c0_i32_1 : i32, i32, i32
  }
  func.func @transform_4(%arg0: i32) -> (i32, i32) {
    %c0_i32 = arith.constant 0 : i32
    %c0_i32_0 = arith.constant 0 : i32
    %c0_i32_1 = arith.constant 0 : i32
    return %c0_i32, %c0_i32_0 : i32, i32
  }
  func.func @transform_5(%arg0: i32) -> (i32, i32) {
    %c0_i32 = arith.constant 0 : i32
    %c0_i32_0 = arith.constant 0 : i32
    %c0_i32_1 = arith.constant 0 : i32
    return %c0_i32, %c0_i32_0 : i32, i32
  }
  func.func @transform_6(%arg0: i32) -> (i32, i32, i32, i32) {
    %c0_i32 = arith.constant 0 : i32
    %c0_i32_0 = arith.constant 0 : i32
    %c0_i32_1 = arith.constant 0 : i32
    %c0_i32_2 = arith.constant 0 : i32
    return %arg0, %c0_i32, %c0_i32_0, %c0_i32_1 : i32, i32, i32, i32
  }
}

</mosaic_0001>

<bundles_post_ra>
// kernel: tpu_custom_call.1
= control target key start
LH: loop header
LB: loop body
LE: loop exit
PB: predicated region body
PF: predicated region fallthrough
CT: control target
= control target key end

     0   :  { %11 = vsyncpa [#allocation5], 0  ;;  %s8682_s0 = inlined_call_operand.vmem [shape: bf16[2,18,18,4], index: 0, kind: input, shape index: {}]   ;;  %s8683_s1 = inlined_call_operand.vmem [shape: bf16[9,4,8], index: 1, kind: input, shape index: {}]   ;;  %s8684_s2 = inlined_call_operand.vmem [shape: f32[1,8], index: 2, kind: input, shape index: {}]   ;;  %s8685_s3 = inlined_call_operand.vmem [shape: bf16[9,8,8], index: 3, kind: input, shape index: {}]   ;;  %s8686_s4 = inlined_call_operand.vmem [shape: bf16[4,8], index: 4, kind: input, shape index: {}]   ;;  %s8687_s5 = inlined_call_operand.vmem [shape: f32[1,8], index: 5, kind: input, shape index: {}]   ;;  %s8688_s6 = inlined_call_operand.hbm [shape: f32[2,8,8,8], index: 6, kind: output, shape index: {}]  }
   0x1   :  { %13 = vsyncpa [#allocation5 + $0x1], 0  ;;  %s6058_s21 = smov 0   ;;  %s6060_s22 = smov 0  }
   0x2   :  { %s6062_s23 = smov 0   ;;  %s6064_s24 = smov 0  }
   0x3 LB: > { %s6079_s25 = sadd.s32 4294967295, %s6018_s24   ;;  %s5340_s26 = sadd.s32 4294967294, %s6018_s24   ;;  %s6018_s24 = sphi %s6064_s24, %s9007_s24   ;;  %s6014_s23 = sphi %s6062_s23, %s9006_s23   ;;  %s6010_s22 = sphi %s6060_s22, %s9005_s22   ;;  %s6006_s21 = sphi %s6058_s21, %s9004_s21  }
   0x4   : > { %s6083_s27 = sadd.s32 1, %s6018_s24   ;;  %s157_s28 = sadd.s32 1, %s6014_s23 }
   0x5   : > { %s154_s29 = ssub.s32 %s6018_s24, %s6083_s27  ;;  %p167_p0 = scmp.ne.s32.totalorder %s6014_s23, %s6010_s22 }
   0x6   : > { %p155_p1 = scmp.eq.s32.totalorder %s154_s29, 0  ;;  %p168_p2 = scmp.eq.s32.totalorder %s6079_s25, 1 }
   0x7   : > { %p173_p3 = scmp.ne.s32.totalorder %s6010_s22, %s6006_s21  ;;  %p174_p4 = scmp.eq.s32.totalorder %s5340_s26, 1 }
   0x8   : > { %s6094_s30 = scalar_select %p155_p1, %s6014_s23, %s157_s28  }
   0x9   : > { %p6096_p5 = por %p168_p2, %p167_p0  ;;  %p6100_p6 = por %p174_p4, %p173_p3 }
   0xa   : > { %p5343_p7 = scmp.ge.s32.totalorder %s6018_s24, 1  ;;  %p215_p8 = scmp.lt.s32.totalorder %s6018_s24, 3 }
   0xc   : > { %p216_p9 = pnand %p5343_p7, %p215_p8 }
   0xe   : > { %219 = sbr.rel (%p216_p9) target bundleno = 1569 (0x621), region = 44 }
  0x13   : > { %vm792_vm0 = vcmask 1041408   ;;  %v5459_v0 = vld [vmem:[%s8683_s1 + $0x4] sm:$0x3]  ;;  %p245_p10 = scmp.lt.s32.totalorder %s6079_s25, 1  ;;  %v5346_v2 = vld [vmem:[%s8683_s1 + $0x2] sm:$0x3] }
  0x14   : > { %v6111_v1 = vsel %vm792_vm0, %v5459_v0, 0  ;;  %v305_v3 = vld [vmem:[%s8683_s1] sm:$0x3]  ;;  %v794_v4 = vsel %vm792_vm0, %v5346_v2, 0  ;;  %vm1121_vm1 = vcmask 1042432   ;;  %vm1122_vm2 = vcmask 1046532  }
  0x15   : > { %1344 = vmatpush.bf16.msra.mxu2 %v6111_v1  ;;  %s246_s15 = scalar_select %p245_p10, %s6079_s25, 1  ;;  %v1014_v5 = vsel %vm792_vm0, %v305_v3, 0  ;;  %803 = vmatpush.bf16.msra.mxu0 %v794_v4  ;;  %v5497_v6 = vld [vmem:[%s8683_s1 + $0x8] sm:$0x3]  ;;  %vm743_vm3 = vcmask 31744   ;;  %vm6132_vm4 = vmor %vm1121_vm1, %vm1122_vm2  ;;  %vm3515_vm8 = vcmask 1043456  }
  0x16   : > { %5888 = vmatpush.bf16.msra.mxu3 %v794_v4  ;;  %1023 = vmatpush.bf16.msra.mxu1 %v1014_v5  ;;  %v1625_v7 = vsel %vm792_vm0, %v5497_v6, 0  ;;  %vm306_vm5 = vsmask.f32 3328  ;;  %vm307_vm6 = vsmask.f32 7440  ;;  %vm2418_vm9 = vcmask 60416  }
  0x17   : > { %s5891_s18 = smul.u32 216, %s246_s15  ;;  %vm6160_vm7 = vmor %vm306_vm5, %vm307_vm6  ;;  %vm2421_vm10 = vcmask 57344   ;;  %vm2428_vm11 = vsmask.f32 256  ;;  %vm2484_vm13 = vsmask.f32 7938 }
  0x18   : > { %vm7009_vm12 = vmand %vm2421_vm10, %vm2428_vm11  ;;  %vm3466_vm15 = vcmask 64512   ;;  %vm2540_vm2 = vsmask.f32 4368  ;;  %s242_s14 = sand.u32 1, %s6010_s22   ;;  %s5976_s15 = scalar_lea.hbm %s8688_s6, 128 }
  0x19   : > { %1634 = vmatpush.bf16.msrb.mxu0 %v1625_v7  ;;  %s6130_s26 = scalar_lea.vmem %s8682_s0, %s5891_s18  ;;  %vm7018_vm14 = vmand %vm2421_vm10, %vm2484_vm13  ;;  %s5887_s18 = sshll.u32 %s6079_s25, 6 }
  0x1a   : > { %5889 = vmatpush.bf16.msrb.mxu3 %v1014_v5  ;;  %v251_v9 = vld [vmem:[%s6130_s26] sm:$0xf]  ;;  %v252_v10 = vld [vmem:[%s6130_s26 + $0x4] sm:$0xf]  ;;  %v253_v11 = vld [vmem:[%s6130_s26 + $0x8] sm:$0x1]  ;;  %s5274_s28 = scalar_lea.hbm %s8688_s6, %s5887_s18 }
  0x1b   : > { %v5443_v12 = vrot.slane %v251_v9, 9  ;;  %v1126_v13 = vrot.slane %v252_v10, 5  ;;  %v1129_v14 = vrot.slane %v253_v11, 5  ;;  %v310_v15 = vshrl.u32 %v251_v9, 16  ;;  %v6140_v16 = vld [vmem:[%s6130_s26 + $0x90] sm:$0xf]  ;;  %vm7105_vm1 = vmand %vm2418_vm9, %vm2484_vm13 }
  0x1c   : > { %v313_v17 = vshll.u32 %v251_v9, 16  ;;  %v319_v18 = vshll.u32 %v252_v10, 16  ;;  %v323_v19 = vshrl.u32 %v252_v10, 16  ;;  %v329_v20 = vshll.u32 %v253_v11, 16  ;;  %v6145_v24 = vld [vmem:[%s6130_s26 + $0x94] sm:$0xf]  ;;  %vm7116_vm5 = vmor %vm2428_vm11, %vm2540_vm2 }
  0x1d   : > { %v1127_v21 = vsel %vm6132_vm4, %v5443_v12, %v1126_v13  ;;  %v1128_v22 = vrot.slane %v1126_v13, 4  ;;  %v312_v23 = vrot.slane %v310_v15, 4  ;;  %v598_v25 = vshrl.u32 %v6140_v16, 16  ;;  %v5851_v26 = vld [vmem:[%s6130_s26] sm:$0xff]  ;;  %v6150_v31 = vld [vmem:[%s6130_s26 + $0x98] sm:$0x1] }
  0x1e   : > { %v1238_v27 = vunpack.c.l.b16 %v1127_v21  ;;  %v315_v28 = vrot.slane %v313_v17, 5  ;;  %v321_v29 = vrot.slane %v319_v18, 5  ;;  %v325_v30 = vrot.slane %v323_v19, 4  ;;  %5427 = vmatmul.msk.bf16.vlgmr.msra.gmra.mxu1 %vm743_vm3, %v5851_v26  ;;  %v255_v40 = vld [vmem:[%s6130_s26 + $0x10] sm:$0xf]  ;;  %s5277_s9 = sshll.u32 %s5274_s28, 4  ;;  %s5278_s9 = int_to_ptr.hbm [resolvable:$true] %s5277_s9 }
  0x1f   : > { %v1130_v32 = vsel %vm6132_vm4, %v1128_v22, %v1129_v14  ;;  %v331_v33 = vrot.slane %v329_v20, 5  ;;  %v600_v34 = vrot.slane %v598_v25, 4  ;;  %v601_v35 = vshll.u32 %v6140_v16, 16  ;;  %v256_v45 = vld [vmem:[%s6130_s26 + $0x14] sm:$0x1]  ;;  %s5263_s10 = scalar_lea.sflag [#allocation5], %s242_s14 }
  0x20   : > { %v1239_v36 = vunpack.c.l.b16 %v1130_v32  ;;  %v316_v37 = vor.u32 %v315_v28, %v312_v23  ;;  %v326_v38 = vor.u32 %v325_v30, %v321_v29  ;;  %v607_v39 = vshll.u32 %v6145_v24, 16  ;;  %v254_v50 = vld [vmem:[%s6130_s26 + $0xc] sm:$0xf]  ;;  %v6178_v7 = vld [vmem:[%s6130_s26 + $0x9c] sm:$0xf]  ;;  %s5970_s25 = sshra.s32 %s5278_s9, 4  ;;  %s5971_s25 = int_to_ptr.hbm [resolvable:$true] %s5970_s25 }
  0x21   : > { %v603_v42 = vrot.slane %v601_v35, 5  ;;  %v611_v43 = vshrl.u32 %v6145_v24, 16  ;;  %v617_v44 = vshll.u32 %v6150_v31, 16  ;;  %v5444_v54 = vrot.slane %v254_v50, 9  ;;  %v6186_v21 = vld [vmem:[%s6130_s26 + $0xa0] sm:$0xf]  ;;  %p5977_p0 = scmp.lt.s32.totalorder %s5971_s25, %s8688_s6 }
  0x22   : > { %v1270_v46 = vpack.c.b16 %v1239_v36, %v1238_v27  ;;  %v317_v47 = vrot.slane %v316_v37, 4  ;;  %v327_v48 = vrot.slane %v326_v38, 4  ;;  %v609_v49 = vrot.slane %v607_v39, 5  ;;  %v6189_v22 = vld [vmem:[%s6130_s26 + $0xa4] sm:$0x1]  ;;  %s5972_s11 = scalar_lea.hbm %s5971_s25, 64 }
  0x23   : > { %v604_v51 = vor.u32 %v603_v42, %v600_v34  ;;  %v613_v52 = vrot.slane %v611_v43, 4  ;;  %v619_v53 = vrot.slane %v617_v44, 5  ;;  %v1133_v57 = vrot.slane %v255_v40, 5  ;;  %v257_v30 = vld [vmem:[%s6130_s26 + $0x18] sm:$0xf]  ;;  %p5973_p11 = scmp.ne.s32.totalorder %s5971_s25, %s5972_s11  ;;  %p5978_p1 = scmp.lt.s32.totalorder %s5976_s15, %s5972_s11 }
  0x24   : > { %5460 = vmatmul.msk.bf16.vlgmr.msra.gmra.mxu2 %vm743_vm3, %v1270_v46  ;;  %v322_v55 = vsel %vm6160_vm7, %v317_v47, %v321_v29  ;;  %v332_v56 = vsel %vm6160_vm7, %v327_v48, %v331_v33  ;;  %v1136_v58 = vrot.slane %v256_v45, 5  ;;  %v334_v2 = vshrl.u32 %v254_v50, 16  ;;  %v5852_v29 = vld [vmem:[%s6130_s26 + $0xc] sm:$0xff]  ;;  %v258_v43 = vld [vmem:[%s6130_s26 + $0x1c] sm:$0xf] }
  0x25   : > { %v695_v59 = vunpack.c.l.b16 %v322_v55  ;;  %v696_v60 = vunpack.c.l.b16 %v332_v56  ;;  %v605_v61 = vrot.slane %v604_v51, 4  ;;  %v614_v62 = vor.u32 %v613_v52, %v609_v49  ;;  %v259_v55 = vld [vmem:[%s6130_s26 + $0x20] sm:$0x1]  ;;  %p5974_p12 = pnand %p5973_p11, %p6096_p5  ;;  %p5979_p2 = por %p5978_p1, %p5977_p0 }
  0x26   : > { %v1134_v63 = vsel %vm6132_vm4, %v5444_v54, %v1133_v57  ;;  %v1135_v0 = vrot.slane %v1133_v57, 4  ;;  %v337_v3 = vshll.u32 %v254_v50, 16  ;;  %v336_v11 = vrot.slane %v334_v2, 4  ;;  %v6218_v2 = vld [vmem:[%s6130_s26 + $0xac] sm:$0xf] }
  0x27   : > { %v727_v4 = vpack.c.b16 %v696_v60, %v695_v59  ;;  %v610_v5 = vsel %vm6160_vm7, %v605_v61, %v609_v49  ;;  %v615_v6 = vrot.slane %v614_v62, 4  ;;  %v1240_v14 = vunpack.c.l.b16 %v1134_v63  ;;  %p5975_p13 = pneg %p5974_p12 }
  0x28   : > { %v719_v9 = vunpack.c.l.b16 %v610_v5  ;;  %v1137_v10 = vsel %vm6132_vm4, %v1135_v0, %v1136_v58  ;;  %v339_v12 = vrot.slane %v337_v3, 5  ;;  %v343_v15 = vshll.u32 %v255_v40, 16  ;;  %v6215_v0 = vld [vmem:[%s6130_s26 + $0xa8] sm:$0xf] }
  0x29   : > { %5347 = vmatmul.msk.bf16.vlgmr.msra.gmra.mxu0 %vm743_vm3, %v727_v4  ;;  %v620_v13 = vsel %vm6160_vm7, %v615_v6, %v619_v53  ;;  %v347_v17 = vshrl.u32 %v255_v40, 16  ;;  %v353_v20 = vshll.u32 %v256_v45, 16  ;;  %v622_v23 = vshrl.u32 %v6178_v7, 16  ;;  %p5980_p3 = pnand %p5979_p2, %p5975_p13 }
  0x2a   : > { %v720_v18 = vunpack.c.l.b16 %v620_v13  ;;  %v340_v19 = vor.u32 %v339_v12, %v336_v11  ;;  %v1241_v25 = vunpack.c.l.b16 %v1137_v10  ;;  %v345_v26 = vrot.slane %v343_v15, 5 }
  0x2b   : > { %v349_v27 = vrot.slane %v347_v17, 4  ;;  %v625_v28 = vshll.u32 %v6178_v7, 16  ;;  %v355_v34 = vrot.slane %v353_v20, 5  ;;  %v624_v35 = vrot.slane %v622_v23, 4 }
  0x2c   : > { %v6195_v32 = vpack.c.b16 %v720_v18, %v719_v9  ;;  %v341_v33 = vrot.slane %v340_v19, 4  ;;  %v631_v38 = vshll.u32 %v6186_v21, 16  ;;  %v635_v39 = vshrl.u32 %v6186_v21, 16 }
  0x2d   : > { %v350_v36 = vor.u32 %v349_v27, %v345_v26  ;;  %v627_v37 = vrot.slane %v625_v28, 5  ;;  %v641_v42 = vshll.u32 %v6189_v22, 16  ;;  %v358_v44 = vshrl.u32 %v257_v30, 16 }
  0x2e   : > { %8776 = vst [vmem:[#allocation7_spill] sm:$0xff] %v6195_v32  ;;  %5359 = vmatmul.msk.bf16.vlgmr.msra.gmra.mxu3 %vm743_vm3, %v6195_v32  ;;  %v346_v40 = vsel %vm6160_vm7, %v341_v33, %v345_v26  ;;  %v361_v45 = vshll.u32 %v257_v30, 16  ;;  %v633_v48 = vrot.slane %v631_v38, 5  ;;  %5428 = vmatmul.msk.bf16.gmra.mxu1 %vm743_vm3, %v5852_v29  ;;  %v6207_v49 = vpack.c.b16 %v1241_v25, %v1240_v14  ;;  %v6232_v26 = vld [vmem:[%s6130_s26 + $0xb0] sm:$0x1] }
  0x2f   : > { %v351_v46 = vrot.slane %v350_v36, 4  ;;  %v628_v47 = vor.u32 %v627_v37, %v624_v35  ;;  %5890 = vmatpush.bf16.msra.mxu3 %v6111_v1  ;;  %v697_v50 = vunpack.c.l.b16 %v346_v40  ;;  %v637_v51 = vrot.slane %v635_v39, 4  ;;  %v260_v37 = vld [vmem:[%s6130_s26 + $0x24] sm:$0xf] }
  0x30   : > { %v360_v52 = vrot.slane %v358_v44, 4  ;;  %v363_v56 = vrot.slane %v361_v45, 5  ;;  %v371_v57 = vshrl.u32 %v258_v43, 16  ;;  %v643_v60 = vrot.slane %v641_v42, 5  ;;  %v6244_v42 = vld [vmem:[%s6130_s26 + $0x18] sm:$0xff] }
  0x31   : > { %v356_v53 = vsel %vm6160_vm7, %v351_v46, %v355_v34  ;;  %v629_v54 = vrot.slane %v628_v47, 4  ;;  %v638_v59 = vor.u32 %v637_v51, %v633_v48  ;;  %v1140_v61 = vrot.slane %v258_v43, 5 }
  0x32   : > { %v698_v58 = vunpack.c.l.b16 %v356_v53  ;;  %v377_v62 = vshll.u32 %v259_v55, 16  ;;  %v5445_v63 = vrot.slane %v257_v30, 9  ;;  %v373_v5 = vrot.slane %v371_v57, 4 }
  0x33   : > { %v634_v1 = vsel %vm6160_vm7, %v629_v54, %v633_v48  ;;  %v639_v4 = vrot.slane %v638_v59, 4  ;;  %v1143_v6 = vrot.slane %v259_v55, 5  ;;  %v1142_v10 = vrot.slane %v1140_v61, 4 }
  0x34   : > { %5461 = vmatmul.msk.bf16.gmra.mxu2 %vm743_vm3, %v6207_v49  ;;  %v6222_v3 = vpack.c.b16 %v698_v58, %v697_v50  ;;  %v721_v9 = vunpack.c.l.b16 %v634_v1  ;;  %v364_v11 = vor.u32 %v363_v56, %v360_v52  ;;  %v367_v12 = vshll.u32 %v258_v43, 16  ;;  %v261_v43 = vld [vmem:[%s6130_s26 + $0x28] sm:$0xf] }
  0x35   : > { %v644_v13 = vsel %vm6160_vm7, %v639_v4, %v643_v60  ;;  %v646_v14 = vshrl.u32 %v6215_v0, 16  ;;  %v649_v15 = vshll.u32 %v6215_v0, 16  ;;  %v655_v17 = vshll.u32 %v6218_v2, 16  ;;  %v6258_v60 = vld [vmem:[%s6130_s26 + $0xb4] sm:$0xf] }
  0x36   : > { %8777 = vst [vmem:[#allocation8_spill] sm:$0xff] %v6222_v3  ;;  %v722_v18 = vunpack.c.l.b16 %v644_v13  ;;  %v379_v19 = vrot.slane %v377_v62, 5  ;;  %v369_v20 = vrot.slane %v367_v12, 5  ;;  %v1141_v23 = vsel %vm6132_vm4, %v5445_v63, %v1140_v61  ;;  %v6261_v61 = vld [vmem:[%s6130_s26 + $0xb8] sm:$0xf] }
  0x37   : > { %v365_v25 = vrot.slane %v364_v11, 4  ;;  %v648_v27 = vrot.slane %v646_v14, 4  ;;  %v651_v28 = vrot.slane %v649_v15, 5  ;;  %v1144_v29 = vsel %vm6132_vm4, %v1142_v10, %v1143_v6 }
  0x38   : > { %v374_v30 = vor.u32 %v373_v5, %v369_v20  ;;  %v657_v33 = vrot.slane %v655_v17, 5  ;;  %v659_v34 = vshrl.u32 %v6218_v2, 16  ;;  %v6239_v35 = vpack.c.b16 %v722_v18, %v721_v9  ;;  %v262_v5 = vld [vmem:[%s6130_s26 + $0x2c] sm:$0x1] }
  0x39   : > { %5348 = vmatmul.msk.bf16.gmra.mxu0 %vm743_vm3, %v6222_v3  ;;  %v652_v36 = vor.u32 %v651_v28, %v648_v27  ;;  %v665_v40 = vshll.u32 %v6232_v26, 16  ;;  %v1242_v44 = vunpack.c.l.b16 %v1141_v23  ;;  %v1243_v45 = vunpack.c.l.b16 %v1144_v29 }
  0x3a   : > { %8778 = vst [vmem:[#allocation9_spill] sm:$0xff] %v6239_v35  ;;  %v375_v38 = vrot.slane %v374_v30, 4  ;;  %v661_v39 = vrot.slane %v659_v34, 4  ;;  %v370_v46 = vsel %vm6160_vm7, %v365_v25, %v369_v20  ;;  %v382_v50 = vshrl.u32 %v260_v37, 16 }
  0x3b   : > { %v385_v51 = vshll.u32 %v260_v37, 16  ;;  %v653_v52 = vrot.slane %v652_v36, 4  ;;  %v395_v53 = vshrl.u32 %v261_v43, 16  ;;  %v667_v55 = vrot.slane %v665_v40, 5  ;;  %v6277_v36 = vld [vmem:[%s6130_s26 + $0xbc] sm:$0x1] }
  0x3c   : > { %v380_v47 = vsel %vm6160_vm7, %v375_v38, %v379_v19  ;;  %v662_v48 = vor.u32 %v661_v39, %v657_v33  ;;  %v6255_v56 = vpack.c.b16 %v1243_v45, %v1242_v44  ;;  %v699_v57 = vunpack.c.l.b16 %v370_v46  ;;  %v263_v45 = vld [vmem:[%s6130_s26 + $0x30] sm:$0xf] }
  0x3d   : > { %v700_v58 = vunpack.c.l.b16 %v380_v47  ;;  %v391_v59 = vshll.u32 %v261_v43, 16  ;;  %v384_v1 = vrot.slane %v382_v50, 4  ;;  %v387_v62 = vrot.slane %v385_v51, 5  ;;  %v6290_v50 = vld [vmem:[%s6130_s26 + $0x24] sm:$0xff]  ;;  %v264_v51 = vld [vmem:[%s6130_s26 + $0x34] sm:$0xf] }
  0x3e   : > { %5360 = vmatmul.msk.bf16.gmra.mxu3 %vm743_vm3, %v6239_v35  ;;  %v663_v54 = vrot.slane %v662_v48, 4  ;;  %5429 = vmatmul.msk.bf16.gmra.mxu1 %vm743_vm3, %v6244_v42  ;;  %v1147_v63 = vrot.slane %v261_v43, 5  ;;  %v658_v4 = vsel %vm6160_vm7, %v653_v52, %v657_v33  ;;  %v397_v6 = vrot.slane %v395_v53, 4 }
  0x3f   : > { %v393_v9 = vrot.slane %v391_v59, 5  ;;  %v670_v11 = vshrl.u32 %v6258_v60, 16  ;;  %v673_v12 = vshll.u32 %v6258_v60, 16  ;;  %v679_v13 = vshll.u32 %v6261_v61, 16 }
  0x40   : > { %v668_v10 = vsel %vm6160_vm7, %v663_v54, %v667_v55  ;;  %v6273_v14 = vpack.c.b16 %v700_v58, %v699_v57  ;;  %v5446_v15 = vrot.slane %v260_v37, 9  ;;  %v1149_v17 = vrot.slane %v1147_v63, 4 }
  0x41   : > { %v1150_v18 = vrot.slane %v262_v5, 5  ;;  %v388_v19 = vor.u32 %v387_v62, %v384_v1  ;;  %v683_v20 = vshrl.u32 %v6261_v61, 16  ;;  %v723_v23 = vunpack.c.l.b16 %v658_v4 }
  0x42   : > { %8779 = vst [vmem:[#allocation10_spill] sm:$0xff] %v6273_v14  ;;  %v724_v25 = vunpack.c.l.b16 %v668_v10  ;;  %v401_v27 = vshll.u32 %v262_v5, 16  ;;  %v398_v28 = vor.u32 %v397_v6, %v393_v9  ;;  %v672_v29 = vrot.slane %v670_v11, 4  ;;  %v265_v11 = vld [vmem:[%s6130_s26 + $0x38] sm:$0x1] }
  0x43   : > { %v675_v30 = vrot.slane %v673_v12, 5  ;;  %v681_v33 = vrot.slane %v679_v13, 5  ;;  %v685_v34 = vrot.slane %v683_v20, 4  ;;  %v1148_v37 = vsel %vm6132_vm4, %v5446_v15, %v1147_v63 }
  0x44   : > { %5462 = vmatmul.msk.bf16.gmra.mxu2 %vm743_vm3, %v6255_v56  ;;  %v1151_v38 = vsel %vm6132_vm4, %v1149_v17, %v1150_v18  ;;  %v389_v39 = vrot.slane %v388_v19, 4  ;;  %v6285_v40 = vpack.c.b16 %v724_v25, %v723_v23  ;;  %v403_v43 = vrot.slane %v401_v27, 5 }
  0x45   : > { %v399_v44 = vrot.slane %v398_v28, 4  ;;  %v676_v46 = vor.u32 %v675_v30, %v672_v29  ;;  %v686_v47 = vor.u32 %v685_v34, %v681_v33  ;;  %v689_v48 = vshll.u32 %v6277_v36, 16 }
  0x46   : > { %8780 = vst [vmem:[#allocation11_spill] sm:$0xff] %v6285_v40  ;;  %v1244_v52 = vunpack.c.l.b16 %v1148_v37  ;;  %v1245_v53 = vunpack.c.l.b16 %v1151_v38  ;;  %v394_v54 = vsel %vm6160_vm7, %v389_v39, %v393_v9  ;;  %v406_v55 = vshrl.u32 %v263_v45, 16 }
  0x47   : > { %v404_v57 = vsel %vm6160_vm7, %v399_v44, %v403_v43  ;;  %v409_v58 = vshll.u32 %v263_v45, 16  ;;  %v419_v59 = vshrl.u32 %v264_v51, 16  ;;  %v415_v1 = vshll.u32 %v264_v51, 16 }
  0x48   : > { %v677_v62 = vrot.slane %v676_v46, 4  ;;  %v687_v63 = vrot.slane %v686_v47, 4  ;;  %v691_v4 = vrot.slane %v689_v48, 5  ;;  %v6301_v5 = vpack.c.b16 %v1245_v53, %v1244_v52  ;;  %v266_v46 = vld [vmem:[%s6130_s26 + $0x3c] sm:$0xf]  ;;  %v6322_v47 = vld [vmem:[%s6130_s26 + $0x30] sm:$0xff] }
  0x49   : > { %5349 = vmatmul.msk.bf16.gmra.mxu0 %vm743_vm3, %v6273_v14  ;;  %v701_v6 = vunpack.c.l.b16 %v394_v54  ;;  %v702_v9 = vunpack.c.l.b16 %v404_v57  ;;  %v1154_v10 = vrot.slane %v264_v51, 5  ;;  %v408_v12 = vrot.slane %v406_v55, 4  ;;  %v267_v48 = vld [vmem:[%s6130_s26 + $0x40] sm:$0xf] }
  0x4a   : > { %v411_v13 = vrot.slane %v409_v58, 5  ;;  %v421_v15 = vrot.slane %v419_v59, 4  ;;  %v417_v17 = vrot.slane %v415_v1, 5  ;;  %v682_v18 = vsel %vm6160_vm7, %v677_v62, %v681_v33 }
  0x4b   : > { %v692_v19 = vsel %vm6160_vm7, %v687_v63, %v691_v4  ;;  %v425_v20 = vshll.u32 %v265_v11, 16  ;;  %v6310_v23 = vpack.c.b16 %v702_v9, %v701_v6  ;;  %v5447_v25 = vrot.slane %v263_v45, 9  ;;  %v268_v6 = vld [vmem:[%s6130_s26 + $0x44] sm:$0x1] }
  0x4c   : > { %v1156_v27 = vrot.slane %v1154_v10, 4  ;;  %v1157_v28 = vrot.slane %v265_v11, 5  ;;  %v725_v29 = vunpack.c.l.b16 %v682_v18  ;;  %v726_v30 = vunpack.c.l.b16 %v692_v19 }
  0x4d   : > { %8781 = vst [vmem:[#allocation12_spill] sm:$0xff] %v6310_v23  ;;  %v412_v34 = vor.u32 %v411_v13, %v408_v12  ;;  %v422_v37 = vor.u32 %v421_v15, %v417_v17  ;;  %v1155_v33 = vsel %vm6132_vm4, %v5447_v25, %v1154_v10  ;;  %v427_v43 = vrot.slane %v425_v20, 5 }
  0x4e   : > { %5361 = vmatmul.msk.bf16.gmra.mxu3 %vm743_vm3, %v6285_v40  ;;  %5430 = vmatmul.msk.bf16.gmra.mxu1 %vm743_vm3, %v6290_v50  ;;  %v1158_v38 = vsel %vm6132_vm4, %v1156_v27, %v1157_v28  ;;  %v6318_v39 = vpack.c.b16 %v726_v30, %v725_v29  ;;  %v1246_v51 = vunpack.c.l.b16 %v1155_v33  ;;  %v430_v53 = vshrl.u32 %v266_v46, 16  ;;  %v269_v29 = vld [vmem:[%s6130_s26 + $0x48] sm:$0xf]  ;;  %v270_v30 = vld [vmem:[%s6130_s26 + $0x4c] sm:$0xf] }
  0x4f   : > { %v413_v44 = vrot.slane %v412_v34, 4  ;;  %v423_v45 = vrot.slane %v422_v37, 4  ;;  %v1247_v52 = vunpack.c.l.b16 %v1158_v38  ;;  %v433_v54 = vshll.u32 %v266_v46, 16  ;;  %v5863_v34 = vld [vmem:[%s6130_s26 + $0x90] sm:$0xff] }
  0x50   : > { %8782 = vst [vmem:[#allocation13_spill] sm:$0xff] %v6318_v39  ;;  %v443_v58 = vshrl.u32 %v267_v48, 16  ;;  %v439_v59 = vshll.u32 %v267_v48, 16  ;;  %v1161_v62 = vrot.slane %v267_v48, 5  ;;  %v432_v9 = vrot.slane %v430_v53, 4 }
  0x51   : > { %v418_v55 = vsel %vm6160_vm7, %v413_v44, %v417_v17  ;;  %v428_v57 = vsel %vm6160_vm7, %v423_v45, %v427_v43  ;;  %v6333_v1 = vpack.c.b16 %v1247_v52, %v1246_v51  ;;  %v435_v10 = vrot.slane %v433_v54, 5  ;;  %v6350_v45 = vld [vmem:[%s6130_s26 + $0x3c] sm:$0xff] }
  0x52   : > { %v703_v63 = vunpack.c.l.b16 %v418_v55  ;;  %v704_v4 = vunpack.c.l.b16 %v428_v57  ;;  %v445_v11 = vrot.slane %v443_v58, 4  ;;  %v441_v12 = vrot.slane %v439_v59, 5 }
  0x53   : > { %v5448_v13 = vrot.slane %v266_v46, 9  ;;  %v1163_v15 = vrot.slane %v1161_v62, 4  ;;  %v1164_v17 = vrot.slane %v268_v6, 5  ;;  %v449_v19 = vshll.u32 %v268_v6, 16 }
  0x54   : > { %5463 = vmatmul.msk.bf16.gmra.mxu2 %vm743_vm3, %v6301_v5  ;;  %v6338_v18 = vpack.c.b16 %v704_v4, %v703_v63  ;;  %v436_v20 = vor.u32 %v435_v10, %v432_v9  ;;  %v446_v25 = vor.u32 %v445_v11, %v441_v12  ;;  %v454_v46 = vshrl.u32 %v269_v29, 16  ;;  %v271_v9 = vld [vmem:[%s6130_s26 + $0x50] sm:$0x1] }
  0x55   : > { %v1162_v27 = vsel %vm6132_vm4, %v5448_v13, %v1161_v62  ;;  %v1165_v28 = vsel %vm6132_vm4, %v1163_v15, %v1164_v17  ;;  %v451_v37 = vrot.slane %v449_v19, 5  ;;  %v457_v48 = vshll.u32 %v269_v29, 16 }
  0x56   : > { %8783 = vst [vmem:[#allocation14_spill] sm:$0xff] %v6338_v18  ;;  %v437_v33 = vrot.slane %v436_v20, 4  ;;  %v447_v38 = vrot.slane %v446_v25, 4  ;;  %v1248_v43 = vunpack.c.l.b16 %v1162_v27  ;;  %v1249_v44 = vunpack.c.l.b16 %v1165_v28 }
  0x57   : > { %v467_v51 = vshrl.u32 %v270_v30, 16  ;;  %v463_v52 = vshll.u32 %v270_v30, 16  ;;  %v456_v57 = vrot.slane %v454_v46, 4  ;;  %v459_v58 = vrot.slane %v457_v48, 5 }
  0x58   : > { %v442_v53 = vsel %vm6160_vm7, %v437_v33, %v441_v12  ;;  %v452_v54 = vsel %vm6160_vm7, %v447_v38, %v451_v37  ;;  %v6357_v55 = vpack.c.b16 %v1249_v44, %v1248_v43  ;;  %v1168_v6 = vrot.slane %v270_v30, 5  ;;  %v272_v37 = vld [vmem:[%s6130_s26 + $0x54] sm:$0xf]  ;;  %v273_v33 = vld [vmem:[%s6130_s26 + $0x58] sm:$0xf]  ;;  %v6378_v38 = vld [vmem:[%s6130_s26 + $0x48] sm:$0xff] }
  0x59   : > { %5350 = vmatmul.msk.bf16.gmra.mxu0 %vm743_vm3, %v6310_v23  ;;  %v469_v59 = vrot.slane %v467_v51, 4  ;;  %v465_v62 = vrot.slane %v463_v52, 5  ;;  %v705_v63 = vunpack.c.l.b16 %v442_v53  ;;  %v706_v4 = vunpack.c.l.b16 %v452_v54 }
  0x5a   : > { %v473_v10 = vshll.u32 %v271_v9, 16  ;;  %v460_v11 = vor.u32 %v459_v58, %v456_v57  ;;  %v5449_v15 = vrot.slane %v269_v29, 9  ;;  %v1170_v17 = vrot.slane %v1168_v6, 4 }
  0x5b   : > { %v470_v12 = vor.u32 %v469_v59, %v465_v62  ;;  %v6364_v13 = vpack.c.b16 %v706_v4, %v705_v63  ;;  %v1171_v19 = vrot.slane %v271_v9, 5  ;;  %v478_v48 = vshrl.u32 %v272_v37, 16  ;;  %v274_v9 = vld [vmem:[%s6130_s26 + $0x5c] sm:$0x1] }
  0x5c   : > { %v475_v20 = vrot.slane %v473_v10, 5  ;;  %v461_v25 = vrot.slane %v460_v11, 4  ;;  %v1169_v28 = vsel %vm6132_vm4, %v5449_v15, %v1168_v6  ;;  %v481_v51 = vshll.u32 %v272_v37, 16 }
  0x5d   : > { %8784 = vst [vmem:[#allocation15_spill] sm:$0xff] %v6364_v13  ;;  %v471_v27 = vrot.slane %v470_v12, 4  ;;  %v1172_v30 = vsel %vm6132_vm4, %v1170_v17, %v1171_v19  ;;  %v1250_v29 = vunpack.c.l.b16 %v1169_v28  ;;  %v491_v52 = vshrl.u32 %v273_v33, 16 }
  0x5e   : > { %5362 = vmatmul.msk.bf16.gmra.mxu3 %vm743_vm3, %v6318_v39  ;;  %5431 = vmatmul.msk.bf16.gmra.mxu1 %vm743_vm3, %v6322_v47  ;;  %v1251_v43 = vunpack.c.l.b16 %v1172_v30  ;;  %v466_v44 = vsel %vm6160_vm7, %v461_v25, %v465_v62  ;;  %v487_v53 = vshll.u32 %v273_v33, 16  ;;  %v1175_v59 = vrot.slane %v273_v33, 5 }
  0x5f   : > { %v476_v46 = vsel %vm6160_vm7, %v471_v27, %v475_v20  ;;  %v707_v57 = vunpack.c.l.b16 %v466_v44  ;;  %v480_v62 = vrot.slane %v478_v48, 4  ;;  %v483_v63 = vrot.slane %v481_v51, 5  ;;  %v276_v44 = vld [vmem:[%s6130_s26 + $0x64] sm:$0xf] }
  0x60   : > { %v6388_v54 = vpack.c.b16 %v1251_v43, %v1250_v29  ;;  %v708_v58 = vunpack.c.l.b16 %v476_v46  ;;  %v493_v4 = vrot.slane %v491_v52, 4  ;;  %v489_v6 = vrot.slane %v487_v53, 5  ;;  %v6402_v29 = vld [vmem:[%s6130_s26 + $0xa8] sm:$0xff]  ;;  %v6405_v43 = vld [vmem:[%s6130_s26 + $0x54] sm:$0xff] }
  0x61   : > { %v497_v11 = vshll.u32 %v274_v9, 16  ;;  %v5450_v12 = vrot.slane %v272_v37, 9  ;;  %v1177_v15 = vrot.slane %v1175_v59, 4  ;;  %v1178_v17 = vrot.slane %v274_v9, 5  ;;  %8787 = vst [vmem:[#allocation18_spill] sm:$0xff] %v6402_v29 }
  0x62   : > { %v6393_v10 = vpack.c.b16 %v708_v58, %v707_v57  ;;  %v484_v19 = vor.u32 %v483_v63, %v480_v62  ;;  %v494_v20 = vor.u32 %v493_v4, %v489_v6  ;;  %v275_v37 = vld [vmem:[%s6130_s26 + $0x60] sm:$0xf]  ;;  %v515_v58 = vshrl.u32 %v276_v44, 16  ;;  %v5476_v62 = vld [vmem:[%s8683_s1 + $0x6] sm:$0x3] }
  0x63   : > { %v499_v25 = vrot.slane %v497_v11, 5  ;;  %v1176_v27 = vsel %vm6132_vm4, %v5450_v12, %v1175_v59  ;;  %v1179_v28 = vsel %vm6132_vm4, %v1177_v15, %v1178_v17  ;;  %v502_v53 = vshrl.u32 %v275_v37, 16  ;;  %v277_v12 = vld [vmem:[%s6130_s26 + $0x68] sm:$0x1] }
  0x64   : > { %5464 = vmatmul.msk.bf16.gmra.mxu2 %vm743_vm3, %v6333_v1  ;;  %8786 = vst [vmem:[#allocation17_spill] sm:$0xff] %v6393_v10  ;;  %v485_v30 = vrot.slane %v484_v19, 4  ;;  %v495_v33 = vrot.slane %v494_v20, 4  ;;  %v1252_v46 = vunpack.c.l.b16 %v1176_v27  ;;  %v1253_v48 = vunpack.c.l.b16 %v1179_v28 }
  0x65   : > { %v505_v57 = vshll.u32 %v275_v37, 16  ;;  %v511_v59 = vshll.u32 %v276_v44, 16  ;;  %v1469_v63 = vsel %vm792_vm0, %v5476_v62, 0  ;;  %v1182_v11 = vrot.slane %v276_v44, 5  ;;  %v6440_v62 = vld [vmem:[%s6130_s26 + $0x60] sm:$0xff] }
  0x66   : > { %v490_v51 = vsel %vm6160_vm7, %v485_v30, %v489_v6  ;;  %v500_v52 = vsel %vm6160_vm7, %v495_v33, %v499_v25  ;;  %v6421_v4 = vpack.c.b16 %v1253_v48, %v1252_v46  ;;  %v504_v15 = vrot.slane %v502_v53, 4  ;;  %v6436_v53 = vld [vmem:[%s6130_s26 + $0xb4] sm:$0xff] }
  0x67   : > { %v709_v6 = vunpack.c.l.b16 %v490_v51  ;;  %v710_v9 = vunpack.c.l.b16 %v500_v52  ;;  %v507_v17 = vrot.slane %v505_v57, 5  ;;  %v517_v19 = vrot.slane %v515_v58, 4  ;;  %v278_v52 = vld [vmem:[%s6130_s26 + $0x6c] sm:$0xf]  ;;  %8789 = vst [vmem:[#allocation20_spill] sm:$0xff] %v6436_v53 }
  0x68   : > { %v513_v20 = vrot.slane %v511_v59, 5  ;;  %v5451_v27 = vrot.slane %v275_v37, 9  ;;  %v1184_v28 = vrot.slane %v1182_v11, 4  ;;  %v1185_v30 = vrot.slane %v277_v12, 5  ;;  %v279_v59 = vld [vmem:[%s6130_s26 + $0x70] sm:$0xf] }
  0x69   : > { %5351 = vmatmul.msk.bf16.gmra.mxu0 %vm743_vm3, %v6338_v18  ;;  %v6426_v25 = vpack.c.b16 %v710_v9, %v709_v6  ;;  %v521_v33 = vshll.u32 %v277_v12, 16  ;;  %v508_v46 = vor.u32 %v507_v17, %v504_v15  ;;  %v526_v15 = vshrl.u32 %v278_v52, 16 }
  0x6a   : > { %v518_v44 = vor.u32 %v517_v19, %v513_v20  ;;  %v1183_v48 = vsel %vm6132_vm4, %v5451_v27, %v1182_v11  ;;  %v1186_v51 = vsel %vm6132_vm4, %v1184_v28, %v1185_v30  ;;  %v529_v17 = vshll.u32 %v278_v52, 16 }
  0x6b   : > { %8788 = vst [vmem:[#allocation19_spill] sm:$0xff] %v6426_v25  ;;  %v523_v57 = vrot.slane %v521_v33, 5  ;;  %v509_v58 = vrot.slane %v508_v46, 4  ;;  %v1254_v6 = vunpack.c.l.b16 %v1183_v48  ;;  %v1255_v9 = vunpack.c.l.b16 %v1186_v51 }
  0x6c   : > { %v519_v37 = vrot.slane %v518_v44, 4  ;;  %v539_v11 = vshrl.u32 %v279_v59, 16  ;;  %v535_v19 = vshll.u32 %v279_v59, 16  ;;  %v1213_v30 = vrot.slane %v6150_v31, 5 }
  0x6d   : > { %v514_v27 = vsel %vm6160_vm7, %v509_v58, %v513_v20  ;;  %v6453_v46 = vpack.c.b16 %v1255_v9, %v1254_v6  ;;  %v528_v44 = vrot.slane %v526_v15, 4  ;;  %v531_v48 = vrot.slane %v529_v17, 5 }
  0x6e   : > { %5439 = vmatmul.msk.bf16.vlgmr.msrb.gmra.mxu3 %vm743_vm3, %v5863_v34  ;;  %5432 = vmatmul.msk.bf16.gmra.mxu1 %vm743_vm3, %v6350_v45  ;;  %v6373_v34 = vld [vmem:[%s6130_s26 + $0x9c] sm:$0xff]  ;;  %v524_v28 = vsel %vm6160_vm7, %v519_v37, %v523_v57  ;;  %v1189_v51 = vrot.slane %v279_v59, 5  ;;  %v711_v39 = vunpack.c.l.b16 %v514_v27  ;;  %v541_v20 = vrot.slane %v539_v11, 4 }
  0x6f   : > { %8785 = vst [vmem:[#allocation16_spill] sm:$0xff] %v6373_v34  ;;  %1478 = vmatpush.bf16.msrb.mxu3 %v1469_v63  ;;  %v1210_v63 = vrot.slane %v6145_v24, 5  ;;  %v5455_v24 = vrot.slane %v6140_v16, 9  ;;  %v712_v40 = vunpack.c.l.b16 %v524_v28  ;;  %v537_v58 = vrot.slane %v535_v19, 5 }
  0x70   : > { %v5452_v37 = vrot.slane %v278_v52, 9  ;;  %v1191_v6 = vrot.slane %v1189_v51, 4  ;;  %v532_v15 = vor.u32 %v531_v48, %v528_v44 }
  0x71   : > { %v1212_v33 = vrot.slane %v1210_v63, 4  ;;  %v1211_v57 = vsel %vm6132_vm4, %v5455_v24, %v1210_v63  ;;  %v6462_v59 = vpack.c.b16 %v712_v40, %v711_v39  ;;  %v542_v11 = vor.u32 %v541_v20, %v537_v58  ;;  %v282_v20 = vld [vmem:[%s6130_s26 + $0x7c] sm:$0xf] }
  0x72   : > { %v1262_v27 = vunpack.c.l.b16 %v1211_v57  ;;  %v1196_v35 = vrot.slane %v282_v20, 5 }
  0x73   : > { %v1214_v31 = vsel %vm6132_vm4, %v1212_v33, %v1213_v30  ;;  %8790 = vst [vmem:[#allocation21_spill] sm:$0xff] %v6462_v59  ;;  %v1190_v30 = vsel %vm6132_vm4, %v5452_v37, %v1189_v51  ;;  %v533_v33 = vrot.slane %v532_v15, 4  ;;  %v543_v39 = vrot.slane %v542_v11, 4 }
  0x74   : > { %5465 = vmatmul.msk.bf16.gmra.mxu2 %vm743_vm3, %v6357_v55  ;;  %v1263_v63 = vunpack.c.l.b16 %v1214_v31  ;;  %v1217_v51 = vrot.slane %v6186_v21, 5  ;;  %v1256_v31 = vunpack.c.l.b16 %v1190_v30  ;;  %v5515_v30 = vld [vmem:[%s8683_s1 + $0xa] sm:$0x3] }
  0x75   : > { %v538_v15 = vsel %vm6160_vm7, %v533_v33, %v537_v58 }
  0x76   : > { %v6476_v48 = vpack.c.b16 %v1263_v63, %v1262_v27  ;;  %v563_v27 = vshrl.u32 %v282_v20, 16  ;;  %v559_v63 = vshll.u32 %v282_v20, 16 }
  0x78   : > { %8792 = vst [vmem:[#allocation23_spill] sm:$0xff] %v6476_v48 }
  0x79   : > { %5352 = vmatmul.msk.bf16.gmra.mxu0 %vm743_vm3, %v6364_v13 }
  0x7e   : > { %5440 = vmatmul.msk.bf16.gmra.mxu3 %vm743_vm3, %v6373_v34  ;;  %5433 = vmatmul.msk.bf16.gmra.mxu1 %vm743_vm3, %v6378_v38 }
  0x84   : > { %5466 = vmatmul.msk.bf16.gmra.mxu2 %vm743_vm3, %v6388_v54 }
  0x89   : > { %5353 = vmatmul.msk.bf16.gmra.mxu0 %vm743_vm3, %v6393_v10 }
  0x8e   : > { %5441 = vmatmul.msk.bf16.gmra.mxu3 %vm743_vm3, %v6402_v29  ;;  %5434 = vmatmul.msk.bf16.gmra.mxu1 %vm743_vm3, %v6405_v43 }
  0x94   : > { %5467 = vmatmul.msk.bf16.gmra.mxu2 %vm743_vm3, %v6421_v4 }
  0x99   : > { %5354 = vmatmul.msk.bf16.gmra.mxu0 %vm743_vm3, %v6426_v25 }
  0x9b   : > { %v1025_v12 = vpop.f32.mrf.mxu1 }
  0x9e   : > { %5442 = vmatmul.msk.bf16.gmra.mxu3 %vm743_vm3, %v6436_v53  ;;  %5435 = vmatmul.msk.bf16.gmra.mxu1 %vm743_vm3, %v6440_v62  ;;  %v280_v53 = vld [vmem:[%s6130_s26 + $0x74] sm:$0x1] }
  0x9f   : > { %v1192_v9 = vrot.slane %v280_v53, 5  ;;  %v545_v17 = vshll.u32 %v280_v53, 16  ;;  %v281_v53 = vld [vmem:[%s6130_s26 + $0x78] sm:$0xf] }
  0xa0   : > { %v5453_v20 = vrot.slane %v281_v53, 9 }
  0xa1   : > { %v1193_v52 = vsel %vm6132_vm4, %v1191_v6, %v1192_v9  ;;  %v547_v40 = vrot.slane %v545_v17, 5  ;;  %v6482_v6 = vld [vmem:[%s6130_s26 + $0x6c] sm:$0xff]  ;;  %v550_v17 = vshrl.u32 %v281_v53, 16 }
  0xa2   : > { %v1257_v37 = vunpack.c.l.b16 %v1193_v52 }
  0xa3   : > { %v1027_v16 = vpop.f32.mrf.mxu1  ;;  %v548_v11 = vsel %vm6160_vm7, %v543_v39, %v547_v40  ;;  %v1220_v40 = vrot.slane %v6189_v22, 5  ;;  %v1765_v39 = vsel %vm792_vm0, %v5515_v30, 0 }
  0xa4   : > { %5468 = vmatmul.msk.bf16.gmra.mxu2 %vm743_vm3, %v6453_v46  ;;  %v6494_v33 = vpack.c.b16 %v1257_v37, %v1256_v31  ;;  %1774 = vmatpush.bf16.msrb.mxu1 %v1765_v39  ;;  %v565_v31 = vrot.slane %v563_v27, 4  ;;  %v561_v37 = vrot.slane %v559_v63, 5 }
  0xa6   : > { %v805_v19 = vpop.f32.mrf.mxu0  ;;  %8793 = vst [vmem:[#allocation24_spill] sm:$0xff] %v6494_v33 }
  0xa7   : > { %v1026_v28 = vadd.f32 %v1025_v12, %v805_v19  ;;  %v1346_v24 = vpop.f32.mrf.mxu2  ;;  %v5532_v12 = vld [vmem:[%s8683_s1 + $0xc] sm:$0x3]  ;;  %v553_v19 = vshll.u32 %v281_v53, 16 }
  0xa8   : > { %v1899_v57 = vsel %vm792_vm0, %v5532_v12, 0  ;;  %v713_v12 = vunpack.c.l.b16 %v538_v15 }
  0xa9   : > { %v6468_v44 = vadd.f32 %v1346_v24, %v1026_v28  ;;  %5355 = vmatmul.msk.bf16.gmra.mxu0 %vm743_vm3, %v6462_v59  ;;  %1908 = vmatpush.bf16.msrb.mxu2 %v1899_v57  ;;  %v5456_v28 = vrot.slane %v6178_v7, 9  ;;  %v1219_v24 = vrot.slane %v1217_v51, 4  ;;  %v714_v57 = vunpack.c.l.b16 %v548_v11 }
  0xaa   : > { %v552_v7 = vrot.slane %v550_v17, 4  ;;  %v1198_v17 = vrot.slane %v1196_v35, 4 }
  0xab   : > { %8791 = vst [vmem:[#allocation22_spill] sm:$0xff] %v6468_v44  ;;  %v1030_v9 = vpop.f32.mrf.mxu1  ;;  %v1218_v34 = vsel %vm6132_vm4, %v5456_v28, %v1217_v51  ;;  %v1221_v22 = vsel %vm6132_vm4, %v1219_v24, %v1220_v40  ;;  %v6511_v30 = vpack.c.b16 %v714_v57, %v713_v12  ;;  %v1197_v40 = vsel %vm6132_vm4, %v5453_v20, %v1196_v35  ;;  %v284_v35 = vld [vmem:[%s6130_s26 + $0x84] sm:$0xf] }
  0xac   : > { %v1264_v63 = vunpack.c.l.b16 %v1218_v34  ;;  %v1265_v51 = vunpack.c.l.b16 %v1221_v22  ;;  %v1258_v22 = vunpack.c.l.b16 %v1197_v40  ;;  %v1227_v40 = vrot.slane %v6232_v26, 5 }
  0xad   : > { %8795 = vst [vmem:[#allocation26_spill] sm:$0xff] %v6511_v30 }
  0xae   : > { %5472 = vmatmul.msk.bf16.vlgmr.msra.gmra.mxu3 %vm743_vm3, %v6476_v48  ;;  %v807_v21 = vpop.f32.mrf.mxu0  ;;  %5436 = vmatmul.msk.bf16.gmra.mxu1 %vm743_vm3, %v6482_v6 }
  0xaf   : > { %v1028_v58 = vadd.f32 %v1027_v16, %v807_v21  ;;  %v1348_v52 = vpop.f32.mrf.mxu2  ;;  %v283_v16 = vld [vmem:[%s6130_s26 + $0x80] sm:$0x1]  ;;  %v555_v21 = vrot.slane %v553_v19, 5  ;;  %v566_v19 = vor.u32 %v565_v31, %v561_v37  ;;  %v285_v31 = vld [vmem:[%s6130_s26 + $0x88] sm:$0xf] }
  0xb0   : > { %v1199_v11 = vrot.slane %v283_v16, 5  ;;  %v1203_v48 = vrot.slane %v285_v31, 5 }
  0xb1   : > { %v6500_v29 = vpop.f32.mrf.mxu3  ;;  %v6502_v32 = vadd.f32 %v1348_v52, %v1028_v58  ;;  %v569_v58 = vshll.u32 %v283_v16, 16  ;;  %v556_v52 = vor.u32 %v555_v21, %v552_v7  ;;  %v567_v34 = vrot.slane %v566_v19, 4 }
  0xb2   : > { %v1200_v53 = vsel %vm6132_vm4, %v1198_v17, %v1199_v11  ;;  %v6523_v16 = vpack.c.b16 %v1265_v51, %v1264_v63  ;;  %v1224_v21 = vrot.slane %v6218_v2, 5  ;;  %v574_v19 = vshrl.u32 %v284_v35, 16 }
  0xb3   : > { %8794 = vst [vmem:[#allocation25_spill] sm:$0xff] %v6502_v32  ;;  %v1032_v15 = vpop.f32.mrf.mxu1  ;;  %v571_v57 = vrot.slane %v569_v58, 5  ;;  %v557_v7 = vrot.slane %v556_v52, 4  ;;  %v1259_v20 = vunpack.c.l.b16 %v1200_v53  ;;  %v5457_v58 = vrot.slane %v6215_v0, 9 }
  0xb4   : > { %5469 = vmatmul.msk.bf16.gmra.mxu2 %vm743_vm3, %v6494_v33  ;;  %8797 = vst [vmem:[#allocation28_spill] sm:$0xff] %v6523_v16  ;;  %v577_v2 = vshll.u32 %v284_v35, 16  ;;  %v587_v63 = vshrl.u32 %v285_v31, 16  ;;  %v583_v51 = vshll.u32 %v285_v31, 16 }
  0xb5   : > { %v562_v11 = vsel %vm6160_vm7, %v557_v7, %v561_v37  ;;  %v1226_v37 = vrot.slane %v1224_v21, 4  ;;  %v6541_v53 = vpack.c.b16 %v1259_v20, %v1258_v22 }
  0xb6   : > { %v810_v27 = vpop.f32.mrf.mxu0  ;;  %v715_v0 = vunpack.c.l.b16 %v562_v11  ;;  %v589_v32 = vrot.slane %v587_v63, 4  ;;  %v585_v44 = vrot.slane %v583_v51, 5 }
  0xb7   : > { %v1031_v28 = vadd.f32 %v1030_v9, %v810_v27  ;;  %v1351_v24 = vpop.f32.mrf.mxu2  ;;  %v6526_v9 = vld [vmem:[%s6130_s26 + $0x78] sm:$0xff]  ;;  %v572_v27 = vsel %vm6160_vm7, %v567_v34, %v571_v57  ;;  %8798 = vst [vmem:[#allocation29_spill] sm:$0xff] %v6541_v53  ;;  %v1228_v26 = vsel %vm6132_vm4, %v1226_v37, %v1227_v40 }
  0xb8   : > { %v716_v34 = vunpack.c.l.b16 %v572_v27  ;;  %v5454_v27 = vrot.slane %v284_v35, 9  ;;  %v1267_v31 = vunpack.c.l.b16 %v1228_v26 }
  0xb9   : > { %v6517_v39 = vpop.f32.mrf.mxu3  ;;  %v6519_v12 = vadd.f32 %v1351_v24, %v1031_v28  ;;  %5356 = vmatmul.msk.bf16.gmra.mxu0 %vm743_vm3, %v6511_v30 }
  0xba   : > { %v6554_v11 = vpack.c.b16 %v716_v34, %v715_v0  ;;  %v1231_v34 = vrot.slane %v6261_v61, 5 }
  0xbb   : > { %8796 = vst [vmem:[#allocation27_spill] sm:$0xff] %v6519_v12  ;;  %v1035_v17 = vpop.f32.mrf.mxu1  ;;  %v579_v12 = vrot.slane %v577_v2, 5  ;;  %v590_v2 = vor.u32 %v589_v32, %v585_v44 }
  0xbc   : > { %8800 = vst [vmem:[#allocation31_spill] sm:$0xff] %v6554_v11 }
  0xbd   : > { %v591_v32 = vrot.slane %v590_v2, 4 }
  0xbe   : > { %5473 = vmatmul.msk.bf16.gmra.mxu3 %vm743_vm3, %v6523_v16  ;;  %v812_v52 = vpop.f32.mrf.mxu0  ;;  %5437 = vmatmul.msk.bf16.gmra.mxu1 %vm743_vm3, %v6526_v9  ;;  %v1225_v16 = vsel %vm6132_vm4, %v5457_v58, %v1224_v21 }
  0xbf   : > { %v1033_v28 = vadd.f32 %v1032_v15, %v812_v52  ;;  %v1353_v24 = vpop.f32.mrf.mxu2  ;;  %v286_v15 = vld [vmem:[%s6130_s26 + $0x8c] sm:$0x1]  ;;  %v576_v52 = vrot.slane %v574_v19, 4  ;;  %v1266_v22 = vunpack.c.l.b16 %v1225_v16  ;;  %v1204_v16 = vsel %vm6132_vm4, %v5454_v27, %v1203_v48 }
  0xc0   : > { %v593_v58 = vshll.u32 %v286_v15, 16  ;;  %v5458_v27 = vrot.slane %v6258_v60, 9 }
  0xc1   : > { %v6543_v57 = vpop.f32.mrf.mxu3  ;;  %v6545_v7 = vadd.f32 %v1353_v24, %v1033_v28  ;;  %v1205_v28 = vrot.slane %v1203_v48, 4  ;;  %v1206_v24 = vrot.slane %v286_v15, 5  ;;  %v580_v19 = vor.u32 %v579_v12, %v576_v52 }
  0xc2   : > { %v6566_v40 = vpack.c.b16 %v1267_v31, %v1266_v22  ;;  %v595_v0 = vrot.slane %v593_v58, 5  ;;  %v1260_v15 = vunpack.c.l.b16 %v1204_v16  ;;  %v1233_v31 = vrot.slane %v1231_v34, 4 }
  0xc3   : > { %8799 = vst [vmem:[#allocation30_spill] sm:$0xff] %v6545_v7  ;;  %v1037_v20 = vpop.f32.mrf.mxu1  ;;  %v1207_v35 = vsel %vm6132_vm4, %v1205_v28, %v1206_v24  ;;  %v581_v12 = vrot.slane %v580_v19, 4  ;;  %v5553_v28 = vld [vmem:[%s8683_s1 + $0xe] sm:$0x3]  ;;  %v1234_v58 = vrot.slane %v6277_v36, 5  ;;  %v1232_v16 = vsel %vm6132_vm4, %v5458_v27, %v1231_v34 }
  0xc4   : > { %5470 = vmatmul.msk.bf16.gmra.mxu2 %vm743_vm3, %v6541_v53  ;;  %8801 = vst [vmem:[#allocation32_spill] sm:$0xff] %v6566_v40  ;;  %v1261_v52 = vunpack.c.l.b16 %v1207_v35  ;;  %v596_v22 = vsel %vm6160_vm7, %v591_v32, %v595_v0  ;;  %v2055_v19 = vsel %vm792_vm0, %v5553_v28, 0 }
  0xc5   : > { %v586_v48 = vsel %vm6160_vm7, %v581_v12, %v585_v44  ;;  %2064 = vmatpush.bf16.msra.mxu3 %v2055_v19  ;;  %v1235_v36 = vsel %vm6132_vm4, %v1233_v31, %v1234_v58 }
  0xc6   : > { %v815_v21 = vpop.f32.mrf.mxu0  ;;  %v6586_v44 = vpack.c.b16 %v1261_v52, %v1260_v15  ;;  %v1268_v15 = vunpack.c.l.b16 %v1232_v16  ;;  %v1269_v52 = vunpack.c.l.b16 %v1235_v36 }
  0xc7   : > { %v1036_v63 = vadd.f32 %v1035_v17, %v815_v21  ;;  %v1356_v51 = vpop.f32.mrf.mxu2  ;;  %v6569_v17 = vld [vmem:[%s6130_s26 + $0x84] sm:$0xff] }
  0xc8   : > { %8802 = vst [vmem:[#allocation33_spill] sm:$0xff] %v6586_v44  ;;  %v6610_v27 = vpack.c.b16 %v1269_v52, %v1268_v15 }
  0xc9   : > { %v6556_v7 = vpop.f32.mrf.mxu3  ;;  %v6558_v37 = vadd.f32 %v1356_v51, %v1036_v63  ;;  %5357 = vmatmul.msk.bf16.gmra.mxu0 %vm743_vm3, %v6554_v11  ;;  %v717_v63 = vunpack.c.l.b16 %v586_v48  ;;  %v718_v51 = vunpack.c.l.b16 %v596_v22 }
  0xca   : > { %8804 = vst [vmem:[#allocation35_spill] sm:$0xff] %v6610_v27 }
  0xcb   : > { %v1040_v26 = vpop.f32.mrf.mxu1  ;;  %v6602_v12 = vpack.c.b16 %v718_v51, %v717_v63 }
  0xcd   : > { %8803 = vst [vmem:[#allocation34_spill] sm:$0xff] %v6602_v12 }
  0xce   : > { %5474 = vmatmul.msk.bf16.gmra.mxu3 %vm743_vm3, %v6566_v40  ;;  %v817_v21 = vpop.f32.mrf.mxu0  ;;  %5438 = vmatmul.msk.bf16.gmra.mxu1 %vm743_vm3, %v6569_v17 }
  0xcf   : > { %v1038_v61 = vadd.f32 %v1037_v20, %v817_v21  ;;  %v1358_v24 = vpop.f32.mrf.mxu2  ;;  %v5571_v20 = vld [vmem:[%s8683_s1 + $0x10] sm:$0x3] }
  0xd0   : > { %v2195_v35 = vsel %vm792_vm0, %v5571_v20, 0 }
  0xd1   : > { %v6588_v2 = vpop.f32.mrf.mxu3  ;;  %v6590_v60 = vadd.f32 %v1358_v24, %v1038_v61  ;;  %2204 = vmatpush.bf16.msra.mxu0 %v2195_v35 }
  0xd3   : > { %v1042_v0 = vpop.f32.mrf.mxu1 }
  0xd4   : > { %5471 = vmatmul.msk.bf16.gmra.mxu2 %vm743_vm3, %v6586_v44 }
  0xd6   : > { %v820_v32 = vpop.f32.mrf.mxu0 }
  0xd7   : > { %v1041_v21 = vadd.f32 %v1040_v26, %v820_v32  ;;  %v1361_v48 = vpop.f32.mrf.mxu2 }
  0xd9   : > { %v6604_v22 = vpop.f32.mrf.mxu3  ;;  %v6606_v34 = vadd.f32 %v1361_v48, %v1041_v21  ;;  %5358 = vmatmul.msk.bf16.gmra.mxu0 %vm743_vm3, %v6602_v12 }
  0xdb   : > { %v1045_v28 = vpop.f32.mrf.mxu1 }
  0xde   : > { %5475 = vmatmul.msk.bf16.gmra.mxu3 %vm743_vm3, %v6610_v27  ;;  %v822_v61 = vpop.f32.mrf.mxu0  ;;  %5516 = vmatmul.msk.bf16.vlgmr.msrb.gmra.mxu1 %vm743_vm3, %v6207_v49  ;;  %v5936_v49 = vld [vmem:[%s6130_s26 + $0xc] sm:$0xff] }
  0xdf   : > { %v1043_v24 = vadd.f32 %v1042_v0, %v822_v61  ;;  %v1363_v31 = vpop.f32.mrf.mxu2 }
  0xe1   : > { %v6616_v26 = vpop.f32.mrf.mxu3  ;;  %v6618_v58 = vadd.f32 %v1363_v31, %v1043_v24 }
  0xe3   : > { %v1047_v19 = vpop.f32.mrf.mxu1 }
  0xe4   : > { %5537 = vmatmul.msk.bf16.vlgmr.msrb.gmra.mxu2 %vm743_vm3, %v6244_v42 }
  0xe6   : > { %v825_v63 = vpop.f32.mrf.mxu0 }
  0xe7   : > { %v1046_v51 = vadd.f32 %v1045_v28, %v825_v63  ;;  %v1366_v20 = vpop.f32.mrf.mxu2 }
  0xe9   : > { %v6622_v16 = vpop.f32.mrf.mxu3  ;;  %v6624_v36 = vadd.f32 %v1366_v20, %v1046_v51  ;;  %5498 = vmatmul.msk.bf16.vlgmr.msrb.gmra.mxu0 %vm743_vm3, %v6222_v3 }
  0xeb   : > { %v1050_v35 = vpop.f32.mrf.mxu1 }
  0xee   : > { %5481 = vmatmul.msk.bf16.vlgmr.msrb.gmra.mxu3 %vm743_vm3, %v5936_v49  ;;  %v827_v0 = vpop.f32.mrf.mxu0  ;;  %5517 = vmatmul.msk.bf16.gmra.mxu1 %vm743_vm3, %v6255_v56 }
  0xef   : > { %v1048_v32 = vadd.f32 %v1047_v19, %v827_v0  ;;  %v1368_v15 = vpop.f32.mrf.mxu2 }
  0xf1   : > { %v1085_v52 = vpop.f32.mrf.mxu3  ;;  %v6632_v21 = vadd.f32 %v1368_v15, %v1048_v32 }
  0xf2   : > { %v6635_v48 = vadd.f32 %v1085_v52, %v6500_v29 }
  0xf3   : > { %v1052_v28 = vpop.f32.mrf.mxu1 }
  0xf4   : > { %5538 = vmatmul.msk.bf16.gmra.mxu2 %vm743_vm3, %v6290_v50 }
  0xf6   : > { %v830_v61 = vpop.f32.mrf.mxu0 }
  0xf7   : > { %v1051_v24 = vadd.f32 %v1050_v35, %v830_v61  ;;  %v1371_v31 = vpop.f32.mrf.mxu2 }
  0xf9   : > { %v1087_v63 = vpop.f32.mrf.mxu3  ;;  %v6639_v51 = vadd.f32 %v1371_v31, %v1051_v24  ;;  %5499 = vmatmul.msk.bf16.gmra.mxu0 %vm743_vm3, %v6273_v14 }
  0xfa   : > { %v6644_v19 = vadd.f32 %v1087_v63, %v6517_v39 }
  0xfb   : > { %v1055_v20 = vpop.f32.mrf.mxu1 }
  0xfe   : > { %5482 = vmatmul.msk.bf16.gmra.mxu3 %vm743_vm3, %v6244_v42  ;;  %v832_v29 = vpop.f32.mrf.mxu0  ;;  %5518 = vmatmul.msk.bf16.gmra.mxu1 %vm743_vm3, %v6301_v5 }
  0xff   : > { %v1053_v49 = vadd.f32 %v1052_v28, %v832_v29  ;;  %v1373_v0 = vpop.f32.mrf.mxu2 }
 0x101   : > { %v1090_v35 = vpop.f32.mrf.mxu3  ;;  %v6650_v32 = vadd.f32 %v1373_v0, %v1053_v49 }
 0x102   : > { %v6653_v15 = vadd.f32 %v1090_v35, %v6543_v57 }
 0x103   : > { %v1057_v52 = vpop.f32.mrf.mxu1 }
 0x104   : > { %5539 = vmatmul.msk.bf16.gmra.mxu2 %vm743_vm3, %v6322_v47 }
 0x106   : > { %v835_v39 = vpop.f32.mrf.mxu0 }
 0x107   : > { %v1056_v61 = vadd.f32 %v1055_v20, %v835_v39  ;;  %v1376_v24 = vpop.f32.mrf.mxu2 }
 0x109   : > { %v1092_v42 = vpop.f32.mrf.mxu3  ;;  %v6657_v31 = vadd.f32 %v1376_v24, %v1056_v61  ;;  %5500 = vmatmul.msk.bf16.gmra.mxu0 %vm743_vm3, %v6310_v23 }
 0x10a   : > { %v6662_v28 = vadd.f32 %v1092_v42, %v6556_v7 }
 0x10b   : > { %v1060_v63 = vpop.f32.mrf.mxu1 }
 0x10e   : > { %5483 = vmatmul.msk.bf16.gmra.mxu3 %vm743_vm3, %v6290_v50  ;;  %v837_v57 = vpop.f32.mrf.mxu0  ;;  %5519 = vmatmul.msk.bf16.gmra.mxu1 %vm743_vm3, %v6333_v1 }
 0x10f   : > { %v1058_v29 = vadd.f32 %v1057_v52, %v837_v57  ;;  %v1378_v49 = vpop.f32.mrf.mxu2 }
 0x111   : > { %v1095_v20 = vpop.f32.mrf.mxu3  ;;  %v6668_v0 = vadd.f32 %v1378_v49, %v1058_v29 }
 0x112   : > { %v6671_v35 = vadd.f32 %v1095_v20, %v6588_v2 }
 0x113   : > { %v1062_v39 = vpop.f32.mrf.mxu1 }
 0x114   : > { %5540 = vmatmul.msk.bf16.gmra.mxu2 %vm743_vm3, %v6350_v45 }
 0x116   : > { %v840_v7 = vpop.f32.mrf.mxu0 }
 0x117   : > { %v1061_v61 = vadd.f32 %v1060_v63, %v840_v7  ;;  %v1381_v24 = vpop.f32.mrf.mxu2 }
 0x119   : > { %v1097_v50 = vpop.f32.mrf.mxu3  ;;  %v6675_v42 = vadd.f32 %v1381_v24, %v1061_v61  ;;  %5501 = vmatmul.msk.bf16.gmra.mxu0 %vm743_vm3, %v6338_v18 }
 0x11a   : > { %v6680_v52 = vadd.f32 %v1097_v50, %v6604_v22 }
 0x11b   : > { %v1065_v57 = vpop.f32.mrf.mxu1 }
 0x11e   : > { %5484 = vmatmul.msk.bf16.gmra.mxu3 %vm743_vm3, %v6322_v47  ;;  %v842_v2 = vpop.f32.mrf.mxu0  ;;  %5520 = vmatmul.msk.bf16.gmra.mxu1 %vm743_vm3, %v6357_v55 }
 0x11f   : > { %v1063_v29 = vadd.f32 %v1062_v39, %v842_v2  ;;  %v1383_v49 = vpop.f32.mrf.mxu2 }
 0x121   : > { %v1100_v63 = vpop.f32.mrf.mxu3  ;;  %v6686_v20 = vadd.f32 %v1383_v49, %v1063_v29 }
 0x122   : > { %v6689_v7 = vadd.f32 %v1100_v63, %v6616_v26 }
 0x123   : > { %v1067_v61 = vpop.f32.mrf.mxu1 }
 0x124   : > { %5541 = vmatmul.msk.bf16.gmra.mxu2 %vm743_vm3, %v6378_v38 }
 0x126   : > { %v845_v22 = vpop.f32.mrf.mxu0 }
 0x127   : > { %v1066_v24 = vadd.f32 %v1065_v57, %v845_v22  ;;  %v1386_v50 = vpop.f32.mrf.mxu2 }
 0x129   : > { %v1102_v47 = vpop.f32.mrf.mxu3  ;;  %v6693_v3 = vadd.f32 %v1386_v50, %v1066_v24  ;;  %5502 = vmatmul.msk.bf16.gmra.mxu0 %vm743_vm3, %v6364_v13 }
 0x12a   : > { %v6698_v39 = vadd.f32 %v1102_v47, %v6622_v16 }
 0x12b   : > { %v1070_v2 = vpop.f32.mrf.mxu1 }
 0x12e   : > { %5485 = vmatmul.msk.bf16.gmra.mxu3 %vm743_vm3, %v6350_v45  ;;  %v847_v26 = vpop.f32.mrf.mxu0  ;;  %5521 = vmatmul.msk.bf16.gmra.mxu1 %vm743_vm3, %v6388_v54 }
 0x12f   : > { %v1068_v29 = vadd.f32 %v1067_v61, %v847_v26  ;;  %v1388_v49 = vpop.f32.mrf.mxu2 }
 0x131   : > { %v1406_v57 = vpop.f32.mrf.mxu3  ;;  %v6704_v63 = vadd.f32 %v1388_v49, %v1068_v29 }
 0x132   : > { %v6707_v22 = vadd.f32 %v1406_v57, %v6635_v48 }
 0x133   : > { %v1072_v24 = vpop.f32.mrf.mxu1 }
 0x134   : > { %5542 = vmatmul.msk.bf16.gmra.mxu2 %vm743_vm3, %v6405_v43 }
 0x136   : > { %v850_v16 = vpop.f32.mrf.mxu0 }
 0x137   : > { %v1071_v50 = vadd.f32 %v1070_v2, %v850_v16  ;;  %v1391_v47 = vpop.f32.mrf.mxu2 }
 0x139   : > { %v1408_v45 = vpop.f32.mrf.mxu3  ;;  %v6711_v13 = vadd.f32 %v1391_v47, %v1071_v50  ;;  %5503 = vmatmul.msk.bf16.gmra.mxu0 %vm743_vm3, %v6393_v10 }
 0x13a   : > { %v6716_v61 = vadd.f32 %v1408_v45, %v6644_v19 }
 0x13b   : > { %v1075_v26 = vpop.f32.mrf.mxu1 }
 0x13c   : > { %8805 = vst [vmem:[#allocation36_spill] sm:$0xff] %v6716_v61 }
 0x13e   : > { %5486 = vmatmul.msk.bf16.gmra.mxu3 %vm743_vm3, %v6378_v38  ;;  %v852_v48 = vpop.f32.mrf.mxu0  ;;  %5522 = vmatmul.msk.bf16.gmra.mxu1 %vm743_vm3, %v6421_v4 }
 0x13f   : > { %v1073_v29 = vadd.f32 %v1072_v24, %v852_v48  ;;  %v1393_v49 = vpop.f32.mrf.mxu2 }
 0x141   : > { %v1411_v2 = vpop.f32.mrf.mxu3  ;;  %v6722_v57 = vadd.f32 %v1393_v49, %v1073_v29 }
 0x142   : > { %v6725_v16 = vadd.f32 %v1411_v2, %v6653_v15 }
 0x143   : > { %v1077_v50 = vpop.f32.mrf.mxu1 }
 0x144   : > { %5543 = vmatmul.msk.bf16.gmra.mxu2 %vm743_vm3, %v6440_v62 }
 0x146   : > { %v855_v19 = vpop.f32.mrf.mxu0 }
 0x147   : > { %v1076_v47 = vadd.f32 %v1075_v26, %v855_v19  ;;  %v1396_v45 = vpop.f32.mrf.mxu2 }
 0x149   : > { %v1413_v38 = vpop.f32.mrf.mxu3  ;;  %v6729_v61 = vadd.f32 %v1396_v45, %v1076_v47  ;;  %5504 = vmatmul.msk.bf16.gmra.mxu0 %vm743_vm3, %v6426_v25 }
 0x14a   : > { %v6734_v24 = vadd.f32 %v1413_v38, %v6662_v28 }
 0x14b   : > { %v1080_v48 = vpop.f32.mrf.mxu1 }
 0x14c   : > { %8806 = vst [vmem:[#allocation37_spill] sm:$0xff] %v6734_v24 }
 0x14e   : > { %5487 = vmatmul.msk.bf16.gmra.mxu3 %vm743_vm3, %v6405_v43  ;;  %v857_v15 = vpop.f32.mrf.mxu0  ;;  %5523 = vmatmul.msk.bf16.gmra.mxu1 %vm743_vm3, %v6453_v46 }
 0x14f   : > { %v1078_v29 = vadd.f32 %v1077_v50, %v857_v15  ;;  %v1398_v49 = vpop.f32.mrf.mxu2 }
 0x151   : > { %v1416_v26 = vpop.f32.mrf.mxu3  ;;  %v6740_v2 = vadd.f32 %v1398_v49, %v1078_v29 }
 0x152   : > { %v6743_v19 = vadd.f32 %v1416_v26, %v6671_v35 }
 0x153   : > { %v1082_v47 = vpop.f32.mrf.mxu1 }
 0x154   : > { %8807 = vst [vmem:[#allocation38_spill] sm:$0xff] %v6743_v19  ;;  %5544 = vmatmul.msk.bf16.gmra.mxu2 %vm743_vm3, %v6482_v6  ;;  %v8813_v19 = vld [vmem:[#allocation25_spill] sm:$0xff] }
 0x156   : > { %v860_v28 = vpop.f32.mrf.mxu0 }
 0x157   : > { %v1081_v45 = vadd.f32 %v1080_v48, %v860_v28  ;;  %v1401_v38 = vpop.f32.mrf.mxu2 }
 0x159   : > { %v1418_v43 = vpop.f32.mrf.mxu3  ;;  %v6747_v24 = vadd.f32 %v1401_v38, %v1081_v45  ;;  %5505 = vmatmul.msk.bf16.gmra.mxu0 %vm743_vm3, %v6462_v59 }
 0x15a   : > { %v6752_v50 = vadd.f32 %v1418_v43, %v6680_v52 }
 0x15b   : > { %v1776_v15 = vpop.f32.mrf.mxu1 }
 0x15c   : > { %8808 = vst [vmem:[#allocation39_spill] sm:$0xff] %v6752_v50 }
 0x15e   : > { %5488 = vmatmul.msk.bf16.gmra.mxu3 %vm743_vm3, %v6440_v62  ;;  %v862_v35 = vpop.f32.mrf.mxu0  ;;  %5524 = vmatmul.msk.bf16.gmra.mxu1 %vm743_vm3, %v6494_v33 }
 0x15f   : > { %v1083_v29 = vadd.f32 %v1082_v47, %v862_v35  ;;  %v1403_v49 = vpop.f32.mrf.mxu2  ;;  %v3031_v47 = vld [vmem:[%s8685_s3] sm:$0xf] }
 0x161   : > { %v1421_v48 = vpop.f32.mrf.mxu3  ;;  %v6758_v26 = vadd.f32 %v1403_v49, %v1083_v29 }
 0x162   : > { %v6761_v28 = vadd.f32 %v1421_v48, %v6689_v7  ;;  %v3737_v7 = vsel %vm3515_vm8, %v3031_v47, 0 }
 0x163   : > { %v1778_v52 = vpop.f32.mrf.mxu1  ;;  %3746 = vmatpush.bf16.msra.mxu2 %v3737_v7 }
 0x164   : > { %8809 = vst [vmem:[#allocation40_spill] sm:$0xff] %v6761_v28  ;;  %5545 = vmatmul.msk.bf16.gmra.mxu2 %vm743_vm3, %v6526_v9 }
 0x166   : > { %v1636_v45 = vpop.f32.mrf.mxu0 }
 0x167   : > { %v1910_v38 = vpop.f32.mrf.mxu2 }
 0x169   : > { %v1423_v43 = vpop.f32.mrf.mxu3  ;;  %5506 = vmatmul.msk.bf16.gmra.mxu0 %vm743_vm3, %v6511_v30 }
 0x16a   : > { %v6768_v62 = vadd.f32 %v1423_v43, %v6698_v39  ;;  %v5588_v39 = vld [vmem:[%s8685_s3 + $0x4] sm:$0xf] }
 0x16b   : > { %v1781_v35 = vpop.f32.mrf.mxu1  ;;  %v3517_v43 = vsel %vm3515_vm8, %v5588_v39, 0 }
 0x16c   : > { %8810 = vst [vmem:[#allocation41_spill] sm:$0xff] %v6768_v62  ;;  %v8811_v62 = vld [vmem:[#allocation22_spill] sm:$0xff]  ;;  %3526 = vmatpush.bf16.msra.mxu1 %v3517_v43  ;;  %v8815_v43 = vld [vmem:[#allocation27_spill] sm:$0xff] }
 0x16e   : > { %5489 = vmatmul.msk.bf16.gmra.mxu3 %vm743_vm3, %v6482_v6  ;;  %v1638_v29 = vpop.f32.mrf.mxu0  ;;  %5525 = vmatmul.msk.bf16.gmra.mxu1 %vm743_vm3, %v6541_v53 }
 0x16f   : > { %v1912_v49 = vpop.f32.mrf.mxu2 }
 0x171   : > { %v1480_v48 = vpop.f32.mrf.mxu3 }
 0x172   : > { %v1560_v28 = vadd.f32 %v1480_v48, %v8811_v62 }
 0x173   : > { %v1783_v6 = vpop.f32.mrf.mxu1 }
 0x174   : > { %v1716_v47 = vadd.f32 %v1636_v45, %v1560_v28  ;;  %5546 = vmatmul.msk.bf16.gmra.mxu2 %vm743_vm3, %v6569_v17 }
 0x176   : > { %v1856_v7 = vadd.f32 %v1776_v15, %v1716_v47  ;;  %v1641_v30 = vpop.f32.mrf.mxu0 }
 0x177   : > { %v1915_v50 = vpop.f32.mrf.mxu2 }
 0x178   : > { %v6785_v53 = vadd.f32 %v1910_v38, %v1856_v7 }
 0x179   : > { %v1482_v33 = vpop.f32.mrf.mxu3  ;;  %5507 = vmatmul.msk.bf16.gmra.mxu0 %vm743_vm3, %v6554_v11 }
 0x17a   : > { %8812 = vst [vmem:[#allocation22_spill] sm:$0xff] %v6785_v53  ;;  %v1561_v39 = vadd.f32 %v1482_v33, %v8813_v19  ;;  %v5937_v53 = vld [vmem:[%s6130_s26 + $0x90] sm:$0xff] }
 0x17b   : > { %v1786_v62 = vpop.f32.mrf.mxu1 }
 0x17c   : > { %v1717_v59 = vadd.f32 %v1638_v29, %v1561_v39  ;;  %v8816_v39 = vld [vmem:[#allocation30_spill] sm:$0xff] }
 0x17e   : > { %v1857_v48 = vadd.f32 %v1778_v52, %v1717_v59  ;;  %5490 = vmatmul.msk.bf16.gmra.mxu3 %vm743_vm3, %v6526_v9  ;;  %v1643_v28 = vpop.f32.mrf.mxu0  ;;  %5526 = vmatmul.msk.bf16.gmra.mxu1 %vm743_vm3, %v6586_v44 }
 0x17f   : > { %v1917_v45 = vpop.f32.mrf.mxu2 }
 0x180   : > { %v6794_v15 = vadd.f32 %v1912_v49, %v1857_v48 }
 0x181   : > { %v1485_v38 = vpop.f32.mrf.mxu3 }
 0x182   : > { %8814 = vst [vmem:[#allocation25_spill] sm:$0xff] %v6794_v15  ;;  %v1562_v47 = vadd.f32 %v1485_v38, %v8815_v43  ;;  %v8817_v43 = vld [vmem:[#allocation23_spill] sm:$0xff] }
 0x183   : > { %v1788_v33 = vpop.f32.mrf.mxu1 }
 0x184   : > { %v1718_v7 = vadd.f32 %v1641_v30, %v1562_v47  ;;  %5547 = vmatmul.msk.bf16.gmra.mxu2 %vm743_vm3, %v5937_v53 }
 0x186   : > { %v1858_v19 = vadd.f32 %v1781_v35, %v1718_v7  ;;  %v1646_v59 = vpop.f32.mrf.mxu0 }
 0x187   : > { %v1920_v52 = vpop.f32.mrf.mxu2 }
 0x188   : > { %v6799_v29 = vadd.f32 %v1915_v50, %v1858_v19  ;;  %v8819_v19 = vld [vmem:[#allocation16_spill] sm:$0xff] }
 0x189   : > { %v1487_v9 = vpop.f32.mrf.mxu3  ;;  %5508 = vmatmul.msk.bf16.gmra.mxu0 %vm743_vm3, %v6602_v12 }
 0x18a   : > { %v1563_v49 = vadd.f32 %v1487_v9, %v8816_v39 }
 0x18b   : > { %v1791_v15 = vpop.f32.mrf.mxu1 }
 0x18c   : > { %v1719_v48 = vadd.f32 %v1643_v28, %v1563_v49 }
 0x18e   : > { %v1859_v44 = vadd.f32 %v1783_v6, %v1719_v48  ;;  %5491 = vmatmul.msk.bf16.gmra.mxu3 %vm743_vm3, %v6569_v17  ;;  %v1648_v30 = vpop.f32.mrf.mxu0  ;;  %5527 = vmatmul.msk.bf16.gmra.mxu1 %vm743_vm3, %v8817_v43  ;;  %v8820_v48 = vld [vmem:[#allocation7_spill] sm:$0xff] }
 0x18f   : > { %v1922_v38 = vpop.f32.mrf.mxu2 }
 0x190   : > { %v6808_v35 = vadd.f32 %v1917_v45, %v1859_v44 }
 0x191   : > { %v1490_v50 = vpop.f32.mrf.mxu3 }
 0x192   : > { %8818 = vst [vmem:[#allocation27_spill] sm:$0xff] %v6808_v35  ;;  %v1564_v47 = vadd.f32 %v1490_v50, %v6558_v37  ;;  %v8821_v50 = vld [vmem:[#allocation28_spill] sm:$0xff] }
 0x193   : > { %v1793_v28 = vpop.f32.mrf.mxu1 }
 0x194   : > { %v1720_v7 = vadd.f32 %v1646_v59, %v1564_v47  ;;  %5548 = vmatmul.msk.bf16.gmra.mxu2 %vm743_vm3, %v8819_v19  ;;  %v8823_v19 = vld [vmem:[#allocation18_spill] sm:$0xff] }
 0x196   : > { %v1860_v9 = vadd.f32 %v1786_v62, %v1720_v7  ;;  %v1651_v6 = vpop.f32.mrf.mxu0 }
 0x197   : > { %v1925_v39 = vpop.f32.mrf.mxu2 }
 0x198   : > { %v6813_v49 = vadd.f32 %v1920_v52, %v1860_v9 }
 0x199   : > { %v1492_v17 = vpop.f32.mrf.mxu3  ;;  %5509 = vmatmul.msk.bf16.gmra.mxu0 %vm743_vm3, %v8820_v48 }
 0x19a   : > { %v1565_v44 = vadd.f32 %v1492_v17, %v6590_v60 }
 0x19b   : > { %v1796_v35 = vpop.f32.mrf.mxu1 }
 0x19c   : > { %v1721_v45 = vadd.f32 %v1648_v30, %v1565_v44  ;;  %v8826_v44 = vld [vmem:[#allocation9_spill] sm:$0xff] }
 0x19e   : > { %v1861_v43 = vadd.f32 %v1788_v33, %v1721_v45  ;;  %5492 = vmatmul.msk.bf16.gmra.mxu3 %vm743_vm3, %v5937_v53  ;;  %v1653_v37 = vpop.f32.mrf.mxu0  ;;  %5528 = vmatmul.msk.bf16.gmra.mxu1 %vm743_vm3, %v8821_v50 }
 0x19f   : > { %v1927_v59 = vpop.f32.mrf.mxu2 }
 0x1a0   : > { %v6821_v62 = vadd.f32 %v1922_v38, %v1861_v43 }
 0x1a1   : > { %v1495_v52 = vpop.f32.mrf.mxu3 }
 0x1a2   : > { %8822 = vst [vmem:[#allocation30_spill] sm:$0xff] %v6821_v62  ;;  %v1566_v47 = vadd.f32 %v1495_v52, %v6606_v34 }
 0x1a3   : > { %v6826_v60 = vpop.f32.mrf.mxu1 }
 0x1a4   : > { %v1722_v7 = vadd.f32 %v1651_v6, %v1566_v47  ;;  %5549 = vmatmul.msk.bf16.gmra.mxu2 %vm743_vm3, %v8823_v19  ;;  %8824 = vst [vmem:[#allocation16_spill] sm:$0xff] %v6826_v60  ;;  %v5938_v6 = vld [vmem:[%s6130_s26 + $0x9c] sm:$0xff] }
 0x1a6   : > { %v1862_v33 = vadd.f32 %v1791_v15, %v1722_v7  ;;  %v1656_v30 = vpop.f32.mrf.mxu0 }
 0x1a7   : > { %v1930_v53 = vpop.f32.mrf.mxu2 }
 0x1a8   : > { %v6828_v9 = vadd.f32 %v1925_v39, %v1862_v33 }
 0x1a9   : > { %v1497_v17 = vpop.f32.mrf.mxu3  ;;  %5510 = vmatmul.msk.bf16.gmra.mxu0 %vm743_vm3, %v8826_v44 }
 0x1aa   : > { %8825 = vst [vmem:[#allocation28_spill] sm:$0xff] %v6828_v9  ;;  %v1567_v38 = vadd.f32 %v1497_v17, %v6618_v58 }
 0x1ab   : > { %v1801_v45 = vpop.f32.mrf.mxu1 }
 0x1ac   : > { %v1723_v43 = vadd.f32 %v1653_v37, %v1567_v38  ;;  %v8829_v37 = vld [vmem:[#allocation20_spill] sm:$0xff] }
 0x1ae   : > { %v1863_v34 = vadd.f32 %v1793_v28, %v1723_v43  ;;  %5493 = vmatmul.msk.bf16.gmra.mxu3 %vm743_vm3, %v5938_v6  ;;  %v1658_v52 = vpop.f32.mrf.mxu0  ;;  %5529 = vmatmul.msk.bf16.gmra.mxu1 %vm743_vm3, %v6566_v40  ;;  %v8832_v6 = vld [vmem:[#allocation11_spill] sm:$0xff] }
 0x1af   : > { %v6835_v47 = vpop.f32.mrf.mxu2 }
 0x1b0   : > { %8827 = vst [vmem:[#allocation18_spill] sm:$0xff] %v6835_v47  ;;  %v6839_v15 = vadd.f32 %v1927_v59, %v1863_v34  ;;  %v301_v47 = vld [vmem:[%s6130_s26 + $0xc8] sm:$0x1] }
 0x1b1   : > { %v1500_v39 = vpop.f32.mrf.mxu3  ;;  %v1754_v40 = vrot.slane %v301_v47, 5 }
 0x1b2   : > { %8828 = vst [vmem:[#allocation42_spill] sm:$0xff] %v6839_v15  ;;  %v1568_v7 = vadd.f32 %v1500_v39, %v6624_v36  ;;  %v299_v36 = vld [vmem:[%s6130_s26 + $0xc0] sm:$0xf] }
 0x1b3   : > { %v6844_v28 = vpop.f32.mrf.mxu1 }
 0x1b4   : > { %v1724_v58 = vadd.f32 %v1656_v30, %v1568_v7  ;;  %5550 = vmatmul.msk.bf16.gmra.mxu2 %vm743_vm3, %v8829_v37  ;;  %8830 = vst [vmem:[#allocation20_spill] sm:$0xff] %v6844_v28  ;;  %v300_v30 = vld [vmem:[%s6130_s26 + $0xc4] sm:$0xf]  ;;  %v1593_v7 = vshrl.u32 %v299_v36, 16  ;;  %v5939_v37 = vld [vmem:[%s6130_s26 + $0xa8] sm:$0xff] }
 0x1b6   : > { %v1864_v19 = vadd.f32 %v1796_v35, %v1724_v58  ;;  %v1661_v33 = vpop.f32.mrf.mxu0  ;;  %v1602_v58 = vshll.u32 %v300_v30, 16 }
 0x1b7   : > { %v1935_v17 = vpop.f32.mrf.mxu2 }
 0x1b8   : > { %v6846_v38 = vadd.f32 %v1930_v53, %v1864_v19  ;;  %v1596_v53 = vshll.u32 %v299_v36, 16  ;;  %v1606_v19 = vshrl.u32 %v300_v30, 16  ;;  %v1604_v60 = vrot.slane %v1602_v58, 5 }
 0x1b9   : > { %v1502_v43 = vpop.f32.mrf.mxu3  ;;  %5511 = vmatmul.msk.bf16.gmra.mxu0 %vm743_vm3, %v8832_v6 }
 0x1ba   : > { %8831 = vst [vmem:[#allocation43_spill] sm:$0xff] %v6846_v38  ;;  %v1569_v59 = vadd.f32 %v1502_v43, %v6632_v21  ;;  %v1751_v21 = vrot.slane %v300_v30, 5  ;;  %v5867_v43 = vld [vmem:[%s6130_s26 + $0xc0] sm:$0xff] }
 0x1bb   : > { %v1806_v39 = vpop.f32.mrf.mxu1 }
 0x1bc   : > { %v6853_v34 = vadd.f32 %v1658_v52, %v1569_v59  ;;  %v1595_v52 = vrot.slane %v1593_v7, 4  ;;  %v5514_v59 = vrot.slane %v299_v36, 9  ;;  %v1753_v15 = vrot.slane %v1751_v21, 4 }
 0x1be   : > { %8833 = vst [vmem:[#allocation44_spill] sm:$0xff] %v6853_v34  ;;  %5494 = vmatmul.msk.bf16.gmra.mxu3 %vm743_vm3, %v5939_v37  ;;  %v1663_v35 = vpop.f32.mrf.mxu0  ;;  %5530 = vmatmul.msk.bf16.gmra.mxu1 %vm743_vm3, %v6610_v27  ;;  %v1598_v37 = vrot.slane %v1596_v53, 5  ;;  %v1608_v34 = vrot.slane %v1606_v19, 4  ;;  %v1752_v30 = vsel %vm6132_vm4, %v5514_v59, %v1751_v21  ;;  %v1755_v27 = vsel %vm6132_vm4, %v1753_v15, %v1754_v40  ;;  %v8835_v19 = vld [vmem:[#allocation13_spill] sm:$0xff] }
 0x1bf   : > { %v6857_v38 = vpop.f32.mrf.mxu2  ;;  %v1758_v53 = vunpack.c.l.b16 %v1752_v30  ;;  %v1759_v58 = vunpack.c.l.b16 %v1755_v27 }
 0x1c0   : > { %8834 = vst [vmem:[#allocation45_spill] sm:$0xff] %v6857_v38  ;;  %v1599_v44 = vor.u32 %v1598_v37, %v1595_v52  ;;  %v1609_v62 = vor.u32 %v1608_v34, %v1604_v60  ;;  %v5940_v34 = vld [vmem:[%s6130_s26 + $0xb4] sm:$0xff] }
 0x1c1   : > { %v1505_v6 = vpop.f32.mrf.mxu3 }
 0x1c2   : > { %v1570_v28 = vadd.f32 %v1505_v6, %v6639_v51  ;;  %v1612_v51 = vshll.u32 %v301_v47, 16  ;;  %v1600_v59 = vrot.slane %v1599_v44, 4  ;;  %v1610_v40 = vrot.slane %v1609_v62, 4 }
 0x1c3   : > { %v6865_v38 = vpop.f32.mrf.mxu1 }
 0x1c4   : > { %v1726_v9 = vadd.f32 %v1661_v33, %v1570_v28  ;;  %5551 = vmatmul.msk.bf16.gmra.mxu2 %vm743_vm3, %v5867_v43 }
 0x1c6   : > { %v1866_v7 = vadd.f32 %v1801_v45, %v1726_v9  ;;  %v1666_v36 = vpop.f32.mrf.mxu0  ;;  %v1614_v9 = vrot.slane %v1612_v51, 5  ;;  %v6876_v45 = vpack.c.b16 %v1759_v58, %v1758_v53 }
 0x1c7   : > { %v1940_v6 = vpop.f32.mrf.mxu2 }
 0x1c8   : > { %v6871_v28 = vadd.f32 %v1935_v17, %v1866_v7  ;;  %v1605_v17 = vsel %vm6160_vm7, %v1600_v59, %v1604_v60  ;;  %v1615_v52 = vsel %vm6160_vm7, %v1610_v40, %v1614_v9 }
 0x1c9   : > { %v1507_v33 = vpop.f32.mrf.mxu3  ;;  %5512 = vmatmul.msk.bf16.gmra.mxu0 %vm743_vm3, %v8835_v19  ;;  %v1618_v44 = vunpack.c.l.b16 %v1605_v17 }
 0x1ca   : > { %v1571_v21 = vadd.f32 %v1507_v33, %v6650_v32  ;;  %v5868_v32 = vld [vmem:[%s6130_s26 + $0xcc] sm:$0xff] }
 0x1cb   : > { %v1811_v47 = vpop.f32.mrf.mxu1 }
 0x1cc   : > { %v6878_v15 = vadd.f32 %v1663_v35, %v1571_v21  ;;  %v1619_v35 = vunpack.c.l.b16 %v1615_v52 }
 0x1ce   : > { %5495 = vmatmul.msk.bf16.gmra.mxu3 %vm743_vm3, %v5940_v34  ;;  %v1668_v27 = vpop.f32.mrf.mxu0  ;;  %5531 = vmatmul.msk.bf16.gmra.mxu1 %vm743_vm3, %v6876_v45  ;;  %v6895_v60 = vpack.c.b16 %v1619_v35, %v1618_v44 }
 0x1cf   : > { %v6886_v37 = vpop.f32.mrf.mxu2 }
 0x1d0   : > { %8836 = vst [vmem:[#allocation46_spill] sm:$0xff] %v6895_v60 }
 0x1d1   : > { %v1510_v62 = vpop.f32.mrf.mxu3 }
 0x1d2   : > { %v1572_v30 = vadd.f32 %v1510_v62, %v6657_v31 }
 0x1d3   : > { %v6893_v51 = vpop.f32.mrf.mxu1 }
 0x1d4   : > { %v1728_v7 = vadd.f32 %v1666_v36, %v1572_v30  ;;  %5552 = vmatmul.msk.bf16.gmra.mxu2 %vm743_vm3, %v5868_v32 }
 0x1d6   : > { %v1868_v53 = vadd.f32 %v1806_v39, %v1728_v7  ;;  %v1671_v58 = vpop.f32.mrf.mxu0 }
 0x1d7   : > { %v1945_v33 = vpop.f32.mrf.mxu2 }
 0x1d8   : > { %v6897_v21 = vadd.f32 %v1940_v6, %v1868_v53 }
 0x1d9   : > { %v1512_v59 = vpop.f32.mrf.mxu3  ;;  %5513 = vmatmul.msk.bf16.gmra.mxu0 %vm743_vm3, %v6895_v60 }
 0x1da   : > { %v1573_v40 = vadd.f32 %v1512_v59, %v6668_v0 }
 0x1db   : > { %v1816_v31 = vpop.f32.mrf.mxu1 }
 0x1dc   : > { %v6902_v9 = vadd.f32 %v1668_v27, %v1573_v40 }
 0x1de   : > { %5496 = vmatmul.msk.bf16.gmra.mxu3 %vm743_vm3, %v5867_v43  ;;  %v1673_v36 = vpop.f32.mrf.mxu0 }
 0x1df   : > { %v6905_v34 = vpop.f32.mrf.mxu2 }
 0x1e1   : > { %v1515_v17 = vpop.f32.mrf.mxu3 }
 0x1e2   : > { %v1574_v39 = vadd.f32 %v1515_v17, %v6675_v42 }
 0x1e3   : > { %v6908_v6 = vpop.f32.mrf.mxu1 }
 0x1e4   : > { %v1730_v52 = vadd.f32 %v1671_v58, %v1574_v39 }
 0x1e6   : > { %v1870_v32 = vadd.f32 %v1811_v47, %v1730_v52  ;;  %v1676_v62 = vpop.f32.mrf.mxu0 }
 0x1e7   : > { %v1950_v44 = vpop.f32.mrf.mxu2 }
 0x1e8   : > { %v6910_v35 = vadd.f32 %v1945_v33, %v1870_v32 }
 0x1e9   : > { %v1517_v0 = vpop.f32.mrf.mxu3  ;;  %5572 = vmatmul.msk.bf16.vlgmr.msra.gmra.mxu0 %vm743_vm3, %v6255_v56 }
 0x1ea   : > { %v1575_v43 = vadd.f32 %v1517_v0, %v6686_v20 }
 0x1eb   : > { %v1821_v30 = vpop.f32.mrf.mxu1 }
 0x1ec   : > { %v6915_v27 = vadd.f32 %v1673_v36, %v1575_v43 }
 0x1ee   : > { %5554 = vmatmul.msk.bf16.vlgmr.msra.gmra.mxu3 %vm743_vm3, %v6273_v14  ;;  %v1678_v42 = vpop.f32.mrf.mxu0 }
 0x1ef   : > { %v6919_v7 = vpop.f32.mrf.mxu2 }
 0x1f1   : > { %v1520_v47 = vpop.f32.mrf.mxu3 }
 0x1f2   : > { %v1576_v53 = vadd.f32 %v1520_v47, %v6693_v3 }
 0x1f3   : > { %v6922_v33 = vpop.f32.mrf.mxu1 }
 0x1f4   : > { %v1732_v58 = vadd.f32 %v1676_v62, %v1576_v53 }
 0x1f6   : > { %v1872_v59 = vadd.f32 %v1816_v31, %v1732_v58  ;;  %v1681_v40 = vpop.f32.mrf.mxu0 }
 0x1f7   : > { %v1955_v56 = vpop.f32.mrf.mxu2 }
 0x1f8   : > { %v6924_v17 = vadd.f32 %v1950_v44, %v1872_v59 }
 0x1f9   : > { %v1522_v20 = vpop.f32.mrf.mxu3  ;;  %5573 = vmatmul.msk.bf16.gmra.mxu0 %vm743_vm3, %v6301_v5 }
 0x1fa   : > { %v1577_v36 = vadd.f32 %v1522_v20, %v6704_v63 }
 0x1fb   : > { %v1826_v32 = vpop.f32.mrf.mxu1 }
 0x1fc   : > { %v6929_v39 = vadd.f32 %v1678_v42, %v1577_v36 }
 0x1fe   : > { %5555 = vmatmul.msk.bf16.gmra.mxu3 %vm743_vm3, %v6310_v23  ;;  %v1683_v3 = vpop.f32.mrf.mxu0 }
 0x1ff   : > { %v6933_v52 = vpop.f32.mrf.mxu2 }
 0x201   : > { %v1525_v31 = vpop.f32.mrf.mxu3 }
 0x202   : > { %v1578_v62 = vadd.f32 %v1525_v31, %v6711_v13 }
 0x203   : > { %v6940_v63 = vpop.f32.mrf.mxu1 }
 0x204   : > { %v1734_v44 = vadd.f32 %v1681_v40, %v1578_v62  ;;  %8837 = vst [vmem:[#allocation47_spill] sm:$0xff] %v6940_v63 }
 0x206   : > { %v1874_v0 = vadd.f32 %v1821_v30, %v1734_v44  ;;  %v1686_v43 = vpop.f32.mrf.mxu0 }
 0x207   : > { %v1960_v47 = vpop.f32.mrf.mxu2 }
 0x208   : > { %v6936_v53 = vadd.f32 %v1955_v56, %v1874_v0 }
 0x209   : > { %v1527_v5 = vpop.f32.mrf.mxu3  ;;  %5574 = vmatmul.msk.bf16.gmra.mxu0 %vm743_vm3, %v6333_v1 }
 0x20a   : > { %v1579_v42 = vadd.f32 %v1527_v5, %v6722_v57  ;;  %v8842_v5 = vld [vmem:[#allocation15_spill] sm:$0xff] }
 0x20b   : > { %v1831_v56 = vpop.f32.mrf.mxu1 }
 0x20c   : > { %v6943_v58 = vadd.f32 %v1683_v3, %v1579_v42 }
 0x20e   : > { %5556 = vmatmul.msk.bf16.gmra.mxu3 %vm743_vm3, %v6338_v18  ;;  %v1688_v13 = vpop.f32.mrf.mxu0  ;;  %v8867_v18 = vld [vmem:[#allocation39_spill] sm:$0xff] }
 0x20f   : > { %v6947_v59 = vpop.f32.mrf.mxu2 }
 0x210   : > { %8838 = vst [vmem:[#allocation48_spill] sm:$0xff] %v6947_v59 }
 0x211   : > { %v1530_v30 = vpop.f32.mrf.mxu3 }
 0x212   : > { %v1580_v40 = vadd.f32 %v1530_v30, %v6729_v61 }
 0x213   : > { %v6957_v0 = vpop.f32.mrf.mxu1 }
 0x214   : > { %v1736_v20 = vadd.f32 %v1686_v43, %v1580_v40  ;;  %8841 = vst [vmem:[#allocation51_spill] sm:$0xff] %v6957_v0 }
 0x216   : > { %v1876_v36 = vadd.f32 %v1826_v32, %v1736_v20  ;;  %v1691_v31 = vpop.f32.mrf.mxu0 }
 0x217   : > { %v1965_v1 = vpop.f32.mrf.mxu2 }
 0x218   : > { %v6950_v62 = vadd.f32 %v1960_v47, %v1876_v36 }
 0x219   : > { %v1532_v44 = vpop.f32.mrf.mxu3  ;;  %5575 = vmatmul.msk.bf16.gmra.mxu0 %vm743_vm3, %v6357_v55 }
 0x21a   : > { %8839 = vst [vmem:[#allocation49_spill] sm:$0xff] %v6950_v62  ;;  %v1581_v57 = vadd.f32 %v1532_v44, %v6740_v2 }
 0x21b   : > { %v1836_v20 = vpop.f32.mrf.mxu1 }
 0x21c   : > { %v6955_v3 = vadd.f32 %v1688_v13, %v1581_v57 }
 0x21e   : > { %8840 = vst [vmem:[#allocation50_spill] sm:$0xff] %v6955_v3  ;;  %5557 = vmatmul.msk.bf16.gmra.mxu3 %vm743_vm3, %v8842_v5  ;;  %v1693_v61 = vpop.f32.mrf.mxu0 }
 0x21f   : > { %v6961_v43 = vpop.f32.mrf.mxu2 }
 0x220   : > { %8843 = vst [vmem:[#allocation52_spill] sm:$0xff] %v6961_v43 }
 0x221   : > { %v1535_v32 = vpop.f32.mrf.mxu3 }
 0x222   : > { %v1582_v47 = vadd.f32 %v1535_v32, %v6747_v24 }
 0x224   : > { %v1738_v42 = vadd.f32 %v1691_v31, %v1582_v47  ;;  %v6973_v31 = vpop.f32.mrf.mxu1 }
 0x225   : > { %8846 = vst [vmem:[#allocation55_spill] sm:$0xff] %v6973_v31 }
 0x226   : > { %v1878_v30 = vadd.f32 %v1831_v56, %v1738_v42  ;;  %v1696_v40 = vpop.f32.mrf.mxu0 }
 0x227   : > { %v1970_v13 = vpop.f32.mrf.mxu2 }
 0x228   : > { %v6964_v55 = vadd.f32 %v1965_v1, %v1878_v30 }
 0x229   : > { %v1537_v2 = vpop.f32.mrf.mxu3  ;;  %5576 = vmatmul.msk.bf16.gmra.mxu0 %vm743_vm3, %v6388_v54 }
 0x22a   : > { %8844 = vst [vmem:[#allocation53_spill] sm:$0xff] %v6964_v55  ;;  %v1583_v36 = vadd.f32 %v1537_v2, %v6758_v26  ;;  %v8849_v26 = vld [vmem:[#allocation36_spill] sm:$0xff] }
 0x22c   : > { %v6969_v44 = vadd.f32 %v1693_v61, %v1583_v36  ;;  %v1841_v2 = vpop.f32.mrf.mxu1 }
 0x22e   : > { %8845 = vst [vmem:[#allocation54_spill] sm:$0xff] %v6969_v44  ;;  %5558 = vmatmul.msk.bf16.gmra.mxu3 %vm743_vm3, %v6393_v10  ;;  %v1698_v57 = vpop.f32.mrf.mxu0 }
 0x22f   : > { %v6976_v1 = vpop.f32.mrf.mxu2 }
 0x230   : > { %8847 = vst [vmem:[#allocation56_spill] sm:$0xff] %v6976_v1  ;;  %v8871_v1 = vld [vmem:[#allocation40_spill] sm:$0xff] }
 0x231   : > { %v1540_v24 = vpop.f32.mrf.mxu3 }
 0x232   : > { %v1584_v56 = vadd.f32 %v1540_v24, %v6707_v22 }
 0x234   : > { %v1740_v32 = vadd.f32 %v1696_v40, %v1584_v56 }
 0x236   : > { %v1880_v47 = vadd.f32 %v1836_v20, %v1740_v32  ;;  %v1701_v42 = vpop.f32.mrf.mxu0 }
 0x237   : > { %v1975_v10 = vpop.f32.mrf.mxu2 }
 0x238   : > { %v6978_v54 = vadd.f32 %v1970_v13, %v1880_v47  ;;  %v6988_v13 = vpop.f32.mrf.mxu1 }
 0x239   : > { %v1542_v30 = vpop.f32.mrf.mxu3  ;;  %5577 = vmatmul.msk.bf16.gmra.mxu0 %vm743_vm3, %v6421_v4  ;;  %8851 = vst [vmem:[#allocation58_spill] sm:$0xff] %v6988_v13 }
 0x23a   : > { %8848 = vst [vmem:[#allocation57_spill] sm:$0xff] %v6978_v54  ;;  %v1585_v61 = vadd.f32 %v1542_v30, %v8849_v26 }
 0x23c   : > { %v6983_v36 = vadd.f32 %v1698_v57, %v1585_v61  ;;  %v8854_v57 = vld [vmem:[#allocation37_spill] sm:$0xff]  ;;  %v6020_v61 = vmov 0  }
 0x23d   : > { %2419 = vst.msk [vmem:[#allocation2] sm:$0xf] %vm2418_vm9, %v6020_v61 }
 0x23e   : > { %8850 = vst [vmem:[#allocation36_spill] sm:$0xff] %v6983_v36  ;;  %5559 = vmatmul.msk.bf16.gmra.mxu3 %vm743_vm3, %v6426_v25  ;;  %v1703_v22 = vpop.f32.mrf.mxu0 }
 0x23f   : > { %v6990_v47 = vpop.f32.mrf.mxu2  ;;  %2420 = vst.msk [vmem:[#allocation2 + $0x4] sm:$0xf] %vm2418_vm9, %v6020_v61 }
 0x240   : > { %8852 = vst [vmem:[#allocation59_spill] sm:$0xff] %v6990_v47 }
 0x241   : > { %v1545_v24 = vpop.f32.mrf.mxu3  ;;  %2424 = vst.msk [vmem:[#allocation2 + $0xcc] sm:$0xf] %vm2418_vm9, %v6020_v61 }
 0x242   : > { %v1586_v40 = vadd.f32 %v1545_v24, %v6725_v16  ;;  %2422 = vst.msk [vmem:[#allocation2 + $0x8] sm:$0x1] %vm2421_vm10, %v6020_v61  ;;  %v8857_v24 = vmov 0 }
 0x243   : > { %2425 = vst.msk [vmem:[#allocation2 + $0xd0] sm:$0xf] %vm2418_vm9, %v6020_v61  ;;  %v8858_v24 = vsel %vm7009_vm12, 4294967295, %v8857_v24 }
 0x244   : > { %v1742_v20 = vadd.f32 %v1701_v42, %v1586_v40  ;;  %v8856_v42 = vld [vmem:[#allocation21_spill] sm:$0xff]  ;;  %2426 = vst.msk [vmem:[#allocation2 + $0xd4] sm:$0x1] %vm2421_vm10, %v6020_v61  ;;  %v8860_v40 = vld [vmem:[#allocation38_spill] sm:$0xff] }
 0x245   : > { %8859 = vst [vmem:[#allocation61_spill] sm:$0xff] %v8858_v24 }
 0x246   : > { %v1882_v56 = vadd.f32 %v1841_v2, %v1742_v20  ;;  %v1706_v32 = vpop.f32.mrf.mxu0 }
 0x248   : > { %v6992_v4 = vadd.f32 %v1975_v10, %v1882_v56  ;;  %v2430_v56 = vld [vmem:[#allocation2] sm:$0x1] }
 0x249   : > { %v1547_v30 = vpop.f32.mrf.mxu3  ;;  %5578 = vmatmul.msk.bf16.gmra.mxu0 %vm743_vm3, %v6453_v46  ;;  %v1846_v46 = vpop.f32.mrf.mxu1  ;;  %v2486_v25 = vld [vmem:[#allocation2 + $0x8] sm:$0x1] }
 0x24a   : > { %8853 = vst [vmem:[#allocation60_spill] sm:$0xff] %v6992_v4  ;;  %v1587_v26 = vadd.f32 %v1547_v30, %v8854_v57  ;;  %v2431_v30 = vsel %vm7009_vm12, 0, %v2430_v56  ;;  %v2487_v5 = vsel %vm7018_vm14, 0, %v2486_v25  ;;  %v7037_v25 = vld [vmem:[#allocation2 + $0x4] sm:$0xf] }
 0x24b   : > { %2432 = vst [vmem:[#allocation2] sm:$0x1] %v2431_v30  ;;  %v3046_v14 = vshrl.u32 %v7037_v25, 16 }
 0x24c   : > { %v6998_v16 = vadd.f32 %v1703_v22, %v1587_v26  ;;  %v1980_v22 = vpop.f32.mrf.mxu2  ;;  %v8861_v26 = vmov 0  ;;  %2488 = vst [vmem:[#allocation2 + $0x8] sm:$0x1] %v2487_v5 }
 0x24d   : > { %v8862_v26 = vsel %vm7018_vm14, 4294967295, %v8861_v26 }
 0x24e   : > { %8855 = vst [vmem:[#allocation37_spill] sm:$0xff] %v6998_v16  ;;  %5560 = vmatmul.msk.bf16.gmra.mxu3 %vm743_vm3, %v8856_v42  ;;  %v1708_v10 = vpop.f32.mrf.mxu0 }
 0x24f   : > { %8863 = vst [vmem:[#allocation38_spill] sm:$0xff] %v8862_v26 }
 0x251   : > { %v1550_v2 = vpop.f32.mrf.mxu3 }
 0x252   : > { %v1588_v20 = vadd.f32 %v1550_v2, %v8860_v40  ;;  %v2433_v40 = vld [vmem:[#allocation2 + $0xc] sm:$0x1]  ;;  %v7035_v23 = vld [vmem:[#allocation2] sm:$0xf] }
 0x253   : > { %v2434_v30 = vsel %vm7009_vm12, 0, %v2433_v40  ;;  %v3033_v5 = vshrl.u32 %v7035_v23, 16  ;;  %v8870_v40 = vld [vmem:[#allocation26_spill] sm:$0xff]  ;;  %v5869_v13 = vld [vmem:[#allocation2] sm:$0xff] }
 0x254   : > { %v1744_v57 = vadd.f32 %v1706_v32, %v1588_v20  ;;  %v7026_v32 = vpop.f32.mrf.mxu1  ;;  %v8866_v20 = vld [vmem:[#allocation24_spill] sm:$0xff]  ;;  %2435 = vst [vmem:[#allocation2 + $0xc] sm:$0x1] %v2434_v30  ;;  %5669 = vmatmul.msk.bf16.vlgmr.msra.gmra.mxu2 %vm3466_vm15, %v5869_v13  ;;  %v2436_v13 = vld [vmem:[#allocation2 + $0x18] sm:$0x1] }
 0x255   : > { %8865 = vst [vmem:[#allocation63_spill] sm:$0xff] %v7026_v32  ;;  %v3048_v32 = vrot.slane %v3046_v14, 4 }
 0x256   : > { %v1884_v61 = vadd.f32 %v1846_v46, %v1744_v57  ;;  %v1711_v42 = vpop.f32.mrf.mxu0  ;;  %v7033_v57 = vpop.f32.mrf.mxu2 }
 0x257   : > { %8868 = vst [vmem:[#allocation24_spill] sm:$0xff] %v7033_v57 }
 0x258   : > { %v7024_v2 = vadd.f32 %v1980_v22, %v1884_v61  ;;  %v3036_v61 = vshll.u32 %v7035_v23, 16 }
 0x259   : > { %v1552_v56 = vpop.f32.mrf.mxu3  ;;  %5579 = vmatmul.msk.bf16.gmra.mxu0 %vm743_vm3, %v8866_v20  ;;  %v3042_v20 = vshll.u32 %v7037_v25, 16 }
 0x25a   : > { %8864 = vst [vmem:[#allocation62_spill] sm:$0xff] %v7024_v2  ;;  %v1589_v46 = vadd.f32 %v1552_v56, %v8867_v18  ;;  %v3035_v56 = vrot.slane %v3033_v5, 4  ;;  %v3038_v30 = vrot.slane %v3036_v61, 5  ;;  %v7047_v2 = vld [vmem:[#allocation2 + $0x8] sm:$0x1] }
 0x25b   : > { %v3044_v57 = vrot.slane %v3042_v20, 5 }
 0x25c   : > { %v7039_v22 = vadd.f32 %v1708_v10, %v1589_v46  ;;  %v2489_v10 = vld [vmem:[#allocation2 + $0x14] sm:$0x1]  ;;  %v3039_v46 = vor.u32 %v3038_v30, %v3035_v56  ;;  %v1851_v20 = vpop.f32.mrf.mxu1 }
 0x25d   : > { %v2490_v4 = vsel %vm7018_vm14, 0, %v2489_v10  ;;  %v3049_v16 = vor.u32 %v3048_v32, %v3044_v57 }
 0x25e   : > { %8869 = vst [vmem:[#allocation39_spill] sm:$0xff] %v7039_v22  ;;  %5561 = vmatmul.msk.bf16.gmra.mxu3 %vm743_vm3, %v8870_v40  ;;  %v1713_v18 = vpop.f32.mrf.mxu0  ;;  %v3052_v22 = vshll.u32 %v7047_v2, 16  ;;  %v3040_v5 = vrot.slane %v3039_v46, 4  ;;  %v1985_v30 = vpop.f32.mrf.mxu2  ;;  %v8873_v46 = vld [vmem:[#allocation29_spill] sm:$0xff] }
 0x25f   : > { %2491 = vst [vmem:[#allocation2 + $0x14] sm:$0x1] %v2490_v4  ;;  %v3050_v14 = vrot.slane %v3049_v16, 4 }
 0x260   : > { %v3054_v61 = vrot.slane %v3052_v22, 5  ;;  %v3045_v56 = vsel %vm6160_vm7, %v3040_v5, %v3044_v57  ;;  %v2492_v5 = vld [vmem:[#allocation2 + $0x20] sm:$0x1] }
 0x261   : > { %v1555_v47 = vpop.f32.mrf.mxu3  ;;  %v3418_v31 = vunpack.c.l.b16 %v3045_v56  ;;  %v2493_v56 = vsel %vm7018_vm14, 0, %v2492_v5 }
 0x262   : > { %v1590_v54 = vadd.f32 %v1555_v47, %v8871_v1  ;;  %v3055_v10 = vsel %vm6160_vm7, %v3050_v14, %v3054_v61  ;;  %v8876_v61 = vld [vmem:[#allocation22_spill] sm:$0xff]  ;;  %v7074_v14 = vld [vmem:[%s8684_s2] ss:$0 sm:$0xff]  ;;  %2494 = vst [vmem:[#allocation2 + $0x20] sm:$0x1] %v2493_v56 }
 0x263   : > { %v3419_v1 = vunpack.c.l.b16 %v3055_v10 }
 0x264   : > { %v1746_v40 = vadd.f32 %v1711_v42, %v1590_v54  ;;  %v8874_v54 = vld [vmem:[#allocation41_spill] sm:$0xff]  ;;  %v2437_v42 = vsel %vm7009_vm12, 0, %v2436_v13  ;;  %v2439_v13 = vld [vmem:[#allocation2 + $0x24] sm:$0x1] }
 0x265   : > { %v3450_v4 = vpack.c.b16 %v3419_v1, %v3418_v31  ;;  %2438 = vst [vmem:[#allocation2 + $0x18] sm:$0x1] %v2437_v42 }
 0x266   : > { %v1886_v32 = vadd.f32 %v1851_v20, %v1746_v40  ;;  %v2206_v36 = vpop.f32.mrf.mxu0 }
 0x267   : > { %5589 = vmatmul.msk.bf16.vlgmr.msra.gmra.mxu1 %vm3466_vm15, %v3450_v4 }
 0x268   : > { %v7058_v47 = vadd.f32 %v1985_v30, %v1886_v32 }
 0x269   : > { %v1557_v22 = vpop.f32.mrf.mxu3  ;;  %5580 = vmatmul.msk.bf16.gmra.mxu0 %vm743_vm3, %v8873_v46  ;;  %v8877_v46 = vld [vmem:[#allocation33_spill] sm:$0xff]  ;;  %v2876_v55 = vld [vmem:[#allocation2 + $0x20] sm:$0x1] }
 0x26a   : > { %8872 = vst [vmem:[#allocation40_spill] sm:$0xff] %v7058_v47  ;;  %v1591_v16 = vadd.f32 %v1557_v22, %v8874_v54 }
 0x26c   : > { %v7066_v57 = vadd.f32 %v1713_v18, %v1591_v16  ;;  %v5701_v18 = vld [vmem:[%s8685_s3 + $0x8] sm:$0xf] }
 0x26d   : > { %v4055_v10 = vsel %vm3515_vm8, %v5701_v18, 0  ;;  %v8878_v16 = vld [vmem:[#allocation25_spill] sm:$0xff] }
 0x26e   : > { %8875 = vst [vmem:[#allocation29_spill] sm:$0xff] %v7066_v57  ;;  %5562 = vmatmul.msk.bf16.gmra.mxu3 %vm743_vm3, %v6554_v11  ;;  %v2208_v40 = vpop.f32.mrf.mxu0 }
 0x26f   : > { %4064 = vmatpush.bf16.msrb.mxu3 %v4055_v10 }
 0x271   : > { %v2066_v31 = vpop.f32.mrf.mxu3 }
 0x272   : > { %v2146_v20 = vadd.f32 %v2066_v31, %v8876_v61  ;;  %v2440_v31 = vsel %vm7009_vm12, 0, %v2439_v13  ;;  %v5757_v61 = vld [vmem:[%s8685_s3 + $0x14] sm:$0xf]  ;;  %v2865_v13 = vld [vmem:[#allocation2 + $0xc] sm:$0xf] }
 0x273   : > { %2441 = vst [vmem:[#allocation2 + $0x24] sm:$0x1] %v2440_v31  ;;  %v4485_v56 = vsel %vm3515_vm8, %v5757_v61, 0  ;;  %v2495_v31 = vld [vmem:[#allocation2 + $0x2c] sm:$0x1] }
 0x274   : > { %v2286_v30 = vadd.f32 %v2206_v36, %v2146_v20  ;;  %v5718_v20 = vld [vmem:[%s8685_s3 + $0xc] sm:$0xf]  ;;  %4494 = vmatpush.bf16.msrb.mxu2 %v4485_v56 }
 0x275   : > { %v4189_v18 = vsel %vm3515_vm8, %v5718_v20, 0  ;;  %v2496_v20 = vsel %vm7018_vm14, 0, %v2495_v31 }
 0x276   : > { %v2322_v32 = vadd.f32 %v7074_v14, %v2286_v30  ;;  %v2211_v1 = vpop.f32.mrf.mxu0  ;;  %v5739_v30 = vld [vmem:[%s8685_s3 + $0x10] sm:$0xf]  ;;  %4198 = vmatpush.bf16.msrb.mxu0 %v4189_v18  ;;  %2497 = vst [vmem:[#allocation2 + $0x2c] sm:$0x1] %v2496_v20 }
 0x278   : > { %v2354_v4 = vmax.f32 %v2322_v32, 0.0 }
 0x279   : > { %v2068_v22 = vpop.f32.mrf.mxu3  ;;  %5581 = vmatmul.msk.bf16.gmra.mxu0 %vm743_vm3, %v8877_v46 }
 0x27a   : > { %v2386_v54 = vpack.c.bf16 %v2354_v4, %v2354_v4  ;;  %v2147_v42 = vadd.f32 %v2068_v22, %v8878_v16  ;;  %v4345_v22 = vsel %vm3515_vm8, %v5739_v30, 0 }
 0x27b   : > { %4354 = vmatpush.bf16.msrb.mxu1 %v4345_v22 }
 0x27c   : > { %v2543_v36 = vshrl.u32 %v2386_v54, 16  ;;  %v2287_v5 = vadd.f32 %v2208_v40, %v2147_v42  ;;  %v2546_v32 = vshll.u32 %v2386_v54, 16 }
 0x27e   : > { %v2545_v10 = vrot.slane %v2543_v36, 7  ;;  %v2323_v40 = vadd.f32 %v7074_v14, %v2287_v5  ;;  %5563 = vmatmul.msk.bf16.gmra.mxu3 %vm743_vm3, %v6602_v12  ;;  %v2213_v4 = vpop.f32.mrf.mxu0 }
 0x280   : > { %v2548_v16 = vor.u32 %v2546_v32, %v2545_v10  ;;  %v2355_v54 = vmax.f32 %v2323_v40, 0.0 }
 0x281   : > { %v2071_v42 = vpop.f32.mrf.mxu3 }
 0x282   : > { %v2866_v36 = vsel %vm7105_vm1, %v2548_v16, %v2865_v13  ;;  %v2387_v5 = vpack.c.bf16 %v2355_v54, %v2355_v54  ;;  %v2148_v61 = vadd.f32 %v2071_v42, %v6799_v29  ;;  %v2869_v13 = vld [vmem:[#allocation2 + $0x14] sm:$0x1]  ;;  %v2549_v29 = vrot.slane %v2545_v10, 4 }
 0x283   : > { %2867 = vst [vmem:[#allocation2 + $0xc] sm:$0xf] %v2866_v36  ;;  %v8883_v36 = vld [vmem:[#allocation23_spill] sm:$0xff] }
 0x284   : > { %v2551_v56 = vshrl.u32 %v2387_v5, 16  ;;  %v2288_v30 = vadd.f32 %v2211_v1, %v2148_v61  ;;  %v2554_v22 = vshll.u32 %v2387_v5, 16  ;;  %v2442_v1 = vld [vmem:[#allocation2 + $0x30] sm:$0x1] }
 0x286   : > { %v2553_v18 = vrot.slane %v2551_v56, 7  ;;  %v2324_v32 = vadd.f32 %v7074_v14, %v2288_v30  ;;  %v2216_v40 = vpop.f32.mrf.mxu0  ;;  %v8884_v56 = vld [vmem:[#allocation27_spill] sm:$0xff] }
 0x288   : > { %v2556_v16 = vor.u32 %v2554_v22, %v2553_v18  ;;  %v2558_v54 = vrot.slane %v2553_v18, 4  ;;  %v2356_v42 = vmax.f32 %v2324_v32, 0.0 }
 0x289   : > { %v2073_v31 = vpop.f32.mrf.mxu3  ;;  %5582 = vmatmul.msk.bf16.gmra.mxu0 %vm743_vm3, %v8883_v36  ;;  %v2443_v36 = vsel %vm7009_vm12, 0, %v2442_v1 }
 0x28a   : > { %v2557_v5 = vsel %vm7116_vm5, %v2549_v29, %v2556_v16  ;;  %v2870_v61 = vsel %vm7009_vm12, %v2558_v54, %v2869_v13  ;;  %v2388_v20 = vpack.c.bf16 %v2356_v42, %v2356_v42  ;;  %v2149_v30 = vadd.f32 %v2073_v31, %v8884_v56  ;;  %v2980_v11 = vld [vmem:[#allocation2 + $0xc] sm:$0xf]  ;;  %2444 = vst [vmem:[#allocation2 + $0x30] sm:$0x1] %v2443_v36  ;;  %v2872_v42 = vld [vmem:[#allocation2 + $0x18] sm:$0xf] }
 0x28b   : > { %2868 = vst.msk [vmem:[#allocation2 + $0x10] sm:$0xf] %vm2418_vm9, %v2557_v5  ;;  %v3057_v10 = vshrl.u32 %v2980_v11, 16  ;;  %v3060_v18 = vshll.u32 %v2980_v11, 16 }
 0x28c   : > { %2871 = vst [vmem:[#allocation2 + $0x14] sm:$0x1] %v2870_v61  ;;  %v2560_v22 = vshrl.u32 %v2388_v20, 16  ;;  %v2289_v32 = vadd.f32 %v2213_v4, %v2149_v30  ;;  %v2563_v16 = vshll.u32 %v2388_v20, 16  ;;  %v2498_v4 = vld [vmem:[#allocation2 + $0x38] sm:$0x1] }
 0x28d   : > { %v3059_v47 = vrot.slane %v3057_v10, 4  ;;  %v3062_v57 = vrot.slane %v3060_v18, 5 }
 0x28e   : > { %v2562_v29 = vrot.slane %v2560_v22, 7  ;;  %v2325_v13 = vadd.f32 %v7074_v14, %v2289_v32  ;;  %5564 = vmatmul.msk.bf16.gmra.mxu3 %vm743_vm3, %v8820_v48  ;;  %v2218_v54 = vpop.f32.mrf.mxu0  ;;  %v2499_v22 = vsel %vm7018_vm14, 0, %v2498_v4 }
 0x28f   : > { %v3063_v56 = vor.u32 %v3062_v57, %v3059_v47  ;;  %v5686_v47 = vrot.slane %v2980_v11, 9  ;;  %2500 = vst [vmem:[#allocation2 + $0x38] sm:$0x1] %v2499_v22 }
 0x290   : > { %v2565_v31 = vor.u32 %v2563_v16, %v2562_v29  ;;  %v2357_v5 = vmax.f32 %v2325_v13, 0.0  ;;  %v2566_v11 = vrot.slane %v2562_v29, 4 }
 0x291   : > { %v2076_v61 = vpop.f32.mrf.mxu3 }
 0x292   : > { %v2873_v1 = vsel %vm7105_vm1, %v2565_v31, %v2872_v42  ;;  %v2389_v30 = vpack.c.bf16 %v2357_v5, %v2357_v5  ;;  %v2150_v10 = vadd.f32 %v2076_v61, %v6813_v49  ;;  %v7136_v18 = vld [vmem:[#allocation2 + $0xc] sm:$0xff] }
 0x293   : > { %v2981_v20 = vld [vmem:[#allocation2 + $0x10] sm:$0xf]  ;;  %2874 = vst [vmem:[#allocation2 + $0x18] sm:$0xf] %v2873_v1  ;;  %v2982_v32 = vld [vmem:[#allocation2 + $0x14] sm:$0x1]  ;;  %5670 = vmatmul.msk.bf16.gmra.mxu2 %vm3466_vm15, %v7136_v18 }
 0x294   : > { %v3066_v36 = vshll.u32 %v2981_v20, 16  ;;  %v3070_v16 = vshrl.u32 %v2981_v20, 16  ;;  %v2568_v13 = vshrl.u32 %v2389_v30, 16  ;;  %v2290_v48 = vadd.f32 %v2216_v40, %v2150_v10 }
 0x295   : > { %v3076_v31 = vshll.u32 %v2982_v32, 16  ;;  %v3853_v49 = vrot.slane %v2981_v20, 5  ;;  %v2571_v61 = vshll.u32 %v2389_v30, 16  ;;  %v3064_v1 = vrot.slane %v3063_v56, 4  ;;  %v2445_v20 = vld [vmem:[#allocation2 + $0x3c] sm:$0x1] }
 0x296   : > { %v3068_v57 = vrot.slane %v3066_v36, 5  ;;  %v3072_v42 = vrot.slane %v3070_v16, 4  ;;  %v2570_v5 = vrot.slane %v2568_v13, 7  ;;  %v2326_v43 = vadd.f32 %v7074_v14, %v2290_v48  ;;  %v7143_v4 = vpop.f32.mrf.mxu0 }
 0x297   : > { %v3854_v40 = vsel %vm6132_vm4, %v5686_v47, %v3853_v49  ;;  %v3855_v10 = vrot.slane %v3853_v49, 4  ;;  %v3856_v44 = vrot.slane %v2982_v32, 5  ;;  %v3078_v56 = vrot.slane %v3076_v31, 5  ;;  %v8885_v47 = vld [vmem:[#allocation30_spill] sm:$0xff] }
 0x298   : > { %v3073_v0 = vor.u32 %v3072_v42, %v3068_v57  ;;  %v2573_v36 = vor.u32 %v2571_v61, %v2570_v5  ;;  %v2575_v16 = vrot.slane %v2570_v5, 4  ;;  %v2358_v59 = vmax.f32 %v2326_v43, 0.0 }
 0x299   : > { %v2078_v22 = vpop.f32.mrf.mxu3  ;;  %5583 = vmatmul.msk.bf16.gmra.mxu0 %vm743_vm3, %v8821_v50  ;;  %v3069_v48 = vsel %vm6160_vm7, %v3064_v1, %v3068_v57  ;;  %v3857_v13 = vsel %vm6132_vm4, %v3855_v10, %v3856_v44  ;;  %v2446_v44 = vsel %vm7009_vm12, 0, %v2445_v20  ;;  %v3960_v10 = vunpack.c.l.b16 %v3854_v40 }
 0x29a   : > { %v3074_v30 = vrot.slane %v3073_v0, 4  ;;  %v2574_v32 = vsel %vm7116_vm5, %v2566_v11, %v2573_v36  ;;  %v2877_v29 = vsel %vm7009_vm12, %v2575_v16, %v2876_v55  ;;  %v2390_v43 = vpack.c.bf16 %v2358_v59, %v2358_v59  ;;  %v2983_v49 = vld [vmem:[#allocation2 + $0x18] sm:$0xf]  ;;  %2447 = vst [vmem:[#allocation2 + $0x3c] sm:$0x1] %v2446_v44 }
 0x29b   : > { %v2151_v42 = vadd.f32 %v2078_v22, %v8885_v47  ;;  %2875 = vst.msk [vmem:[#allocation2 + $0x1c] sm:$0xf] %vm2418_vm9, %v2574_v32  ;;  %v3081_v0 = vshrl.u32 %v2983_v49, 16  ;;  %v3084_v57 = vshll.u32 %v2983_v49, 16  ;;  %v3420_v61 = vunpack.c.l.b16 %v3069_v48  ;;  %v2879_v32 = vld [vmem:[#allocation2 + $0x24] sm:$0xf] }
 0x29c   : > { %v3079_v50 = vsel %vm6160_vm7, %v3074_v30, %v3078_v56  ;;  %2878 = vst [vmem:[#allocation2 + $0x20] sm:$0x1] %v2877_v29  ;;  %v2577_v31 = vshrl.u32 %v2390_v43, 16  ;;  %v3961_v11 = vunpack.c.l.b16 %v3857_v13  ;;  %v2580_v16 = vshll.u32 %v2390_v43, 16  ;;  %v8886_v30 = vld [vmem:[#allocation9_spill] sm:$0xff] }
 0x29d   : > { %v2291_v5 = vadd.f32 %v2218_v54, %v2151_v42  ;;  %v3421_v1 = vunpack.c.l.b16 %v3079_v50  ;;  %v3083_v55 = vrot.slane %v3081_v0, 4  ;;  %v3086_v59 = vrot.slane %v3084_v57, 5  ;;  %v2501_v43 = vld [vmem:[#allocation2 + $0x44] sm:$0x1] }
 0x29e   : > { %v2579_v36 = vrot.slane %v2577_v31, 7  ;;  %5565 = vmatmul.msk.bf16.gmra.mxu3 %vm743_vm3, %v8886_v30  ;;  %v7168_v20 = vpop.f32.mrf.mxu0  ;;  %v7170_v54 = vpack.c.b16 %v3961_v11, %v3960_v10  ;;  %v8888_v50 = vld [vmem:[#allocation28_spill] sm:$0xff]  ;;  %v2502_v31 = vsel %vm7018_vm14, 0, %v2501_v43 }
 0x29f   : > { %v2327_v22 = vadd.f32 %v7074_v14, %v2291_v5  ;;  %v7166_v56 = vpack.c.b16 %v3421_v1, %v3420_v61  ;;  %v3087_v13 = vor.u32 %v3086_v59, %v3083_v55  ;;  %v8889_v5 = vld [vmem:[#allocation44_spill] sm:$0xff]  ;;  %2503 = vst [vmem:[#allocation2 + $0x44] sm:$0x1] %v2502_v31 }
 0x2a0   : > { %v2582_v48 = vor.u32 %v2580_v16, %v2579_v36  ;;  %v8890_v61 = vld [vmem:[#allocation16_spill] sm:$0xff] }
 0x2a1   : > { %8887 = vst [vmem:[#allocation41_spill] sm:$0xff] %v7166_v56  ;;  %v2359_v29 = vmax.f32 %v2327_v22, 0.0  ;;  %5590 = vmatmul.msk.bf16.gmra.mxu1 %vm3466_vm15, %v7166_v56  ;;  %v2081_v40 = vpop.f32.mrf.mxu3  ;;  %v7183_v1 = vadd.f32 %v8890_v61, %v8889_v5  ;;  %v8891_v11 = vld [vmem:[#allocation20_spill] sm:$0xff] }
 0x2a2   : > { %v2880_v47 = vsel %vm7105_vm1, %v2582_v48, %v2879_v32  ;;  %v2152_v0 = vadd.f32 %v2081_v40, %v8888_v50  ;;  %v7177_v57 = vld [vmem:[#allocation2 + $0x18] sm:$0xff]  ;;  %v7187_v16 = vadd.f32 %v8891_v11, %v6878_v15  ;;  %v5687_v48 = vrot.slane %v2983_v49, 9  ;;  %v2883_v11 = vld [vmem:[#allocation2 + $0x2c] sm:$0x1] }
 0x2a3   : > { %v2391_v42 = vpack.c.bf16 %v2359_v29, %v2359_v29  ;;  %v2984_v44 = vld [vmem:[#allocation2 + $0x1c] sm:$0xf]  ;;  %2881 = vst [vmem:[#allocation2 + $0x24] sm:$0xf] %v2880_v47  ;;  %v2985_v10 = vld [vmem:[#allocation2 + $0x20] sm:$0x1]  ;;  %5671 = vmatmul.msk.bf16.gmra.mxu2 %vm3466_vm15, %v7177_v57 }
 0x2a4   : > { %v3090_v55 = vshll.u32 %v2984_v44, 16  ;;  %v3094_v59 = vshrl.u32 %v2984_v44, 16  ;;  %v2292_v32 = vadd.f32 %v7143_v4, %v2152_v0  ;;  %v3100_v43 = vshll.u32 %v2985_v10, 16 }
 0x2a5   : > { %v2585_v22 = vshrl.u32 %v2391_v42, 16  ;;  %v3860_v50 = vrot.slane %v2984_v44, 5  ;;  %v2588_v5 = vshll.u32 %v2391_v42, 16  ;;  %v3088_v15 = vrot.slane %v3087_v13, 4  ;;  %v8892_v44 = vld [vmem:[#allocation32_spill] sm:$0xff] }
 0x2a6   : > { %v3092_v29 = vrot.slane %v3090_v55, 5  ;;  %v3096_v40 = vrot.slane %v3094_v59, 4  ;;  %v2328_v61 = vadd.f32 %v7074_v14, %v2292_v32  ;;  %v7193_v30 = vpop.f32.mrf.mxu0  ;;  %v3863_v62 = vrot.slane %v2985_v10, 5  ;;  %v2448_v32 = vld [vmem:[#allocation2 + $0x48] sm:$0x1] }
 0x2a7   : > { %v2587_v47 = vrot.slane %v2585_v22, 7  ;;  %v3861_v4 = vsel %vm6132_vm4, %v5687_v48, %v3860_v50  ;;  %v3862_v0 = vrot.slane %v3860_v50, 4  ;;  %v2583_v49 = vrot.slane %v2579_v36, 4  ;;  %v8893_v50 = vld [vmem:[#allocation42_spill] sm:$0xff] }
 0x2a8   : > { %v3097_v56 = vor.u32 %v3096_v40, %v3092_v29  ;;  %v2360_v63 = vmax.f32 %v2328_v61, 0.0  ;;  %v3093_v42 = vsel %vm6160_vm7, %v3088_v15, %v3092_v29  ;;  %v3102_v13 = vrot.slane %v3100_v43, 5 }
 0x2a9   : > { %v2590_v55 = vor.u32 %v2588_v5, %v2587_v47  ;;  %v2592_v59 = vrot.slane %v2587_v47, 4  ;;  %v2083_v31 = vpop.f32.mrf.mxu3  ;;  %5584 = vmatmul.msk.bf16.gmra.mxu0 %vm743_vm3, %v8892_v44  ;;  %v3864_v40 = vsel %vm6132_vm4, %v3862_v0, %v3863_v62  ;;  %v2449_v43 = vsel %vm7009_vm12, 0, %v2448_v32 }
 0x2aa   : > { %v3098_v22 = vrot.slane %v3097_v56, 4  ;;  %v2392_v48 = vpack.c.bf16 %v2360_v63, %v2360_v63  ;;  %v2153_v47 = vadd.f32 %v2083_v31, %v8893_v50  ;;  %v7208_v5 = vld [vmem:[#allocation2 + $0x24] sm:$0xf]  ;;  %v3422_v15 = vunpack.c.l.b16 %v3093_v42  ;;  %2450 = vst [vmem:[#allocation2 + $0x48] sm:$0x1] %v2449_v43  ;;  %v8897_v50 = vld [vmem:[#allocation18_spill] sm:$0xff] }
 0x2ab   : > { %v2591_v10 = vsel %vm7116_vm5, %v2583_v49, %v2590_v55  ;;  %v2884_v36 = vsel %vm7009_vm12, %v2592_v59, %v2883_v11  ;;  %v3105_v29 = vshrl.u32 %v7208_v5, 16  ;;  %v3108_v62 = vshll.u32 %v7208_v5, 16 }
 0x2ac   : > { %2882 = vst.msk [vmem:[#allocation2 + $0x28] sm:$0xf] %vm2418_vm9, %v2591_v10  ;;  %v3103_v56 = vsel %vm6160_vm7, %v3098_v22, %v3102_v13  ;;  %v2594_v61 = vshrl.u32 %v2392_v48, 16  ;;  %v2293_v63 = vadd.f32 %v7168_v20, %v2153_v47  ;;  %v3962_v55 = vunpack.c.l.b16 %v3861_v4  ;;  %v8894_v13 = vld [vmem:[#allocation11_spill] sm:$0xff]  ;;  %v2886_v4 = vld [vmem:[#allocation2 + $0x30] sm:$0xf] }
 0x2ad   : > { %2885 = vst [vmem:[#allocation2 + $0x2c] sm:$0x1] %v2884_v36  ;;  %v3423_v11 = vunpack.c.l.b16 %v3103_v56  ;;  %v3107_v0 = vrot.slane %v3105_v29, 4  ;;  %v3110_v49 = vrot.slane %v3108_v62, 5  ;;  %v3963_v59 = vunpack.c.l.b16 %v3864_v40  ;;  %v8898_v56 = vld [vmem:[#allocation45_spill] sm:$0xff] }
 0x2ae   : > { %v7218_v31 = vrot.slane %v2594_v61, 7  ;;  %v2597_v44 = vshll.u32 %v2392_v48, 16  ;;  %v2329_v22 = vadd.f32 %v7074_v14, %v2293_v63  ;;  %5566 = vmatmul.msk.bf16.gmra.mxu3 %vm743_vm3, %v8894_v13  ;;  %v7225_v10 = vpop.f32.mrf.mxu0  ;;  %v1869_v20 = vadd.f32 %v6865_v38, %v6902_v9  ;;  %v8899_v61 = vld [vmem:[#allocation43_spill] sm:$0xff]  ;;  %v2451_v13 = vld [vmem:[#allocation2 + $0x54] sm:$0x1] }
 0x2af   : > { %v7223_v32 = vpack.c.b16 %v3423_v11, %v3422_v15  ;;  %v1871_v42 = vadd.f32 %v6893_v51, %v6915_v27  ;;  %v7231_v40 = vpack.c.b16 %v3963_v59, %v3962_v55  ;;  %v1999_v47 = vadd.f32 %v8897_v50, %v7183_v1  ;;  %v2504_v51 = vld [vmem:[#allocation2 + $0x50] sm:$0x1] }
 0x2b0   : > { %v2599_v36 = vor.u32 %v2597_v44, %v7218_v31  ;;  %v2361_v48 = vmax.f32 %v2329_v22, 0.0  ;;  %v7240_v29 = vadd.f32 %v8898_v56, %v7187_v16  ;;  %v3111_v9 = vor.u32 %v3110_v49, %v3107_v0  ;;  %v7253_v16 = vld [vmem:[%s6130_s26 + $0xcc] sm:$0xf] }
 0x2b1   : > { %8895 = vst [vmem:[#allocation22_spill] sm:$0xff] %v7223_v32  ;;  %5591 = vmatmul.msk.bf16.gmra.mxu1 %vm3466_vm15, %v7223_v32  ;;  %v2086_v38 = vpop.f32.mrf.mxu3  ;;  %v2505_v1 = vsel %vm7018_vm14, 0, %v2504_v51  ;;  %v7256_v0 = vadd.f32 %v6886_v37, %v1869_v20  ;;  %v7259_v49 = vadd.f32 %v6905_v34, %v1871_v42  ;;  %v2600_v22 = vrot.slane %v7218_v31, 4  ;;  %v7271_v20 = vld [vmem:[%s6130_s26 + $0xd0] sm:$0xf] }
 0x2b2   : > { %8896 = vst [vmem:[#allocation33_spill] sm:$0xff] %v7231_v40  ;;  %v2887_v62 = vsel %vm7105_vm1, %v2599_v36, %v2886_v4  ;;  %v2393_v43 = vpack.c.bf16 %v2361_v48, %v2361_v48  ;;  %v2154_v63 = vadd.f32 %v2086_v38, %v8899_v61  ;;  %v3112_v42 = vrot.slane %v3111_v9, 4 }
 0x2b3   : > { %v7246_v15 = vld [vmem:[#allocation2 + $0x24] sm:$0xff]  ;;  %2888 = vst [vmem:[#allocation2 + $0x30] sm:$0xf] %v2887_v62  ;;  %v2890_v62 = vld [vmem:[#allocation2 + $0x38] sm:$0x1]  ;;  %v2026_v27 = vshll.u32 %v7253_v16, 16 }
 0x2b4   : > { %v7248_v11 = vld [vmem:[#allocation2 + $0x28] sm:$0xf]  ;;  %v7261_v55 = vld [vmem:[#allocation2 + $0x2c] sm:$0x1]  ;;  %v2602_v4 = vshrl.u32 %v2393_v43, 16  ;;  %v2294_v36 = vadd.f32 %v7193_v30, %v2154_v63  ;;  %5672 = vmatmul.msk.bf16.gmra.mxu2 %vm3466_vm15, %v7246_v15  ;;  %v2605_v34 = vshll.u32 %v2393_v43, 16 }
 0x2b5   : > { %v3114_v59 = vshll.u32 %v7248_v11, 16  ;;  %v3118_v44 = vshrl.u32 %v7248_v11, 16  ;;  %v3124_v37 = vshll.u32 %v7261_v55, 16  ;;  %2506 = vst [vmem:[#allocation2 + $0x50] sm:$0x1] %v2505_v1  ;;  %v2023_v30 = vshrl.u32 %v7253_v16, 16 }
 0x2b6   : > { %v2604_v56 = vrot.slane %v2602_v4, 7  ;;  %v2330_v38 = vadd.f32 %v7074_v14, %v2294_v36  ;;  %v7274_v51 = vpop.f32.mrf.mxu0  ;;  %v2032_v9 = vshll.u32 %v7271_v20, 16  ;;  %v8900_v36 = vld [vmem:[#allocation35_spill] sm:$0xff]  ;;  %v2028_v3 = vrot.slane %v2026_v27, 5 }
 0x2b7   : > { %v3116_v48 = vrot.slane %v3114_v59, 5  ;;  %v3120_v50 = vrot.slane %v3118_v44, 4  ;;  %v3126_v31 = vrot.slane %v3124_v37, 5  ;;  %v2025_v32 = vrot.slane %v2023_v30, 4 }
 0x2b8   : > { %v2607_v43 = vor.u32 %v2605_v34, %v2604_v56  ;;  %v2609_v1 = vrot.slane %v2604_v56, 4  ;;  %v2362_v59 = vmax.f32 %v2330_v38, 0.0  ;;  %v7283_v40 = vrot.slane %v2032_v9, 5  ;;  %v7292_v38 = vld [vmem:[%s6130_s26 + $0xd4] sm:$0x1]  ;;  %s5344_s26 = sshll.u32 %s242_s14, 6 }
 0x2b9   : > { %v3117_v61 = vsel %vm6160_vm7, %v3112_v42, %v3116_v48  ;;  %v3121_v63 = vor.u32 %v3120_v50, %v3116_v48  ;;  %v2088_v4 = vpop.f32.mrf.mxu3  ;;  %5585 = vmatmul.msk.bf16.gmra.mxu0 %vm743_vm3, %v8900_v36  ;;  %s8532_s17 = scalar_lea.vmem [#allocation4], %s5344_s26 }
 0x2ba   : > { %v3424_v44 = vunpack.c.l.b16 %v3117_v61  ;;  %v2608_v42 = vsel %vm7116_vm5, %v2600_v22, %v2607_v43  ;;  %v2891_v34 = vsel %vm7009_vm12, %v2609_v1, %v2890_v62  ;;  %v2394_v48 = vpack.c.bf16 %v2362_v59, %v2362_v59  ;;  %v7289_v56 = vld [vmem:[#allocation2 + $0x30] sm:$0xf]  ;;  %s5275_s29 = sshll.u32 %s8532_s17, 4  ;;  %s5276_s29 = int_to_ptr.vmem [resolvable:$true] %s5275_s29 }
 0x2bb   : > { %v3122_v37 = vrot.slane %v3121_v63, 4  ;;  %v2155_v50 = vadd.f32 %v2088_v4, %v1999_v47  ;;  %2889 = vst.msk [vmem:[#allocation2 + $0x34] sm:$0xf] %vm2418_vm9, %v2608_v42  ;;  %v3129_v27 = vshrl.u32 %v7289_v56, 16  ;;  %v3132_v61 = vshll.u32 %v7289_v56, 16 }
 0x2bc   : > { %v2452_v22 = vsel %vm7009_vm12, 0, %v2451_v13  ;;  %2892 = vst [vmem:[#allocation2 + $0x38] sm:$0x1] %v2891_v34  ;;  %v2611_v62 = vshrl.u32 %v2394_v48, 16  ;;  %v2614_v63 = vshll.u32 %v2394_v48, 16  ;;  %v2029_v59 = vor.u32 %v2028_v3, %v2025_v32 }
 0x2bd   : > { %v3127_v30 = vsel %vm6160_vm7, %v3122_v37, %v3126_v31  ;;  %v2295_v47 = vadd.f32 %v7225_v10, %v2155_v50  ;;  %v3131_v43 = vrot.slane %v3129_v27, 4  ;;  %v3134_v1 = vrot.slane %v3132_v61, 5  ;;  %2453 = vst [vmem:[#allocation2 + $0x54] sm:$0x1] %v2452_v22  ;;  %v2893_v42 = vld [vmem:[#allocation2 + $0x3c] sm:$0xf] }
 0x2be   : > { %v3425_v9 = vunpack.c.l.b16 %v3127_v30  ;;  %v2036_v4 = vshrl.u32 %v7271_v20, 16  ;;  %v7303_v31 = vrot.slane %v2611_v62, 7  ;;  %5567 = vmatmul.msk.bf16.gmra.mxu3 %vm743_vm3, %v8835_v19  ;;  %v7310_v37 = vpop.f32.mrf.mxu0  ;;  %v2042_v10 = vshll.u32 %v7292_v38, 16  ;;  %v2507_v62 = vld [vmem:[#allocation2 + $0x5c] sm:$0x1] }
 0x2bf   : > { %v2331_v36 = vadd.f32 %v7074_v14, %v2295_v47  ;;  %v3135_v34 = vor.u32 %v3134_v1, %v3131_v43  ;;  %v2030_v48 = vrot.slane %v2029_v59, 4  ;;  %v5570_v3 = vrot.slane %v7253_v16, 9 }
 0x2c0   : > { %v7308_v13 = vpack.c.b16 %v3425_v9, %v3424_v44  ;;  %v2038_v50 = vrot.slane %v2036_v4, 4  ;;  %v2616_v32 = vor.u32 %v2614_v63, %v7303_v31  ;;  %v2617_v30 = vrot.slane %v7303_v31, 4 }
 0x2c1   : > { %v2363_v27 = vmax.f32 %v2331_v36, 0.0  ;;  %v2044_v44 = vrot.slane %v2042_v10, 5  ;;  %v2091_v61 = vpop.f32.mrf.mxu3  ;;  %v3136_v22 = vrot.slane %v3135_v34, 4  ;;  %v2035_v47 = vsel %vm6160_vm7, %v2030_v48, %v7283_v40 }
 0x2c2   : > { %8901 = vst [vmem:[#allocation25_spill] sm:$0xff] %v7308_v13  ;;  %5592 = vmatmul.msk.bf16.gmra.mxu1 %vm3466_vm15, %v7308_v13  ;;  %v2039_v9 = vor.u32 %v2038_v50, %v7283_v40  ;;  %v2181_v16 = vrot.slane %v7271_v20, 5  ;;  %v2894_v63 = vsel %vm7105_vm1, %v2616_v32, %v2893_v42  ;;  %v2156_v1 = vadd.f32 %v2091_v61, %v6871_v28  ;;  %v7326_v59 = vld [vmem:[#allocation2 + $0x30] sm:$0xff] }
 0x2c3   : > { %v2395_v43 = vpack.c.bf16 %v2363_v27, %v2363_v27  ;;  %8902 = vst [vmem:[#allocation23_spill] sm:$0xff] %v7326_v59  ;;  %v7328_v4 = vld [vmem:[#allocation2 + $0x34] sm:$0xf]  ;;  %v2508_v31 = vsel %vm7018_vm14, 0, %v2507_v62  ;;  %v7334_v36 = vadd.f32 %v6908_v6, %v6929_v39  ;;  %v7336_v40 = vld [vmem:[#allocation2 + $0x38] sm:$0x1]  ;;  %v7340_v42 = vunpack.c.l.b16 %v2035_v47 }
 0x2c4   : > { %2895 = vst [vmem:[#allocation2 + $0x3c] sm:$0xf] %v2894_v63  ;;  %v3138_v20 = vshll.u32 %v7328_v4, 16  ;;  %v3142_v10 = vshrl.u32 %v7328_v4, 16  ;;  %v2296_v34 = vadd.f32 %v7274_v51, %v2156_v1  ;;  %5673 = vmatmul.msk.bf16.gmra.mxu2 %vm3466_vm15, %v7326_v59  ;;  %v3148_v48 = vshll.u32 %v7336_v40, 16 }
 0x2c5   : > { %v2619_v28 = vshrl.u32 %v2395_v43, 16  ;;  %v2182_v6 = vsel %vm6132_vm4, %v5570_v3, %v2181_v16  ;;  %2509 = vst [vmem:[#allocation2 + $0x5c] sm:$0x1] %v2508_v31  ;;  %v2040_v32 = vrot.slane %v2039_v9, 4  ;;  %v2183_v27 = vrot.slane %v2181_v16, 4 }
 0x2c6   : > { %v3140_v39 = vrot.slane %v3138_v20, 5  ;;  %v3144_v50 = vrot.slane %v3142_v10, 4  ;;  %v2622_v62 = vshll.u32 %v2395_v43, 16  ;;  %v2332_v47 = vadd.f32 %v7074_v14, %v2296_v34  ;;  %v7349_v63 = vpop.f32.mrf.mxu0  ;;  %v2897_v1 = vld [vmem:[#allocation2 + $0x44] sm:$0x1] }
 0x2c7   : > { %v2621_v61 = vrot.slane %v2619_v28, 7  ;;  %v2184_v51 = vrot.slane %v7292_v38, 5  ;;  %v3150_v59 = vrot.slane %v3148_v48, 5  ;;  %v2045_v3 = vsel %vm6160_vm7, %v2040_v32, %v2044_v44 }
 0x2c8   : > { %v3141_v19 = vsel %vm6160_vm7, %v3136_v22, %v3140_v39  ;;  %v3145_v13 = vor.u32 %v3144_v50, %v3140_v39  ;;  %v2364_v16 = vmax.f32 %v2332_v47, 0.0  ;;  %v2188_v20 = vunpack.c.l.b16 %v2182_v6  ;;  %v2454_v50 = vld [vmem:[#allocation2 + $0x60] sm:$0x1] }
 0x2c9   : > { %v2624_v31 = vor.u32 %v2622_v62, %v2621_v61  ;;  %v2626_v9 = vrot.slane %v2621_v61, 4  ;;  %v2093_v43 = vpop.f32.mrf.mxu3  ;;  %5586 = vmatmul.msk.bf16.gmra.mxu0 %vm743_vm3, %v6876_v45  ;;  %v3426_v28 = vunpack.c.l.b16 %v3141_v19  ;;  %v7358_v38 = vunpack.c.l.b16 %v2045_v3 }
 0x2ca   : > { %v3146_v10 = vrot.slane %v3145_v13, 4  ;;  %v2185_v22 = vsel %vm6132_vm4, %v2183_v27, %v2184_v51  ;;  %v2396_v48 = vpack.c.bf16 %v2364_v16, %v2364_v16  ;;  %v2157_v6 = vadd.f32 %v2093_v43, %v7240_v29 }
 0x2cb   : > { %v2625_v34 = vsel %vm7116_vm5, %v2617_v30, %v2624_v31  ;;  %v2898_v44 = vsel %vm7009_vm12, %v2626_v9, %v2897_v1  ;;  %v7367_v39 = vld [vmem:[#allocation2 + $0x3c] sm:$0xf]  ;;  %v2189_v45 = vunpack.c.l.b16 %v2185_v22  ;;  %v5685_v32 = vrot.slane %v7035_v23, 9  ;;  %v2900_v9 = vld [vmem:[#allocation2 + $0x48] sm:$0xf] }
 0x2cc   : > { %2896 = vst.msk [vmem:[#allocation2 + $0x40] sm:$0xf] %vm2418_vm9, %v2625_v34  ;;  %v3151_v19 = vsel %vm6160_vm7, %v3146_v10, %v3150_v59  ;;  %v3153_v13 = vshrl.u32 %v7367_v39, 16  ;;  %v2628_v30 = vshrl.u32 %v2396_v48, 16  ;;  %v2297_v27 = vadd.f32 %v7310_v37, %v2157_v6 }
 0x2cd   : > { %2899 = vst [vmem:[#allocation2 + $0x44] sm:$0x1] %v2898_v44  ;;  %v3427_v61 = vunpack.c.l.b16 %v3151_v19  ;;  %v2050_v29 = vpack.c.b16 %v7358_v38, %v7340_v42  ;;  %v2631_v62 = vshll.u32 %v2396_v48, 16  ;;  %v3156_v51 = vshll.u32 %v7367_v39, 16 }
 0x2ce   : > { %v3155_v47 = vrot.slane %v3153_v13, 4  ;;  %v2455_v59 = vsel %vm7009_vm12, 0, %v2454_v50  ;;  %v7380_v1 = vrot.slane %v2628_v30, 7  ;;  %v2333_v3 = vadd.f32 %v7074_v14, %v2297_v27  ;;  %5568 = vmatmul.msk.bf16.gmra.mxu3 %vm743_vm3, %v6895_v60  ;;  %v7387_v37 = vpop.f32.mrf.mxu0 }
 0x2cf   : > { %v7385_v23 = vpack.c.b16 %v3427_v61, %v3426_v28  ;;  %2456 = vst [vmem:[#allocation2 + $0x60] sm:$0x1] %v2455_v59  ;;  %v3846_v31 = vrot.slane %v7037_v25, 5  ;;  %v2190_v16 = vpack.c.b16 %v2189_v45, %v2188_v20  ;;  %v3158_v43 = vrot.slane %v3156_v51, 5 }
 0x2d0   : > { %v3849_v10 = vrot.slane %v7047_v2, 5  ;;  %v3867_v22 = vrot.slane %v7248_v11, 5  ;;  %v2633_v34 = vor.u32 %v2631_v62, %v7380_v1  ;;  %v2365_v44 = vmax.f32 %v2333_v3, 0.0 }
 0x2d1   : > { %8903 = vst [vmem:[#allocation27_spill] sm:$0xff] %v7385_v23  ;;  %v3847_v28 = vsel %vm6132_vm4, %v5685_v32, %v3846_v31  ;;  %v3870_v48 = vrot.slane %v7261_v55, 5  ;;  %v2634_v25 = vrot.slane %v7380_v1, 4  ;;  %v2096_v6 = vpop.f32.mrf.mxu3  ;;  %v3159_v20 = vor.u32 %v3158_v43, %v3155_v47  ;;  %v2510_v55 = vld [vmem:[#allocation2 + $0x68] sm:$0x1] }
 0x2d2   : > { %5593 = vmatmul.msk.bf16.gmra.mxu1 %vm3466_vm15, %v7385_v23  ;;  %v3848_v50 = vrot.slane %v3846_v31, 4  ;;  %v8904_v2 = vrot.slane %v7208_v5, 9  ;;  %v2901_v19 = vsel %vm7105_vm1, %v2633_v34, %v2900_v9  ;;  %v2397_v45 = vpack.c.bf16 %v2365_v44, %v2365_v44 }
 0x2d3   : > { %v2158_v13 = vadd.f32 %v2096_v6, %v6897_v21  ;;  %v7406_v30 = vld [vmem:[#allocation2 + $0x3c] sm:$0xff]  ;;  %v3869_v27 = vrot.slane %v3867_v22, 4  ;;  %2902 = vst [vmem:[#allocation2 + $0x48] sm:$0xf] %v2901_v19  ;;  %v3160_v62 = vrot.slane %v3159_v20, 4  ;;  %v3958_v51 = vunpack.c.l.b16 %v3847_v28 }
 0x2d4   : > { %v3868_v11 = vsel %vm6132_vm4, %v8904_v2, %v3867_v22  ;;  %v7408_v32 = vld [vmem:[#allocation2 + $0x40] sm:$0xf]  ;;  %v7410_v61 = vld [vmem:[#allocation2 + $0x44] sm:$0x1]  ;;  %v3850_v47 = vsel %vm6132_vm4, %v3848_v50, %v3849_v10  ;;  %v2636_v59 = vshrl.u32 %v2397_v45, 16  ;;  %v2639_v1 = vshll.u32 %v2397_v45, 16  ;;  %5674 = vmatmul.msk.bf16.gmra.mxu2 %vm3466_vm15, %v7406_v30 }
 0x2d5   : > { %v3162_v5 = vshll.u32 %v7408_v32, 16  ;;  %v2298_v21 = vadd.f32 %v7349_v63, %v2158_v13  ;;  %v3166_v3 = vshrl.u32 %v7408_v32, 16  ;;  %v3172_v9 = vshll.u32 %v7410_v61, 16  ;;  %v2904_v6 = vld [vmem:[#allocation2 + $0x50] sm:$0x1] }
 0x2d6   : > { %v2511_v43 = vsel %vm7018_vm14, 0, %v2510_v55  ;;  %v3959_v22 = vunpack.c.l.b16 %v3850_v47  ;;  %v2638_v34 = vrot.slane %v2636_v59, 7  ;;  %v7423_v44 = vpop.f32.mrf.mxu0  ;;  %v3871_v63 = vsel %vm6132_vm4, %v3869_v27, %v3870_v48 }
 0x2d7   : > { %v3164_v31 = vrot.slane %v3162_v5, 5  ;;  %v2334_v10 = vadd.f32 %v7074_v14, %v2298_v21  ;;  %v3168_v28 = vrot.slane %v3166_v3, 4  ;;  %2512 = vst [vmem:[#allocation2 + $0x68] sm:$0x1] %v2511_v43  ;;  %v3174_v50 = vrot.slane %v3172_v9, 5 }
 0x2d8   : > { %v3964_v2 = vunpack.c.l.b16 %v3868_v11  ;;  %v3965_v19 = vunpack.c.l.b16 %v3871_v63  ;;  %v2641_v45 = vor.u32 %v2639_v1, %v2638_v34  ;;  %v2643_v13 = vrot.slane %v2638_v34, 4 }
 0x2d9   : > { %v3165_v20 = vsel %vm6160_vm7, %v3160_v62, %v3164_v31  ;;  %v2366_v55 = vmax.f32 %v2334_v10, 0.0  ;;  %v3169_v5 = vor.u32 %v3168_v28, %v3164_v31  ;;  %v2098_v47 = vpop.f32.mrf.mxu3  ;;  %5587 = vmatmul.msk.bf16.gmra.mxu0 %vm743_vm3, %v2190_v16  ;;  %v7430_v59 = vpack.c.b16 %v3959_v22, %v3958_v51  ;;  %v2457_v16 = vld [vmem:[#allocation2 + $0x6c] sm:$0x1] }
 0x2da   : > { %v7432_v21 = vpack.c.b16 %v3965_v19, %v3964_v2  ;;  %v5689_v48 = vrot.slane %v7289_v56, 9  ;;  %v3874_v27 = vrot.slane %v7328_v4, 5  ;;  %v2642_v62 = vsel %vm7116_vm5, %v2634_v25, %v2641_v45  ;;  %v7441_v31 = vld [vmem:[#allocation2 + $0x48] sm:$0xf]  ;;  %v2907_v45 = vld [vmem:[#allocation2 + $0x54] sm:$0xf] }
 0x2db   : > { %v2905_v11 = vsel %vm7009_vm12, %v2643_v13, %v2904_v6  ;;  %v2398_v1 = vpack.c.bf16 %v2366_v55, %v2366_v55  ;;  %v2159_v3 = vadd.f32 %v2098_v47, %v7256_v0  ;;  %2903 = vst.msk [vmem:[#allocation2 + $0x4c] sm:$0xf] %vm2418_vm9, %v2642_v62  ;;  %v3170_v51 = vrot.slane %v3169_v5, 4 }
 0x2dc   : > { %v3177_v9 = vshrl.u32 %v7441_v31, 16  ;;  %v3180_v56 = vshll.u32 %v7441_v31, 16  ;;  %v2458_v4 = vsel %vm7009_vm12, 0, %v2457_v16  ;;  %2906 = vst [vmem:[#allocation2 + $0x50] sm:$0x1] %v2905_v11  ;;  %v3428_v22 = vunpack.c.l.b16 %v3165_v20 }
 0x2dd   : > { %v2645_v25 = vshrl.u32 %v2398_v1, 16  ;;  %v2299_v43 = vadd.f32 %v7387_v37, %v2159_v3  ;;  %v3875_v0 = vsel %vm6132_vm4, %v5689_v48, %v3874_v27  ;;  %v2648_v34 = vshll.u32 %v2398_v1, 16  ;;  %2459 = vst [vmem:[#allocation2 + $0x6c] sm:$0x1] %v2458_v4  ;;  %v2513_v16 = vld [vmem:[#allocation2 + $0x74] sm:$0x1] }
 0x2de   : > { %v3175_v10 = vsel %vm6160_vm7, %v3170_v51, %v3174_v50  ;;  %v3179_v28 = vrot.slane %v3177_v9, 4  ;;  %v3182_v63 = vrot.slane %v3180_v56, 5  ;;  %5569 = vmatmul.msk.bf16.gmra.mxu3 %vm743_vm3, %v2050_v29  ;;  %v7460_v20 = vpop.f32.mrf.mxu0  ;;  %v3876_v19 = vrot.slane %v3874_v27, 4 }
 0x2df   : > { %v7453_v6 = vrot.slane %v2645_v25, 7  ;;  %v2335_v2 = vadd.f32 %v7074_v14, %v2299_v43  ;;  %v3429_v37 = vunpack.c.l.b16 %v3175_v10  ;;  %v3877_v50 = vrot.slane %v7336_v40, 5 }
 0x2e0   : > { %v3183_v13 = vor.u32 %v3182_v63, %v3179_v28  ;;  %v5690_v55 = vrot.slane %v7367_v39, 9  ;;  %v3881_v5 = vrot.slane %v7408_v32, 5  ;;  %v3966_v25 = vunpack.c.l.b16 %v3875_v0  ;;  %v7496_v0 = vld [vmem:[%s8684_s2] ss:$0 sm:$0xff] }
 0x2e1   : > { %v2650_v47 = vor.u32 %v2648_v34, %v7453_v6  ;;  %v2651_v14 = vrot.slane %v7453_v6, 4  ;;  %v2367_v48 = vmax.f32 %v2335_v2, 0.0  ;;  %v7467_v42 = vpack.c.b16 %v3429_v37, %v3428_v22  ;;  %v2101_v38 = vpop.f32.mrf.mxu3 }
 0x2e2   : > { %v3184_v29 = vrot.slane %v3183_v13, 4  ;;  %v3878_v27 = vsel %vm6132_vm4, %v3876_v19, %v3877_v50  ;;  %v7473_v62 = vsel %vm6132_vm4, %v5690_v55, %v3881_v5  ;;  %v3883_v40 = vrot.slane %v3881_v5, 4  ;;  %v7480_v1 = vld [vmem:[#allocation2 + $0x48] sm:$0xff]  ;;  %v2911_v50 = vld [vmem:[#allocation2 + $0x5c] sm:$0x1] }
 0x2e3   : > { %8905 = vst [vmem:[#allocation30_spill] sm:$0xff] %v7467_v42  ;;  %v2908_v39 = vsel %vm7105_vm1, %v2650_v47, %v2907_v45  ;;  %v2399_v32 = vpack.c.bf16 %v2367_v48, %v2367_v48  ;;  %5594 = vmatmul.msk.bf16.gmra.mxu1 %vm3466_vm15, %v7467_v42  ;;  %v2160_v11 = vadd.f32 %v2101_v38, %v6910_v35  ;;  %v2996_v3 = vld [vmem:[#allocation2 + $0x4c] sm:$0xf]  ;;  %v3967_v51 = vunpack.c.l.b16 %v3878_v27  ;;  %v7482_v9 = vld [vmem:[#allocation2 + $0x50] sm:$0x1] }
 0x2e4   : > { %2909 = vst [vmem:[#allocation2 + $0x54] sm:$0xf] %v2908_v39  ;;  %v3186_v56 = vshll.u32 %v2996_v3, 16  ;;  %v3190_v4 = vshrl.u32 %v2996_v3, 16  ;;  %v3968_v43 = vunpack.c.l.b16 %v7473_v62  ;;  %5675 = vmatmul.msk.bf16.gmra.mxu2 %vm3466_vm15, %v7480_v1  ;;  %v3196_v35 = vshll.u32 %v7482_v9, 16 }
 0x2e5   : > { %v2653_v22 = vshrl.u32 %v2399_v32, 16  ;;  %v2656_v34 = vshll.u32 %v2399_v32, 16  ;;  %v2300_v10 = vadd.f32 %v7423_v44, %v2160_v11  ;;  %v2514_v6 = vsel %vm7018_vm14, 0, %v2513_v16 }
 0x2e6   : > { %v3188_v28 = vrot.slane %v3186_v56, 5  ;;  %v3192_v63 = vrot.slane %v3190_v4, 4  ;;  %v7491_v2 = vpack.c.b16 %v3967_v51, %v3966_v25  ;;  %v7499_v19 = vpop.f32.mrf.mxu0  ;;  %v3198_v45 = vrot.slane %v3196_v35, 5  ;;  %2515 = vst [vmem:[#allocation2 + $0x74] sm:$0x1] %v2514_v6  ;;  %v7513_v51 = vpop.f32.mrf.mxu1 }
 0x2e7   : > { %v2655_v37 = vrot.slane %v2653_v22, 7  ;;  %v2336_v44 = vadd.f32 %v7496_v0, %v2300_v10  ;;  %v3884_v13 = vrot.slane %v7410_v61, 5  ;;  %v5691_v47 = vrot.slane %v7441_v31, 9  ;;  %v7515_v31 = vpop.f32.mrf.mxu2  ;;  %v2460_v6 = vld [vmem:[#allocation2 + $0x78] sm:$0x1] }
 0x2e8   : > { %8906 = vst [vmem:[#allocation28_spill] sm:$0xff] %v7491_v2  ;;  %v3189_v55 = vsel %vm6160_vm7, %v3184_v29, %v3188_v28  ;;  %v3193_v5 = vor.u32 %v3192_v63, %v3188_v28  ;;  %v3888_v48 = vrot.slane %v2996_v3, 5 }
 0x2e9   : > { %v2658_v38 = vor.u32 %v2656_v34, %v2655_v37  ;;  %v2660_v27 = vrot.slane %v2655_v37, 4  ;;  %v2368_v62 = vmax.f32 %v2336_v44, 0.0  ;;  %v3430_v39 = vunpack.c.l.b16 %v3189_v55  ;;  %v2103_v32 = vpop.f32.mrf.mxu3  ;;  %5723 = vmatmul.msk.bf16.vlgmr.msrb.gmra.mxu0 %vm3466_vm15, %v7136_v18 }
 0x2ea   : > { %v3194_v11 = vrot.slane %v3193_v5, 4  ;;  %v3885_v61 = vsel %vm6132_vm4, %v3883_v40, %v3884_v13  ;;  %v7511_v16 = vsel %vm6132_vm4, %v5691_v47, %v3888_v48  ;;  %v3890_v29 = vrot.slane %v3888_v48, 4  ;;  %v2914_v47 = vld [vmem:[#allocation2 + $0x60] sm:$0xf] }
 0x2eb   : > { %v2659_v3 = vsel %vm7116_vm5, %v2651_v14, %v2658_v38  ;;  %v2912_v56 = vsel %vm7009_vm12, %v2660_v27, %v2911_v50  ;;  %v2400_v18 = vpack.c.bf16 %v2368_v62, %v2368_v62  ;;  %v2161_v4 = vadd.f32 %v2103_v32, %v7259_v49  ;;  %v7522_v25 = vld [vmem:[#allocation2 + $0x54] sm:$0xf] }
 0x2ec   : > { %2910 = vst.msk [vmem:[#allocation2 + $0x58] sm:$0xf] %vm2418_vm9, %v2659_v3  ;;  %v3199_v40 = vsel %vm6160_vm7, %v3194_v11, %v3198_v45  ;;  %v3201_v22 = vshrl.u32 %v7522_v25, 16  ;;  %v3204_v34 = vshll.u32 %v7522_v25, 16  ;;  %v3969_v10 = vunpack.c.l.b16 %v3885_v61 }
 0x2ed   : > { %2913 = vst [vmem:[#allocation2 + $0x5c] sm:$0x1] %v2912_v56  ;;  %v2662_v14 = vshrl.u32 %v2400_v18, 16  ;;  %v2665_v35 = vshll.u32 %v2400_v18, 16  ;;  %v2301_v28 = vadd.f32 %v7460_v20, %v2161_v4  ;;  %v3431_v63 = vunpack.c.l.b16 %v3199_v40 }
 0x2ee   : > { %v3203_v49 = vrot.slane %v3201_v22, 4  ;;  %v3206_v37 = vrot.slane %v3204_v34, 5  ;;  %v2461_v44 = vsel %vm7009_vm12, 0, %v2460_v6  ;;  %v7532_v13 = vpack.c.b16 %v3969_v10, %v3968_v43  ;;  %5702 = vmatmul.msk.bf16.vlgmr.msrb.gmra.mxu3 %vm3466_vm15, %v7430_v59  ;;  %v7541_v5 = vpop.f32.mrf.mxu0  ;;  %v3528_v56 = vpop.f32.mrf.mxu1 }
 0x2ef   : > { %v7534_v45 = vrot.slane %v2662_v14, 7  ;;  %v2337_v50 = vadd.f32 %v7496_v0, %v2301_v28  ;;  %v7539_v55 = vpack.c.b16 %v3431_v63, %v3430_v39  ;;  %2462 = vst [vmem:[#allocation2 + $0x78] sm:$0x1] %v2461_v44  ;;  %v3891_v20 = vrot.slane %v7482_v9, 5  ;;  %v3748_v18 = vpop.f32.mrf.mxu2 }
 0x2f0   : > { %8907 = vst [vmem:[#allocation44_spill] sm:$0xff] %v7532_v13  ;;  %v3207_v43 = vor.u32 %v3206_v37, %v3203_v49  ;;  %v2007_v62 = vadd.f32 %v6919_v7, %v7334_v36  ;;  %v7557_v40 = vadd.f32 %v3748_v18, %v3528_v56  ;;  %v3970_v22 = vunpack.c.l.b16 %v7511_v16 }
 0x2f1   : > { %8908 = vst [vmem:[#allocation16_spill] sm:$0xff] %v7539_v55  ;;  %v2667_v48 = vor.u32 %v2665_v35, %v7534_v45  ;;  %v2369_v38 = vmax.f32 %v2337_v50, 0.0  ;;  %v3892_v27 = vsel %vm6132_vm4, %v3890_v29, %v3891_v20  ;;  %v2106_v32 = vpop.f32.mrf.mxu3  ;;  %v5692_v29 = vrot.slane %v7522_v25, 9  ;;  %v2516_v35 = vld [vmem:[#allocation2 + $0x80] sm:$0x1] }
 0x2f2   : > { %v3971_v59 = vunpack.c.l.b16 %v3892_v27  ;;  %v2162_v9 = vadd.f32 %v2106_v32, %v6924_v17  ;;  %v3208_v17 = vrot.slane %v3207_v43, 4  ;;  %v2517_v25 = vsel %vm7018_vm14, 0, %v2516_v35  ;;  %v2918_v20 = vld [vmem:[#allocation2 + $0x68] sm:$0x1] }
 0x2f3   : > { %v2915_v39 = vsel %vm7105_vm1, %v2667_v48, %v2914_v47  ;;  %v2401_v11 = vpack.c.bf16 %v2369_v38, %v2369_v38  ;;  %5595 = vmatmul.msk.bf16.gmra.mxu1 %vm3466_vm15, %v7539_v55  ;;  %v7554_v61 = vld [vmem:[#allocation2 + $0x54] sm:$0xff]  ;;  %2518 = vst [vmem:[#allocation2 + $0x80] sm:$0x1] %v2517_v25  ;;  %v2668_v50 = vrot.slane %v7534_v45, 4 }
 0x2f4   : > { %v2999_v3 = vld [vmem:[#allocation2 + $0x58] sm:$0xf]  ;;  %2916 = vst [vmem:[#allocation2 + $0x60] sm:$0xf] %v2915_v39  ;;  %v3000_v7 = vld [vmem:[#allocation2 + $0x5c] sm:$0x1]  ;;  %v2302_v10 = vadd.f32 %v7499_v19, %v2162_v9  ;;  %5676 = vmatmul.msk.bf16.gmra.mxu2 %vm3466_vm15, %v7554_v61  ;;  %v7565_v6 = vpack.c.b16 %v3971_v59, %v3970_v22 }
 0x2f5   : > { %v3210_v36 = vshll.u32 %v2999_v3, 16  ;;  %v3214_v4 = vshrl.u32 %v2999_v3, 16  ;;  %v2670_v34 = vshrl.u32 %v2401_v11, 16  ;;  %v3220_v14 = vshll.u32 %v3000_v7, 16 }
 0x2f6   : > { %8909 = vst [vmem:[#allocation20_spill] sm:$0xff] %v7565_v6  ;;  %v2673_v37 = vshll.u32 %v2401_v11, 16  ;;  %v2338_v16 = vadd.f32 %v7496_v0, %v2302_v10  ;;  %v7568_v44 = vpop.f32.mrf.mxu0  ;;  %v3895_v19 = vrot.slane %v2999_v3, 5  ;;  %v3898_v59 = vrot.slane %v3000_v7, 5 }
 0x2f7   : > { %v3212_v28 = vrot.slane %v3210_v36, 5  ;;  %v3216_v63 = vrot.slane %v3214_v4, 4  ;;  %v2672_v49 = vrot.slane %v2670_v34, 7  ;;  %v3222_v38 = vrot.slane %v3220_v14, 5 }
 0x2f8   : > { %v2370_v32 = vmax.f32 %v2338_v16, 0.0  ;;  %v3896_v3 = vsel %vm6132_vm4, %v5692_v29, %v3895_v19  ;;  %v3897_v45 = vrot.slane %v3895_v19, 4 }
 0x2f9   : > { %v3213_v47 = vsel %vm6160_vm7, %v3208_v17, %v3212_v28  ;;  %v3217_v48 = vor.u32 %v3216_v63, %v3212_v28  ;;  %v2675_v43 = vor.u32 %v2673_v37, %v2672_v49  ;;  %v2677_v27 = vrot.slane %v2672_v49, 4  ;;  %v2108_v39 = vpop.f32.mrf.mxu3  ;;  %5724 = vmatmul.msk.bf16.gmra.mxu0 %vm3466_vm15, %v7177_v57  ;;  %v2463_v28 = vld [vmem:[#allocation2 + $0x84] sm:$0x1] }
 0x2fa   : > { %v3432_v9 = vunpack.c.l.b16 %v3213_v47  ;;  %v2402_v36 = vpack.c.bf16 %v2370_v32, %v2370_v32  ;;  %v2163_v4 = vadd.f32 %v2108_v39, %v2007_v62  ;;  %v3899_v29 = vsel %vm6132_vm4, %v3897_v45, %v3898_v59  ;;  %v2921_v47 = vld [vmem:[#allocation2 + $0x6c] sm:$0xf] }
 0x2fb   : > { %v3218_v11 = vrot.slane %v3217_v48, 4  ;;  %v2676_v56 = vsel %vm7116_vm5, %v2668_v50, %v2675_v43  ;;  %v2919_v18 = vsel %vm7009_vm12, %v2677_v27, %v2918_v20  ;;  %v3001_v22 = vld [vmem:[#allocation2 + $0x60] sm:$0xf]  ;;  %v2464_v25 = vsel %vm7009_vm12, 0, %v2463_v28 }
 0x2fc   : > { %2917 = vst.msk [vmem:[#allocation2 + $0x64] sm:$0xf] %vm2418_vm9, %v2676_v56  ;;  %v3225_v7 = vshrl.u32 %v3001_v22, 16  ;;  %v3228_v34 = vshll.u32 %v3001_v22, 16  ;;  %v2679_v10 = vshrl.u32 %v2402_v36, 16  ;;  %v2682_v17 = vshll.u32 %v2402_v36, 16 }
 0x2fd   : > { %v3223_v57 = vsel %vm6160_vm7, %v3218_v11, %v3222_v38  ;;  %2920 = vst [vmem:[#allocation2 + $0x68] sm:$0x1] %v2919_v18  ;;  %v2303_v14 = vadd.f32 %v7541_v5, %v2163_v4  ;;  %v3972_v49 = vunpack.c.l.b16 %v3896_v3  ;;  %v3973_v5 = vunpack.c.l.b16 %v3899_v29 }
 0x2fe   : > { %v3433_v35 = vunpack.c.l.b16 %v3223_v57  ;;  %v3227_v63 = vrot.slane %v3225_v7, 4  ;;  %v3230_v62 = vrot.slane %v3228_v34, 5  ;;  %v2681_v37 = vrot.slane %v2679_v10, 7  ;;  %5703 = vmatmul.msk.bf16.gmra.mxu3 %vm3466_vm15, %v7170_v54  ;;  %v7594_v50 = vpop.f32.mrf.mxu0  ;;  %2465 = vst [vmem:[#allocation2 + $0x84] sm:$0x1] %v2464_v25 }
 0x2ff   : > { %v2339_v16 = vadd.f32 %v7496_v0, %v2303_v14  ;;  %v1875_v20 = vadd.f32 %v6922_v33, %v6943_v58  ;;  %v7598_v43 = vpack.c.b16 %v3973_v5, %v3972_v49  ;;  %v5693_v33 = vrot.slane %v3001_v22, 9  ;;  %v2519_v34 = vld [vmem:[#allocation2 + $0x8c] sm:$0x1] }
 0x300   : > { %v7592_v19 = vpack.c.b16 %v3433_v35, %v3432_v9  ;;  %v2684_v48 = vor.u32 %v2682_v17, %v2681_v37  ;;  %v3231_v32 = vor.u32 %v3230_v62, %v3227_v63  ;;  %v2685_v36 = vrot.slane %v2681_v37, 4 }
 0x301   : > { %v2371_v38 = vmax.f32 %v2339_v16, 0.0  ;;  %8911 = vst [vmem:[#allocation42_spill] sm:$0xff] %v7598_v43  ;;  %v2111_v27 = vpop.f32.mrf.mxu3  ;;  %v2009_v58 = vadd.f32 %v6933_v52, %v1875_v20  ;;  %v2520_v22 = vsel %vm7018_vm14, 0, %v2519_v34  ;;  %v2466_v34 = vld [vmem:[#allocation2 + $0x90] sm:$0x1] }
 0x302   : > { %8910 = vst [vmem:[#allocation32_spill] sm:$0xff] %v7592_v19  ;;  %v2922_v59 = vsel %vm7105_vm1, %v2684_v48, %v2921_v47  ;;  %v2164_v11 = vadd.f32 %v2111_v27, %v6936_v53  ;;  %v3232_v28 = vrot.slane %v3231_v32, 4 }
 0x303   : > { %v2403_v39 = vpack.c.bf16 %v2371_v38, %v2371_v38  ;;  %5596 = vmatmul.msk.bf16.gmra.mxu1 %vm3466_vm15, %v7592_v19  ;;  %v7605_v9 = vld [vmem:[#allocation2 + $0x60] sm:$0xff]  ;;  %2923 = vst [vmem:[#allocation2 + $0x6c] sm:$0xf] %v2922_v59 }
 0x304   : > { %v3002_v3 = vld [vmem:[#allocation2 + $0x64] sm:$0xf]  ;;  %v3003_v45 = vld [vmem:[#allocation2 + $0x68] sm:$0x1]  ;;  %v2304_v57 = vadd.f32 %v7568_v44, %v2164_v11  ;;  %5677 = vmatmul.msk.bf16.gmra.mxu2 %vm3466_vm15, %v7605_v9  ;;  %2521 = vst [vmem:[#allocation2 + $0x8c] sm:$0x1] %v2520_v22 }
 0x305   : > { %v3234_v56 = vshll.u32 %v3002_v3, 16  ;;  %v3238_v18 = vshrl.u32 %v3002_v3, 16  ;;  %v2687_v4 = vshrl.u32 %v2403_v39, 16  ;;  %v3244_v7 = vshll.u32 %v3003_v45, 16  ;;  %v2925_v44 = vld [vmem:[#allocation2 + $0x74] sm:$0x1] }
 0x306   : > { %v3902_v10 = vrot.slane %v3002_v3, 5  ;;  %v2690_v17 = vshll.u32 %v2403_v39, 16  ;;  %v2340_v14 = vadd.f32 %v7496_v0, %v2304_v57  ;;  %v7614_v35 = vpop.f32.mrf.mxu0  ;;  %v3905_v49 = vrot.slane %v3003_v45, 5 }
 0x307   : > { %v3236_v53 = vrot.slane %v3234_v56, 5  ;;  %v3240_v29 = vrot.slane %v3238_v18, 4  ;;  %v2689_v52 = vrot.slane %v2687_v4, 7  ;;  %v3246_v20 = vrot.slane %v3244_v7, 5 }
 0x308   : > { %v3903_v62 = vsel %vm6132_vm4, %v5693_v33, %v3902_v10  ;;  %v3904_v25 = vrot.slane %v3902_v10, 4  ;;  %v2372_v5 = vmax.f32 %v2340_v14, 0.0 }
 0x309   : > { %v3241_v63 = vor.u32 %v3240_v29, %v3236_v53  ;;  %v2692_v37 = vor.u32 %v2690_v17, %v2689_v52  ;;  %v2694_v16 = vrot.slane %v2689_v52, 4  ;;  %v2113_v47 = vpop.f32.mrf.mxu3  ;;  %5725 = vmatmul.msk.bf16.gmra.mxu0 %vm3466_vm15, %v7246_v15  ;;  %v3237_v48 = vsel %vm6160_vm7, %v3232_v28, %v3236_v53  ;;  %v8913_v17 = vld [vmem:[#allocation33_spill] sm:$0xff]  ;;  %v8959_v24 = vld [vmem:[#allocation32_spill] sm:$0xff] }
 0x30a   : > { %v3906_v27 = vsel %vm6132_vm4, %v3904_v25, %v3905_v49  ;;  %v3974_v32 = vunpack.c.l.b16 %v3903_v62  ;;  %v2404_v11 = vpack.c.bf16 %v2372_v5, %v2372_v5  ;;  %v2165_v3 = vadd.f32 %v2113_v47, %v2009_v58  ;;  %v7628_v33 = vld [vmem:[#allocation2 + $0x6c] sm:$0xf]  ;;  %v2928_v25 = vld [vmem:[#allocation2 + $0x78] sm:$0xf]  ;;  %v7649_v49 = vpop.f32.mrf.mxu2 }
 0x30b   : > { %v3242_v38 = vrot.slane %v3241_v63, 4  ;;  %v2693_v59 = vsel %vm7116_vm5, %v2685_v36, %v2692_v37  ;;  %v2926_v39 = vsel %vm7009_vm12, %v2694_v16, %v2925_v44  ;;  %v3249_v45 = vshrl.u32 %v7628_v33, 16  ;;  %v8915_v44 = vld [vmem:[#allocation50_spill] sm:$0xff]  ;;  %v8916_v63 = vld [vmem:[#allocation47_spill] sm:$0xff] }
 0x30c   : > { %2924 = vst.msk [vmem:[#allocation2 + $0x70] sm:$0xf] %vm2418_vm9, %v2693_v59  ;;  %v3252_v56 = vshll.u32 %v7628_v33, 16  ;;  %v3975_v18 = vunpack.c.l.b16 %v3906_v27  ;;  %v2696_v4 = vshrl.u32 %v2404_v11, 16  ;;  %v2305_v36 = vadd.f32 %v7594_v50, %v2165_v3 }
 0x30d   : > { %v3247_v15 = vsel %vm6160_vm7, %v3242_v38, %v3246_v20  ;;  %2927 = vst [vmem:[#allocation2 + $0x74] sm:$0x1] %v2926_v39  ;;  %v3434_v57 = vunpack.c.l.b16 %v3237_v48  ;;  %v2699_v58 = vshll.u32 %v2404_v11, 16  ;;  %v3251_v53 = vrot.slane %v3249_v45, 4  ;;  %v8917_v38 = vld [vmem:[#allocation49_spill] sm:$0xff]  ;;  %v8918_v11 = vld [vmem:[#allocation48_spill] sm:$0xff] }
 0x30e   : > { %v3435_v7 = vunpack.c.l.b16 %v3247_v15  ;;  %v2467_v29 = vsel %vm7009_vm12, 0, %v2466_v34  ;;  %v7638_v22 = vpack.c.b16 %v3975_v18, %v3974_v32  ;;  %v2698_v10 = vrot.slane %v2696_v4, 7  ;;  %5704 = vmatmul.msk.bf16.gmra.mxu3 %vm3466_vm15, %v8913_v17  ;;  %v7645_v28 = vpop.f32.mrf.mxu0 }
 0x30f   : > { %v2341_v52 = vadd.f32 %v7496_v0, %v2305_v36  ;;  %v3254_v50 = vrot.slane %v3252_v56, 5  ;;  %2468 = vst [vmem:[#allocation2 + $0x90] sm:$0x1] %v2467_v29  ;;  %v1877_v62 = vadd.f32 %v8916_v63, %v8915_v44  ;;  %v5694_v20 = vrot.slane %v7628_v33, 9  ;;  %v2932_v63 = vld [vmem:[#allocation2 + $0x80] sm:$0x1] }
 0x310   : > { %8912 = vst [vmem:[#allocation18_spill] sm:$0xff] %v7638_v22  ;;  %v7643_v14 = vpack.c.b16 %v3435_v7, %v3434_v57  ;;  %v2701_v37 = vor.u32 %v2699_v58, %v2698_v10  ;;  %v2702_v33 = vrot.slane %v2698_v10, 4  ;;  %v2522_v57 = vld [vmem:[#allocation2 + $0x98] sm:$0x1]  ;;  %v7663_v7 = vpop.f32.mrf.mxu1 }
 0x311   : > { %v2373_v16 = vmax.f32 %v2341_v52, 0.0  ;;  %v2116_v5 = vpop.f32.mrf.mxu3  ;;  %v3255_v39 = vor.u32 %v3254_v50, %v3251_v53  ;;  %v2011_v3 = vadd.f32 %v8918_v11, %v1877_v62  ;;  %v2523_v53 = vsel %vm7018_vm14, 0, %v2522_v57 }
 0x312   : > { %8914 = vst [vmem:[#allocation45_spill] sm:$0xff] %v7643_v14  ;;  %v2929_v47 = vsel %vm7105_vm1, %v2701_v37, %v2928_v25  ;;  %v2166_v27 = vadd.f32 %v2116_v5, %v8917_v38 }
 0x313   : > { %v2405_v48 = vpack.c.bf16 %v2373_v16, %v2373_v16  ;;  %5597 = vmatmul.msk.bf16.gmra.mxu1 %vm3466_vm15, %v7643_v14  ;;  %v7657_v32 = vld [vmem:[#allocation2 + $0x6c] sm:$0xff]  ;;  %2930 = vst [vmem:[#allocation2 + $0x78] sm:$0xf] %v2929_v47 }
 0x314   : > { %v3005_v59 = vld [vmem:[#allocation2 + $0x70] sm:$0xf]  ;;  %v3006_v15 = vld [vmem:[#allocation2 + $0x74] sm:$0x1]  ;;  %v2306_v4 = vadd.f32 %v7614_v35, %v2166_v27  ;;  %5678 = vmatmul.msk.bf16.gmra.mxu2 %vm3466_vm15, %v7657_v32  ;;  %v3256_v35 = vrot.slane %v3255_v39, 4 }
 0x315   : > { %v3258_v45 = vshll.u32 %v3005_v59, 16  ;;  %v3262_v56 = vshrl.u32 %v3005_v59, 16  ;;  %v2704_v18 = vshrl.u32 %v2405_v48, 16  ;;  %v3268_v36 = vshll.u32 %v3006_v15, 16  ;;  %2524 = vst [vmem:[#allocation2 + $0x98] sm:$0x1] %v2523_v53 }
 0x316   : > { %v3909_v29 = vrot.slane %v3005_v59, 5  ;;  %v2707_v50 = vshll.u32 %v2405_v48, 16  ;;  %v2342_v10 = vadd.f32 %v7496_v0, %v2306_v4  ;;  %v7668_v44 = vpop.f32.mrf.mxu0  ;;  %v3753_v62 = vpop.f32.mrf.mxu2  ;;  %v3912_v5 = vrot.slane %v3006_v15, 5  ;;  %v8919_v48 = vld [vmem:[#allocation23_spill] sm:$0xff] }
 0x317   : > { %v3260_v34 = vrot.slane %v3258_v45, 5  ;;  %v3264_v58 = vrot.slane %v3262_v56, 4  ;;  %v2706_v52 = vrot.slane %v2704_v18, 7  ;;  %v3270_v59 = vrot.slane %v3268_v36, 5 }
 0x318   : > { %v3910_v37 = vsel %vm6132_vm4, %v5694_v20, %v3909_v29  ;;  %v3911_v16 = vrot.slane %v3909_v29, 4  ;;  %v2374_v27 = vmax.f32 %v2342_v10, 0.0 }
 0x319   : > { %v3265_v25 = vor.u32 %v3264_v58, %v3260_v34  ;;  %v2709_v47 = vor.u32 %v2707_v50, %v2706_v52  ;;  %v2711_v38 = vrot.slane %v2706_v52, 4  ;;  %v2118_v11 = vpop.f32.mrf.mxu3  ;;  %5726 = vmatmul.msk.bf16.gmra.mxu0 %vm3466_vm15, %v8919_v48  ;;  %v3261_v39 = vsel %vm6160_vm7, %v3256_v35, %v3260_v34  ;;  %v2469_v35 = vld [vmem:[#allocation2 + $0x9c] sm:$0x1]  ;;  %v2935_v48 = vld [vmem:[#allocation2 + $0x84] sm:$0xf] }
 0x31a   : > { %v3913_v56 = vsel %vm6132_vm4, %v3911_v16, %v3912_v5  ;;  %v3976_v18 = vunpack.c.l.b16 %v3910_v37  ;;  %v2406_v4 = vpack.c.bf16 %v2374_v27, %v2374_v27  ;;  %v2167_v36 = vadd.f32 %v2118_v11, %v2011_v3  ;;  %v7682_v57 = vld [vmem:[#allocation2 + $0x78] sm:$0xf]  ;;  %v8922_v27 = vld [vmem:[#allocation54_spill] sm:$0xff] }
 0x31b   : > { %v3266_v45 = vrot.slane %v3265_v25, 4  ;;  %v2710_v20 = vsel %vm7116_vm5, %v2702_v33, %v2709_v47  ;;  %v2933_v15 = vsel %vm7009_vm12, %v2711_v38, %v2932_v63  ;;  %v3273_v58 = vshrl.u32 %v7682_v57, 16 }
 0x31c   : > { %2931 = vst.msk [vmem:[#allocation2 + $0x7c] sm:$0xf] %vm2418_vm9, %v2710_v20  ;;  %v3276_v53 = vshll.u32 %v7682_v57, 16  ;;  %v3977_v29 = vunpack.c.l.b16 %v3913_v56  ;;  %v2713_v52 = vshrl.u32 %v2406_v4, 16  ;;  %v2307_v33 = vadd.f32 %v7645_v28, %v2167_v36  ;;  %v8924_v36 = vld [vmem:[#allocation53_spill] sm:$0xff] }
 0x31d   : > { %v3271_v34 = vsel %vm6160_vm7, %v3266_v45, %v3270_v59  ;;  %2934 = vst [vmem:[#allocation2 + $0x80] sm:$0x1] %v2933_v15  ;;  %v3436_v50 = vunpack.c.l.b16 %v3261_v39  ;;  %v2716_v3 = vshll.u32 %v2406_v4, 16  ;;  %v2470_v25 = vsel %vm7009_vm12, 0, %v2469_v35  ;;  %v8923_v59 = vld [vmem:[#allocation51_spill] sm:$0xff] }
 0x31e   : > { %v3437_v10 = vunpack.c.l.b16 %v3271_v34  ;;  %v3533_v63 = vpop.f32.mrf.mxu1  ;;  %v7692_v37 = vpack.c.b16 %v3977_v29, %v3976_v18  ;;  %v2715_v16 = vrot.slane %v2713_v52, 7  ;;  %v2343_v5 = vadd.f32 %v7496_v0, %v2307_v33  ;;  %5705 = vmatmul.msk.bf16.gmra.mxu3 %vm3466_vm15, %v7432_v21  ;;  %v7701_v28 = vpop.f32.mrf.mxu0  ;;  %2471 = vst [vmem:[#allocation2 + $0x9c] sm:$0x1] %v2470_v25  ;;  %v8925_v33 = vld [vmem:[#allocation52_spill] sm:$0xff] }
 0x31f   : > { %v7695_v47 = vadd.f32 %v3753_v62, %v3533_v63  ;;  %v1879_v11 = vadd.f32 %v8923_v59, %v8922_v27  ;;  %v3755_v39 = vpop.f32.mrf.mxu2  ;;  %v3275_v45 = vrot.slane %v3273_v58, 4  ;;  %v3278_v56 = vrot.slane %v3276_v53, 5 }
 0x320   : > { %8920 = vst [vmem:[#allocation43_spill] sm:$0xff] %v7692_v37  ;;  %v7699_v38 = vpack.c.b16 %v3437_v10, %v3436_v50  ;;  %v2718_v18 = vor.u32 %v2716_v3, %v2715_v16  ;;  %v2375_v20 = vmax.f32 %v2343_v5, 0.0  ;;  %v2525_v5 = vld [vmem:[#allocation2 + $0xa4] sm:$0x1]  ;;  %v5695_v27 = vrot.slane %v7682_v57, 9 }
 0x321   : > { %v2121_v15 = vpop.f32.mrf.mxu3  ;;  %v2013_v50 = vadd.f32 %v8925_v33, %v1879_v11  ;;  %v3279_v53 = vor.u32 %v3278_v56, %v3275_v45  ;;  %v2526_v11 = vsel %vm7018_vm14, 0, %v2525_v5  ;;  %v2719_v60 = vrot.slane %v2715_v16, 4 }
 0x322   : > { %8921 = vst [vmem:[#allocation35_spill] sm:$0xff] %v7699_v38  ;;  %v2936_v62 = vsel %vm7105_vm1, %v2718_v18, %v2935_v48  ;;  %v2407_v4 = vpack.c.bf16 %v2375_v20, %v2375_v20  ;;  %v2168_v34 = vadd.f32 %v2121_v15, %v8924_v36  ;;  %v2939_v36 = vld [vmem:[#allocation2 + $0x8c] sm:$0x1] }
 0x323   : > { %5598 = vmatmul.msk.bf16.gmra.mxu1 %vm3466_vm15, %v7699_v38  ;;  %v7710_v29 = vld [vmem:[#allocation2 + $0x78] sm:$0xff]  ;;  %2937 = vst [vmem:[#allocation2 + $0x84] sm:$0xf] %v2936_v62  ;;  %v3280_v33 = vrot.slane %v3279_v53, 4 }
 0x324   : > { %v3008_v52 = vld [vmem:[#allocation2 + $0x7c] sm:$0xf]  ;;  %v3009_v58 = vld [vmem:[#allocation2 + $0x80] sm:$0x1]  ;;  %v2721_v3 = vshrl.u32 %v2407_v4, 16  ;;  %v2308_v63 = vadd.f32 %v7668_v44, %v2168_v34  ;;  %5679 = vmatmul.msk.bf16.gmra.mxu2 %vm3466_vm15, %v7710_v29  ;;  %v2724_v56 = vshll.u32 %v2407_v4, 16 }
 0x325   : > { %v3282_v10 = vshll.u32 %v3008_v52, 16  ;;  %v3286_v35 = vshrl.u32 %v3008_v52, 16  ;;  %v3292_v25 = vshll.u32 %v3009_v58, 16  ;;  %v3916_v20 = vrot.slane %v3008_v52, 5  ;;  %2527 = vst [vmem:[#allocation2 + $0xa4] sm:$0x1] %v2526_v11 }
 0x326   : > { %v3535_v59 = vpop.f32.mrf.mxu1  ;;  %v2723_v45 = vrot.slane %v2721_v3, 7  ;;  %v2344_v15 = vadd.f32 %v7496_v0, %v2308_v63  ;;  %v7722_v44 = vpop.f32.mrf.mxu0  ;;  %v3919_v11 = vrot.slane %v3009_v58, 5 }
 0x327   : > { %v3284_v48 = vrot.slane %v3282_v10, 5  ;;  %v3288_v18 = vrot.slane %v3286_v35, 4  ;;  %v7720_v62 = vadd.f32 %v3755_v39, %v3535_v59  ;;  %v3758_v34 = vpop.f32.mrf.mxu2  ;;  %v3917_v10 = vsel %vm6132_vm4, %v5695_v27, %v3916_v20 }
 0x328   : > { %v3918_v35 = vrot.slane %v3916_v20, 4  ;;  %v2726_v5 = vor.u32 %v2724_v56, %v2723_v45  ;;  %v2728_v52 = vrot.slane %v2723_v45, 4  ;;  %v2376_v3 = vmax.f32 %v2344_v15, 0.0  ;;  %v2472_v15 = vld [vmem:[#allocation2 + $0xa8] sm:$0x1] }
 0x329   : > { %v3289_v57 = vor.u32 %v3288_v18, %v3284_v48  ;;  %v2123_v4 = vpop.f32.mrf.mxu3  ;;  %5727 = vmatmul.msk.bf16.gmra.mxu0 %vm3466_vm15, %v7406_v30  ;;  %v3285_v39 = vsel %vm6160_vm7, %v3280_v33, %v3284_v48  ;;  %v3294_v59 = vrot.slane %v3292_v25, 5 }
 0x32a   : > { %v2727_v53 = vsel %vm7116_vm5, %v2719_v60, %v2726_v5  ;;  %v2940_v27 = vsel %vm7009_vm12, %v2728_v52, %v2939_v36  ;;  %v2408_v16 = vpack.c.bf16 %v2376_v3, %v2376_v3  ;;  %v2169_v18 = vadd.f32 %v2123_v4, %v2013_v50  ;;  %v7734_v20 = vld [vmem:[#allocation2 + $0x84] sm:$0xf] }
 0x32b   : > { %v3290_v63 = vrot.slane %v3289_v57, 4  ;;  %2938 = vst.msk [vmem:[#allocation2 + $0x88] sm:$0xf] %vm2418_vm9, %v2727_v53  ;;  %v3297_v48 = vshrl.u32 %v7734_v20, 16  ;;  %v3300_v25 = vshll.u32 %v7734_v20, 16  ;;  %v3920_v58 = vsel %vm6132_vm4, %v3918_v35, %v3919_v11 }
 0x32c   : > { %2941 = vst [vmem:[#allocation2 + $0x8c] sm:$0x1] %v2940_v27  ;;  %v2730_v60 = vshrl.u32 %v2408_v16, 16  ;;  %v2309_v45 = vadd.f32 %v7701_v28, %v2169_v18  ;;  %v3438_v56 = vunpack.c.l.b16 %v3285_v39  ;;  %v2733_v36 = vshll.u32 %v2408_v16, 16  ;;  %v8927_v39 = vld [vmem:[#allocation36_spill] sm:$0xff] }
 0x32d   : > { %v3295_v30 = vsel %vm6160_vm7, %v3290_v63, %v3294_v59  ;;  %v2473_v57 = vsel %vm7009_vm12, 0, %v2472_v15  ;;  %v3978_v5 = vunpack.c.l.b16 %v3917_v10  ;;  %v3979_v52 = vunpack.c.l.b16 %v3920_v58  ;;  %v8928_v59 = vld [vmem:[#allocation55_spill] sm:$0xff]  ;;  %v2942_v53 = vld [vmem:[#allocation2 + $0x90] sm:$0xf] }
 0x32e   : > { %v3439_v50 = vunpack.c.l.b16 %v3295_v30  ;;  %v3538_v33 = vpop.f32.mrf.mxu1  ;;  %v7746_v3 = vrot.slane %v2730_v60, 7  ;;  %v2345_v4 = vadd.f32 %v7496_v0, %v2309_v45  ;;  %5706 = vmatmul.msk.bf16.gmra.mxu3 %vm3466_vm15, %v7491_v2  ;;  %v7755_v35 = vpop.f32.mrf.mxu0  ;;  %2474 = vst [vmem:[#allocation2 + $0xa8] sm:$0x1] %v2473_v57  ;;  %v1881_v11 = vadd.f32 %v8928_v59, %v8927_v39 }
 0x32f   : > { %v7749_v63 = vadd.f32 %v3758_v34, %v3538_v33  ;;  %v3760_v10 = vpop.f32.mrf.mxu2  ;;  %v3299_v27 = vrot.slane %v3297_v48, 4  ;;  %v3302_v16 = vrot.slane %v3300_v25, 5  ;;  %v7759_v18 = vpack.c.b16 %v3979_v52, %v3978_v5  ;;  %v8931_v48 = vld [vmem:[#allocation56_spill] sm:$0xff] }
 0x330   : > { %v7753_v28 = vpack.c.b16 %v3439_v50, %v3438_v56  ;;  %v2735_v34 = vor.u32 %v2733_v36, %v7746_v3  ;;  %v2377_v30 = vmax.f32 %v2345_v4, 0.0  ;;  %v8930_v56 = vld [vmem:[#allocation57_spill] sm:$0xff]  ;;  %v2015_v25 = vadd.f32 %v8931_v48, %v1881_v11 }
 0x331   : > { %8929 = vst [vmem:[#allocation50_spill] sm:$0xff] %v7759_v18  ;;  %v2126_v58 = vpop.f32.mrf.mxu3  ;;  %v3303_v5 = vor.u32 %v3302_v16, %v3299_v27 }
 0x332   : > { %8926 = vst [vmem:[#allocation33_spill] sm:$0xff] %v7753_v28  ;;  %v2943_v60 = vsel %vm7105_vm1, %v2735_v34, %v2942_v53  ;;  %v2409_v45 = vpack.c.bf16 %v2377_v30, %v2377_v30  ;;  %v2170_v50 = vadd.f32 %v2126_v58, %v8930_v56  ;;  %v7767_v15 = vld [vmem:[#allocation2 + $0x84] sm:$0xff]  ;;  %v2528_v53 = vld [vmem:[#allocation2 + $0xb0] sm:$0x1]  ;;  %v5696_v34 = vrot.slane %v7734_v20, 9 }
 0x333   : > { %5599 = vmatmul.msk.bf16.gmra.mxu1 %vm3466_vm15, %v7753_v28  ;;  %v3011_v33 = vld [vmem:[#allocation2 + $0x88] sm:$0xf]  ;;  %2944 = vst [vmem:[#allocation2 + $0x90] sm:$0xf] %v2943_v60  ;;  %v3012_v57 = vld [vmem:[#allocation2 + $0x8c] sm:$0x1] }
 0x334   : > { %v3306_v36 = vshll.u32 %v3011_v33, 16  ;;  %v3310_v52 = vshrl.u32 %v3011_v33, 16  ;;  %v2738_v4 = vshrl.u32 %v2409_v45, 16  ;;  %v2310_v39 = vadd.f32 %v7722_v44, %v2170_v50  ;;  %5680 = vmatmul.msk.bf16.gmra.mxu2 %vm3466_vm15, %v7767_v15  ;;  %v2946_v50 = vld [vmem:[#allocation2 + $0x98] sm:$0x1] }
 0x335   : > { %v3316_v59 = vshll.u32 %v3012_v57, 16  ;;  %v2529_v11 = vsel %vm7018_vm14, 0, %v2528_v53  ;;  %v3923_v60 = vrot.slane %v3011_v33, 5  ;;  %v2741_v16 = vshll.u32 %v2409_v45, 16 }
 0x336   : > { %v3540_v30 = vpop.f32.mrf.mxu1  ;;  %v3308_v58 = vrot.slane %v3306_v36, 5  ;;  %v3312_v56 = vrot.slane %v3310_v52, 4  ;;  %v2740_v27 = vrot.slane %v2738_v4, 7  ;;  %v2346_v48 = vadd.f32 %v7496_v0, %v2310_v39  ;;  %v7779_v44 = vpop.f32.mrf.mxu0  ;;  %2530 = vst [vmem:[#allocation2 + $0xb0] sm:$0x1] %v2529_v11 }
 0x337   : > { %v7777_v28 = vadd.f32 %v3760_v10, %v3540_v30  ;;  %v3763_v38 = vpop.f32.mrf.mxu2  ;;  %v3304_v14 = vrot.slane %v3303_v5, 4  ;;  %v3924_v36 = vsel %vm6132_vm4, %v5696_v34, %v3923_v60  ;;  %v3925_v52 = vrot.slane %v3923_v60, 4 }
 0x338   : > { %v3313_v20 = vor.u32 %v3312_v56, %v3308_v58  ;;  %v2736_v53 = vrot.slane %v7746_v3, 4  ;;  %v2743_v33 = vor.u32 %v2741_v16, %v2740_v27  ;;  %v2745_v4 = vrot.slane %v2740_v27, 4 }
 0x339   : > { %v2378_v45 = vmax.f32 %v2346_v48, 0.0  ;;  %v2128_v19 = vpop.f32.mrf.mxu3  ;;  %5728 = vmatmul.msk.bf16.gmra.mxu0 %vm3466_vm15, %v7480_v1  ;;  %v3309_v10 = vsel %vm6160_vm7, %v3304_v14, %v3308_v58  ;;  %v3318_v30 = vrot.slane %v3316_v59, 5  ;;  %v3926_v5 = vrot.slane %v3012_v57, 5 }
 0x33a   : > { %v3314_v39 = vrot.slane %v3313_v20, 4  ;;  %v2744_v56 = vsel %vm7116_vm5, %v2736_v53, %v2743_v33  ;;  %v2947_v34 = vsel %vm7009_vm12, %v2745_v4, %v2946_v50  ;;  %v2171_v11 = vadd.f32 %v2128_v19, %v2015_v25  ;;  %v7792_v60 = vld [vmem:[#allocation2 + $0x90] sm:$0xf]  ;;  %v2475_v25 = vld [vmem:[#allocation2 + $0xb4] sm:$0x1] }
 0x33b   : > { %v2410_v3 = vpack.c.bf16 %v2378_v45, %v2378_v45  ;;  %2945 = vst.msk [vmem:[#allocation2 + $0x94] sm:$0xf] %vm2418_vm9, %v2744_v56  ;;  %v3321_v14 = vshrl.u32 %v7792_v60, 16  ;;  %v3324_v59 = vshll.u32 %v7792_v60, 16  ;;  %v3927_v57 = vsel %vm6132_vm4, %v3925_v52, %v3926_v5  ;;  %v2949_v56 = vld [vmem:[#allocation2 + $0x9c] sm:$0xf] }
 0x33c   : > { %v3319_v1 = vsel %vm6160_vm7, %v3314_v39, %v3318_v30  ;;  %2948 = vst [vmem:[#allocation2 + $0x98] sm:$0x1] %v2947_v34  ;;  %v2311_v27 = vadd.f32 %v7755_v35, %v2171_v11  ;;  %v3440_v16 = vunpack.c.l.b16 %v3309_v10  ;;  %v2476_v20 = vsel %vm7009_vm12, 0, %v2475_v25  ;;  %v8933_v10 = vld [vmem:[#allocation37_spill] sm:$0xff]  ;;  %v8934_v30 = vld [vmem:[#allocation58_spill] sm:$0xff] }
 0x33d   : > { %v2747_v58 = vshrl.u32 %v2410_v3, 16  ;;  %v3441_v19 = vunpack.c.l.b16 %v3319_v1  ;;  %v2750_v48 = vshll.u32 %v2410_v3, 16  ;;  %v3980_v53 = vunpack.c.l.b16 %v3924_v36  ;;  %2477 = vst [vmem:[#allocation2 + $0xb4] sm:$0x1] %v2476_v20 }
 0x33e   : > { %v3981_v33 = vunpack.c.l.b16 %v3927_v57  ;;  %v2347_v45 = vadd.f32 %v7496_v0, %v2311_v27  ;;  %5707 = vmatmul.msk.bf16.gmra.mxu3 %vm3466_vm15, %v7532_v13  ;;  %v7813_v52 = vpop.f32.mrf.mxu0  ;;  %v1883_v5 = vadd.f32 %v8934_v30, %v8933_v10  ;;  %v3323_v34 = vrot.slane %v3321_v14, 4  ;;  %v8936_v14 = vld [vmem:[#allocation59_spill] sm:$0xff] }
 0x33f   : > { %v3543_v50 = vpop.f32.mrf.mxu1  ;;  %v7804_v4 = vrot.slane %v2747_v58, 7  ;;  %v7811_v35 = vpack.c.b16 %v3441_v19, %v3440_v16  ;;  %v3765_v36 = vpop.f32.mrf.mxu2  ;;  %v3326_v3 = vrot.slane %v3324_v59, 5  ;;  %v8935_v16 = vld [vmem:[#allocation60_spill] sm:$0xff] }
 0x340   : > { %v7807_v39 = vadd.f32 %v3763_v38, %v3543_v50  ;;  %v7817_v11 = vpack.c.b16 %v3981_v33, %v3980_v53  ;;  %v2379_v1 = vmax.f32 %v2347_v45, 0.0  ;;  %v2017_v59 = vadd.f32 %v8936_v14, %v1883_v5 }
 0x341   : > { %8932 = vst [vmem:[#allocation47_spill] sm:$0xff] %v7811_v35  ;;  %v2752_v38 = vor.u32 %v2750_v48, %v7804_v4  ;;  %v2131_v57 = vpop.f32.mrf.mxu3  ;;  %v3327_v53 = vor.u32 %v3326_v3, %v3323_v34 }
 0x342   : > { %v2411_v27 = vpack.c.bf16 %v2379_v1, %v2379_v1  ;;  %v2172_v19 = vadd.f32 %v2131_v57, %v8935_v16  ;;  %v7825_v25 = vld [vmem:[#allocation2 + $0x90] sm:$0xff] }
 0x343   : > { %v2950_v58 = vsel %vm7105_vm1, %v2752_v38, %v2949_v56  ;;  %5600 = vmatmul.msk.bf16.gmra.mxu1 %vm3466_vm15, %v7811_v35  ;;  %v3014_v50 = vld [vmem:[#allocation2 + $0x94] sm:$0xf]  ;;  %v3015_v20 = vld [vmem:[#allocation2 + $0x98] sm:$0x1]  ;;  %v2531_v56 = vld [vmem:[#allocation2 + $0xbc] sm:$0x1] }
 0x344   : > { %2951 = vst [vmem:[#allocation2 + $0x9c] sm:$0xf] %v2950_v58  ;;  %v3330_v48 = vshll.u32 %v3014_v50, 16  ;;  %v3334_v33 = vshrl.u32 %v3014_v50, 16  ;;  %v2755_v45 = vshrl.u32 %v2411_v27, 16  ;;  %v2312_v10 = vadd.f32 %v7779_v44, %v2172_v19  ;;  %5681 = vmatmul.msk.bf16.gmra.mxu2 %vm3466_vm15, %v7825_v25 }
 0x345   : > { %v3340_v30 = vshll.u32 %v3015_v20, 16  ;;  %v5697_v38 = vrot.slane %v7792_v60, 9  ;;  %v2532_v5 = vsel %vm7018_vm14, 0, %v2531_v56  ;;  %v3930_v58 = vrot.slane %v3014_v50, 5  ;;  %v2953_v19 = vld [vmem:[#allocation2 + $0xa4] sm:$0x1] }
 0x346   : > { %v3332_v57 = vrot.slane %v3330_v48, 5  ;;  %v3336_v16 = vrot.slane %v3334_v33, 4  ;;  %v2757_v34 = vrot.slane %v2755_v45, 7  ;;  %v2758_v3 = vshll.u32 %v2411_v27, 16  ;;  %v7837_v44 = vpop.f32.mrf.mxu0  ;;  %2533 = vst [vmem:[#allocation2 + $0xbc] sm:$0x1] %v2532_v5 }
 0x347   : > { %v3545_v1 = vpop.f32.mrf.mxu1  ;;  %v2348_v14 = vadd.f32 %v7496_v0, %v2312_v10  ;;  %v3768_v55 = vpop.f32.mrf.mxu2  ;;  %v3328_v42 = vrot.slane %v3327_v53, 4  ;;  %v3931_v48 = vsel %vm6132_vm4, %v5697_v38, %v3930_v58  ;;  %v3932_v33 = vrot.slane %v3930_v58, 4 }
 0x348   : > { %v7835_v35 = vadd.f32 %v3765_v36, %v3545_v1  ;;  %v3337_v60 = vor.u32 %v3336_v16, %v3332_v57  ;;  %v2753_v56 = vrot.slane %v7804_v4, 4  ;;  %v2760_v50 = vor.u32 %v2758_v3, %v2757_v34 }
 0x349   : > { %v2762_v45 = vrot.slane %v2757_v34, 4  ;;  %v2380_v27 = vmax.f32 %v2348_v14, 0.0  ;;  %v2133_v13 = vpop.f32.mrf.mxu3  ;;  %5729 = vmatmul.msk.bf16.gmra.mxu0 %vm3466_vm15, %v7554_v61  ;;  %v3333_v0 = vsel %vm6160_vm7, %v3328_v42, %v3332_v57  ;;  %v3342_v10 = vrot.slane %v3340_v30, 5 }
 0x34a   : > { %v3338_v36 = vrot.slane %v3337_v60, 4  ;;  %v3933_v53 = vrot.slane %v3015_v20, 5  ;;  %v2761_v1 = vsel %vm7116_vm5, %v2753_v56, %v2760_v50  ;;  %v2173_v16 = vadd.f32 %v2133_v13, %v2017_v59  ;;  %v2478_v59 = vld [vmem:[#allocation2 + $0xc0] sm:$0x1] }
 0x34b   : > { %v2954_v38 = vsel %vm7009_vm12, %v2762_v45, %v2953_v19  ;;  %v2412_v4 = vpack.c.bf16 %v2380_v27, %v2380_v27  ;;  %v7850_v5 = vld [vmem:[#allocation2 + $0x9c] sm:$0xf]  ;;  %2952 = vst.msk [vmem:[#allocation2 + $0xa0] sm:$0xf] %vm2418_vm9, %v2761_v1  ;;  %v3442_v34 = vunpack.c.l.b16 %v3333_v0  ;;  %v2479_v19 = vsel %vm7009_vm12, 0, %v2478_v59 }
 0x34c   : > { %v3343_v61 = vsel %vm6160_vm7, %v3338_v36, %v3342_v10  ;;  %v3345_v42 = vshrl.u32 %v7850_v5, 16  ;;  %v3348_v30 = vshll.u32 %v7850_v5, 16  ;;  %v3934_v20 = vsel %vm6132_vm4, %v3932_v33, %v3933_v53  ;;  %2955 = vst [vmem:[#allocation2 + $0xa4] sm:$0x1] %v2954_v38  ;;  %v7867_v33 = vld [vmem:[%s8684_s2] ss:$0 sm:$0xff] }
 0x34d   : > { %v2764_v57 = vshrl.u32 %v2412_v4, 16  ;;  %v2313_v58 = vadd.f32 %v7813_v52, %v2173_v16  ;;  %v3443_v13 = vunpack.c.l.b16 %v3343_v61  ;;  %v2767_v3 = vshll.u32 %v2412_v4, 16  ;;  %2480 = vst [vmem:[#allocation2 + $0xc0] sm:$0x1] %v2479_v19  ;;  %v8939_v36 = vld [vmem:[#allocation63_spill] sm:$0xff] }
 0x34e   : > { %v3982_v60 = vunpack.c.l.b16 %v3931_v48  ;;  %v3983_v56 = vunpack.c.l.b16 %v3934_v20  ;;  %5708 = vmatmul.msk.bf16.gmra.mxu3 %vm3466_vm15, %v7565_v6  ;;  %v7876_v0 = vpop.f32.mrf.mxu0  ;;  %v8938_v48 = vld [vmem:[#allocation39_spill] sm:$0xff]  ;;  %v2956_v53 = vld [vmem:[#allocation2 + $0xa8] sm:$0xf]  ;;  %v3347_v38 = vrot.slane %v3345_v42, 4  ;;  %v3350_v4 = vrot.slane %v3348_v30, 5  ;;  %v8941_v42 = vld [vmem:[#allocation24_spill] sm:$0xff] }
 0x34f   : > { %v3548_v14 = vpop.f32.mrf.mxu1  ;;  %v7862_v50 = vrot.slane %v2764_v57, 7  ;;  %v2349_v45 = vadd.f32 %v7867_v33, %v2313_v58  ;;  %v7874_v27 = vpack.c.b16 %v3443_v13, %v3442_v34  ;;  %v1885_v10 = vadd.f32 %v8939_v36, %v8938_v48  ;;  %v3770_v1 = vpop.f32.mrf.mxu2  ;;  %v8940_v34 = vld [vmem:[#allocation62_spill] sm:$0xff] }
 0x350   : > { %v7870_v52 = vadd.f32 %v3768_v55, %v3548_v14  ;;  %v7880_v16 = vpack.c.b16 %v3983_v56, %v3982_v60  ;;  %v3351_v60 = vor.u32 %v3350_v4, %v3347_v38 }
 0x351   : > { %8937 = vst [vmem:[#allocation49_spill] sm:$0xff] %v7874_v27  ;;  %v2769_v55 = vor.u32 %v2767_v3, %v7862_v50  ;;  %v2381_v61 = vmax.f32 %v2349_v45, 0.0  ;;  %v2136_v20 = vpop.f32.mrf.mxu3  ;;  %v2019_v30 = vadd.f32 %v8941_v42, %v1885_v10 }
 0x352   : > { %v2174_v13 = vadd.f32 %v2136_v20, %v8940_v34  ;;  %v7888_v59 = vld [vmem:[#allocation2 + $0x9c] sm:$0xff]  ;;  %v3352_v23 = vrot.slane %v3351_v60, 4 }
 0x353   : > { %v2957_v57 = vsel %vm7105_vm1, %v2769_v55, %v2956_v53  ;;  %v2413_v58 = vpack.c.bf16 %v2381_v61, %v2381_v61  ;;  %5601 = vmatmul.msk.bf16.gmra.mxu1 %vm3466_vm15, %v7874_v27  ;;  %v3017_v14 = vld [vmem:[#allocation2 + $0xa0] sm:$0xf]  ;;  %v3018_v19 = vld [vmem:[#allocation2 + $0xa4] sm:$0x1]  ;;  %v2534_v53 = vld [vmem:[#allocation2 + $0xc8] sm:$0x1] }
 0x354   : > { %2958 = vst [vmem:[#allocation2 + $0xa8] sm:$0xf] %v2957_v57  ;;  %v3354_v3 = vshll.u32 %v3017_v14, 16  ;;  %v3358_v56 = vshrl.u32 %v3017_v14, 16  ;;  %v2314_v48 = vadd.f32 %v7837_v44, %v2174_v13  ;;  %5682 = vmatmul.msk.bf16.gmra.mxu2 %vm3466_vm15, %v7888_v59  ;;  %v3364_v36 = vshll.u32 %v3018_v19, 16 }
 0x355   : > { %v2772_v45 = vshrl.u32 %v2413_v58, 16  ;;  %v5698_v55 = vrot.slane %v7850_v5, 9  ;;  %v2535_v10 = vsel %vm7018_vm14, 0, %v2534_v53  ;;  %v3937_v57 = vrot.slane %v3017_v14, 5  ;;  %v2960_v13 = vld [vmem:[#allocation2 + $0xb0] sm:$0x1] }
 0x356   : > { %v3356_v20 = vrot.slane %v3354_v3, 5  ;;  %v3360_v34 = vrot.slane %v3358_v56, 4  ;;  %v2775_v4 = vshll.u32 %v2413_v58, 16  ;;  %v2350_v42 = vadd.f32 %v7867_v33, %v2314_v48  ;;  %v7900_v44 = vpop.f32.mrf.mxu0  ;;  %2536 = vst [vmem:[#allocation2 + $0xc8] sm:$0x1] %v2535_v10 }
 0x357   : > { %v3550_v61 = vpop.f32.mrf.mxu1  ;;  %v2774_v38 = vrot.slane %v2772_v45, 7  ;;  %v3773_v6 = vpop.f32.mrf.mxu2  ;;  %v3938_v3 = vsel %vm6132_vm4, %v5698_v55, %v3937_v57  ;;  %v3939_v56 = vrot.slane %v3937_v57, 4  ;;  %v2770_v53 = vrot.slane %v7862_v50, 4 }
 0x358   : > { %v7898_v27 = vadd.f32 %v3770_v1, %v3550_v61  ;;  %v3361_v5 = vor.u32 %v3360_v34, %v3356_v20  ;;  %v2382_v58 = vmax.f32 %v2350_v42, 0.0  ;;  %v3357_v1 = vsel %vm6160_vm7, %v3352_v23, %v3356_v20 }
 0x359   : > { %v2777_v14 = vor.u32 %v2775_v4, %v2774_v38  ;;  %v2779_v45 = vrot.slane %v2774_v38, 4  ;;  %v2138_v26 = vpop.f32.mrf.mxu3  ;;  %5730 = vmatmul.msk.bf16.gmra.mxu0 %vm3466_vm15, %v7605_v9  ;;  %v3366_v61 = vrot.slane %v3364_v36, 5  ;;  %v3940_v60 = vrot.slane %v3018_v19, 5 }
 0x35a   : > { %v3362_v48 = vrot.slane %v3361_v5, 4  ;;  %v2414_v50 = vpack.c.bf16 %v2382_v58, %v2382_v58  ;;  %v2175_v10 = vadd.f32 %v2138_v26, %v2019_v30  ;;  %v3444_v4 = vunpack.c.l.b16 %v3357_v1  ;;  %v2963_v1 = vld [vmem:[#allocation2 + $0xb4] sm:$0xf] }
 0x35b   : > { %v2778_v34 = vsel %vm7116_vm5, %v2770_v53, %v2777_v14  ;;  %v2961_v55 = vsel %vm7009_vm12, %v2779_v45, %v2960_v13  ;;  %v7913_v57 = vld [vmem:[#allocation2 + $0xa8] sm:$0xf]  ;;  %v3941_v19 = vsel %vm6132_vm4, %v3939_v56, %v3940_v60  ;;  %v3984_v13 = vunpack.c.l.b16 %v3938_v3 }
 0x35c   : > { %2959 = vst.msk [vmem:[#allocation2 + $0xac] sm:$0xf] %vm2418_vm9, %v2778_v34  ;;  %v3367_v9 = vsel %vm6160_vm7, %v3362_v48, %v3366_v61  ;;  %v3369_v23 = vshrl.u32 %v7913_v57, 16  ;;  %v3372_v36 = vshll.u32 %v7913_v57, 16  ;;  %v2781_v20 = vshrl.u32 %v2414_v50, 16  ;;  %v8943_v48 = vld [vmem:[#allocation29_spill] sm:$0xff] }
 0x35d   : > { %2962 = vst [vmem:[#allocation2 + $0xb0] sm:$0x1] %v2961_v55  ;;  %v2315_v38 = vadd.f32 %v7876_v0, %v2175_v10  ;;  %v3445_v26 = vunpack.c.l.b16 %v3367_v9  ;;  %v3985_v5 = vunpack.c.l.b16 %v3941_v19  ;;  %v2784_v14 = vshll.u32 %v2414_v50, 16  ;;  %v8945_v19 = vld [vmem:[#allocation40_spill] sm:$0xff] }
 0x35e   : > { %v3371_v30 = vrot.slane %v3369_v23, 4  ;;  %v3374_v42 = vrot.slane %v3372_v36, 5  ;;  %v2783_v53 = vrot.slane %v2781_v20, 7  ;;  %5709 = vmatmul.msk.bf16.gmra.mxu3 %vm3466_vm15, %v7598_v43  ;;  %v7928_v56 = vpop.f32.mrf.mxu0  ;;  %v1887_v0 = vadd.f32 %v7513_v51, %v8943_v48 }
 0x35f   : > { %v2351_v45 = vadd.f32 %v7867_v33, %v2315_v38  ;;  %v7926_v58 = vpack.c.b16 %v3445_v26, %v3444_v4  ;;  %v3775_v60 = vpop.f32.mrf.mxu2  ;;  %v7932_v34 = vpack.c.b16 %v3985_v5, %v3984_v13  ;;  %v5699_v4 = vrot.slane %v7913_v57, 9 }
 0x360   : > { %v3553_v61 = vpop.f32.mrf.mxu1  ;;  %v2786_v3 = vor.u32 %v2784_v14, %v2783_v53  ;;  %v3375_v9 = vor.u32 %v3374_v42, %v3371_v30  ;;  %v2021_v26 = vadd.f32 %v7515_v31, %v1887_v0  ;;  %v2787_v42 = vrot.slane %v2783_v53, 4 }
 0x361   : > { %8942 = vst [vmem:[#allocation48_spill] sm:$0xff] %v7926_v58  ;;  %v2383_v55 = vmax.f32 %v2351_v45, 0.0  ;;  %v7934_v50 = vadd.f32 %v3773_v6, %v3553_v61  ;;  %v2141_v10 = vpop.f32.mrf.mxu3 }
 0x362   : > { %8944 = vst [vmem:[#allocation23_spill] sm:$0xff] %v7932_v34  ;;  %v2964_v23 = vsel %vm7105_vm1, %v2786_v3, %v2963_v1  ;;  %v2176_v51 = vadd.f32 %v2141_v10, %v8945_v19  ;;  %v3376_v48 = vrot.slane %v3375_v9, 4 }
 0x363   : > { %v2415_v36 = vpack.c.bf16 %v2383_v55, %v2383_v55  ;;  %5602 = vmatmul.msk.bf16.gmra.mxu1 %vm3466_vm15, %v7926_v58  ;;  %v7941_v20 = vld [vmem:[#allocation2 + $0xa8] sm:$0xff]  ;;  %2965 = vst [vmem:[#allocation2 + $0xb4] sm:$0xf] %v2964_v23  ;;  %v2967_v23 = vld [vmem:[#allocation2 + $0xbc] sm:$0x1] }
 0x364   : > { %v3020_v38 = vld [vmem:[#allocation2 + $0xac] sm:$0xf]  ;;  %v3021_v6 = vld [vmem:[#allocation2 + $0xb0] sm:$0x1]  ;;  %v2316_v14 = vadd.f32 %v7900_v44, %v2176_v51  ;;  %5683 = vmatmul.msk.bf16.gmra.mxu2 %vm3466_vm15, %v7941_v20 }
 0x365   : > { %v3378_v13 = vshll.u32 %v3020_v38, 16  ;;  %v3382_v30 = vshrl.u32 %v3020_v38, 16  ;;  %v2789_v5 = vshrl.u32 %v2415_v36, 16  ;;  %v3388_v45 = vshll.u32 %v3021_v6, 16 }
 0x366   : > { %v3944_v3 = vrot.slane %v3020_v38, 5  ;;  %v2792_v57 = vshll.u32 %v2415_v36, 16  ;;  %v2352_v31 = vadd.f32 %v7867_v33, %v2316_v14  ;;  %v7949_v0 = vpop.f32.mrf.mxu0  ;;  %v3947_v10 = vrot.slane %v3021_v6, 5  ;;  %v5774_v36 = vld [vmem:[%s8685_s3 + $0x18] sm:$0xf] }
 0x367   : > { %v3380_v1 = vrot.slane %v3378_v13, 5  ;;  %v3384_v61 = vrot.slane %v3382_v30, 4  ;;  %v2791_v55 = vrot.slane %v2789_v5, 7  ;;  %v3778_v19 = vpop.f32.mrf.mxu2  ;;  %v3390_v44 = vrot.slane %v3388_v45, 5 }
 0x368   : > { %v3555_v53 = vpop.f32.mrf.mxu1  ;;  %v3945_v51 = vsel %vm6132_vm4, %v5699_v4, %v3944_v3  ;;  %v3946_v43 = vrot.slane %v3944_v3, 4  ;;  %v2384_v30 = vmax.f32 %v2352_v31, 0.0  ;;  %v4619_v4 = vsel %vm3515_vm8, %v5774_v36, 0 }
 0x369   : > { %v3385_v58 = vor.u32 %v3384_v61, %v3380_v1  ;;  %v2794_v9 = vor.u32 %v2792_v57, %v2791_v55  ;;  %v2796_v13 = vrot.slane %v2791_v55, 4  ;;  %v7953_v38 = vadd.f32 %v3775_v60, %v3555_v53  ;;  %v2143_v5 = vpop.f32.mrf.mxu3  ;;  %5731 = vmatmul.msk.bf16.gmra.mxu0 %vm3466_vm15, %v7657_v32  ;;  %4628 = vmatpush.bf16.msra.mxu3 %v4619_v4  ;;  %v5038_v32 = vld [vmem:[%s8686_s4] sm:$0x3] }
 0x36a   : > { %v3381_v6 = vsel %vm6160_vm7, %v3376_v48, %v3380_v1  ;;  %v3948_v45 = vsel %vm6132_vm4, %v3946_v43, %v3947_v10  ;;  %v2416_v3 = vpack.c.bf16 %v2384_v30, %v2384_v30  ;;  %v2177_v55 = vadd.f32 %v2143_v5, %v2021_v26  ;;  %v7969_v57 = vld [vmem:[#allocation2 + $0xb4] sm:$0xf] }
 0x36b   : > { %v3386_v14 = vrot.slane %v3385_v58, 4  ;;  %v2795_v60 = vsel %vm7116_vm5, %v2787_v42, %v2794_v9  ;;  %v2968_v61 = vsel %vm7009_vm12, %v2796_v13, %v2967_v23  ;;  %v3393_v58 = vshrl.u32 %v7969_v57, 16 }
 0x36c   : > { %2966 = vst.msk [vmem:[#allocation2 + $0xb8] sm:$0xf] %vm2418_vm9, %v2795_v60  ;;  %v3396_v42 = vshll.u32 %v7969_v57, 16  ;;  %v5040_v48 = vsel %vm792_vm0, %v5038_v32, 0  ;;  %v2798_v26 = vshrl.u32 %v2416_v3, 16  ;;  %v2317_v1 = vadd.f32 %v7928_v56, %v2177_v55 }
 0x36d   : > { %v3391_v43 = vsel %vm6160_vm7, %v3386_v14, %v3390_v44  ;;  %2969 = vst [vmem:[#allocation2 + $0xbc] sm:$0x1] %v2968_v61  ;;  %v3446_v31 = vunpack.c.l.b16 %v3381_v6  ;;  %5049 = vmatpush.bf16.msra.mxu2 %v5040_v48  ;;  %v3395_v23 = vrot.slane %v3393_v58, 4  ;;  %v3986_v9 = vunpack.c.l.b16 %v3945_v51  ;;  %v2970_v56 = vld [vmem:[#allocation2 + $0xc0] sm:$0xf] }
 0x36e   : > { %v3447_v10 = vunpack.c.l.b16 %v3391_v43  ;;  %v3398_v53 = vrot.slane %v3396_v42, 5  ;;  %v3987_v13 = vunpack.c.l.b16 %v3948_v45  ;;  %v7981_v30 = vrot.slane %v2798_v26, 7  ;;  %5710 = vmatmul.msk.bf16.gmra.mxu3 %vm3466_vm15, %v7638_v22  ;;  %v7988_v14 = vpop.f32.mrf.mxu0  ;;  %v5813_v26 = vld [vmem:[%s8685_s3 + $0x20] sm:$0xf] }
 0x36f   : > { %v2801_v44 = vshll.u32 %v2416_v3, 16  ;;  %v2353_v36 = vadd.f32 %v7867_v33, %v2317_v1  ;;  %v3780_v4 = vpop.f32.mrf.mxu2  ;;  %v5795_v33 = vld [vmem:[%s8685_s3 + $0x1c] sm:$0xf]  ;;  %v3751_v1 = vadd.f32 %v7649_v49, %v7663_v7 }
 0x370   : > { %v7986_v5 = vpack.c.b16 %v3447_v10, %v3446_v31  ;;  %v3558_v6 = vpop.f32.mrf.mxu1  ;;  %v7990_v60 = vpack.c.b16 %v3987_v13, %v3986_v9  ;;  %v3399_v55 = vor.u32 %v3398_v53, %v3395_v23  ;;  %v4775_v32 = vsel %vm3515_vm8, %v5795_v33, 0  ;;  %v2974_v33 = vld [vmem:[#allocation2 + $0xc8] sm:$0x1] }
 0x371   : > { %v2803_v51 = vor.u32 %v2801_v44, %v7981_v30  ;;  %v2385_v45 = vmax.f32 %v2353_v36, 0.0  ;;  %v7993_v61 = vadd.f32 %v3778_v19, %v3558_v6  ;;  %v4066_v3 = vpop.f32.mrf.mxu3  ;;  %4784 = vmatpush.bf16.msra.mxu0 %v4775_v32  ;;  %v4915_v53 = vsel %vm3515_vm8, %v5813_v26, 0 }
 0x372   : > { %8946 = vst [vmem:[#allocation54_spill] sm:$0xff] %v7990_v60  ;;  %v4146_v42 = vadd.f32 %v4066_v3, %v7557_v40  ;;  %v5700_v9 = vrot.slane %v7969_v57, 9  ;;  %v2804_v13 = vrot.slane %v7981_v30, 4  ;;  %4924 = vmatpush.bf16.msra.mxu1 %v4915_v53 }
 0x373   : > { %v2971_v43 = vsel %vm7105_vm1, %v2803_v51, %v2970_v56  ;;  %v2417_v58 = vpack.c.bf16 %v2385_v45, %v2385_v45  ;;  %5603 = vmatmul.msk.bf16.gmra.mxu1 %vm3466_vm15, %v7986_v5  ;;  %v8004_v48 = vld [vmem:[#allocation2 + $0xb4] sm:$0xff]  ;;  %v3400_v51 = vrot.slane %v3399_v55, 4 }
 0x374   : > { %8947 = vst [vmem:[#allocation51_spill] sm:$0xff] %v8004_v48  ;;  %v3023_v19 = vld [vmem:[#allocation2 + $0xb8] sm:$0xf]  ;;  %v3024_v46 = vld [vmem:[#allocation2 + $0xbc] sm:$0x1]  ;;  %5684 = vmatmul.msk.bf16.gmra.mxu2 %vm3466_vm15, %v8004_v48  ;;  %v8017_v45 = vadd.f32 %v7949_v0, %v4146_v42 }
 0x375   : > { %2972 = vst [vmem:[#allocation2 + $0xc0] sm:$0xf] %v2971_v43  ;;  %v3402_v31 = vshll.u32 %v3023_v19, 16  ;;  %v3406_v10 = vshrl.u32 %v3023_v19, 16  ;;  %v2806_v23 = vshrl.u32 %v2417_v58, 16  ;;  %v3412_v40 = vshll.u32 %v3024_v46, 16 }
 0x376   : > { %v3951_v56 = vrot.slane %v3023_v19, 5  ;;  %v2809_v7 = vshll.u32 %v2417_v58, 16  ;;  %v4205_v6 = vpop.f32.mrf.mxu0  ;;  %v3954_v30 = vrot.slane %v3024_v46, 5 }
 0x377   : > { %v3404_v44 = vrot.slane %v3402_v31, 5  ;;  %v3408_v36 = vrot.slane %v3406_v10, 4  ;;  %v2808_v49 = vrot.slane %v2806_v23, 7  ;;  %v3783_v32 = vpop.f32.mrf.mxu2  ;;  %v3414_v19 = vrot.slane %v3412_v40, 5 }
 0x378   : > { %v3560_v3 = vpop.f32.mrf.mxu1  ;;  %v3952_v57 = vsel %vm6132_vm4, %v5700_v9, %v3951_v56  ;;  %v3953_v26 = vrot.slane %v3951_v56, 4 }
 0x379   : > { %v3409_v43 = vor.u32 %v3408_v36, %v3404_v44  ;;  %v2811_v31 = vor.u32 %v2809_v7, %v2808_v49  ;;  %v2813_v10 = vrot.slane %v2808_v49, 4  ;;  %v8021_v53 = vadd.f32 %v3780_v4, %v3560_v3  ;;  %v4068_v58 = vpop.f32.mrf.mxu3  ;;  %5732 = vmatmul.msk.bf16.gmra.mxu0 %vm3466_vm15, %v7710_v29 }
 0x37a   : > { %v3405_v0 = vsel %vm6160_vm7, %v3400_v51, %v3404_v44  ;;  %v3955_v42 = vsel %vm6132_vm4, %v3953_v26, %v3954_v30  ;;  %v3988_v23 = vunpack.c.l.b16 %v3952_v57  ;;  %v4147_v9 = vadd.f32 %v4068_v58, %v3751_v1 }
 0x37b   : > { %v3410_v55 = vrot.slane %v3409_v43, 4  ;;  %v2812_v46 = vsel %vm7116_vm5, %v2804_v13, %v2811_v31  ;;  %v2975_v4 = vsel %vm7009_vm12, %v2813_v10, %v2974_v33  ;;  %v3989_v40 = vunpack.c.l.b16 %v3955_v42 }
 0x37c   : > { %2973 = vst.msk [vmem:[#allocation2 + $0xc4] sm:$0xf] %vm2418_vm9, %v2812_v46  ;;  %v3448_v44 = vunpack.c.l.b16 %v3405_v0  ;;  %v8039_v49 = vadd.f32 %v7988_v14, %v4147_v9  ;;  %v8949_v0 = vld [vmem:[#allocation41_spill] sm:$0xff] }
 0x37d   : > { %v3415_v29 = vsel %vm6160_vm7, %v3410_v55, %v3414_v19  ;;  %2976 = vst [vmem:[#allocation2 + $0xc8] sm:$0x1] %v2975_v4  ;;  %v8036_v56 = vpack.c.b16 %v3989_v40, %v3988_v23 }
 0x37e   : > { %v3449_v36 = vunpack.c.l.b16 %v3415_v29  ;;  %5711 = vmatmul.msk.bf16.gmra.mxu3 %vm3466_vm15, %v7692_v37  ;;  %v4207_v1 = vpop.f32.mrf.mxu0 }
 0x37f   : > { %8948 = vst [vmem:[#allocation53_spill] sm:$0xff] %v8036_v56  ;;  %v3785_v7 = vpop.f32.mrf.mxu2 }
 0x380   : > { %v8043_v12 = vpack.c.b16 %v3449_v36, %v3448_v44  ;;  %v3563_v13 = vpop.f32.mrf.mxu1 }
 0x381   : > { %v8045_v51 = vadd.f32 %v3783_v32, %v3563_v13  ;;  %v4071_v33 = vpop.f32.mrf.mxu3  ;;  %v8950_v13 = vld [vmem:[#allocation22_spill] sm:$0xff] }
 0x382   : > { %v4148_v3 = vadd.f32 %v4071_v33, %v7695_v47 }
 0x383   : > { %5604 = vmatmul.msk.bf16.gmra.mxu1 %vm3466_vm15, %v8043_v12 }
 0x384   : > { %5758 = vmatmul.msk.bf16.vlgmr.msrb.gmra.mxu2 %vm3466_vm15, %v7170_v54  ;;  %v8052_v14 = vadd.f32 %v4205_v6, %v4148_v3 }
 0x386   : > { %v4210_v43 = vpop.f32.mrf.mxu0 }
 0x387   : > { %v3788_v26 = vpop.f32.mrf.mxu2 }
 0x388   : > { %v3565_v57 = vpop.f32.mrf.mxu1 }
 0x389   : > { %v8054_v30 = vadd.f32 %v3785_v7, %v3565_v57  ;;  %v4073_v31 = vpop.f32.mrf.mxu3  ;;  %5733 = vmatmul.msk.bf16.gmra.mxu0 %vm3466_vm15, %v7767_v15 }
 0x38a   : > { %v4149_v32 = vadd.f32 %v4073_v31, %v7720_v62 }
 0x38c   : > { %v8059_v10 = vadd.f32 %v4207_v1, %v4149_v32 }
 0x38e   : > { %5712 = vmatmul.msk.bf16.gmra.mxu3 %vm3466_vm15, %v7759_v18  ;;  %v4212_v47 = vpop.f32.mrf.mxu0 }
 0x38f   : > { %v3790_v6 = vpop.f32.mrf.mxu2 }
 0x390   : > { %v3568_v54 = vpop.f32.mrf.mxu1 }
 0x391   : > { %v8063_v19 = vadd.f32 %v3788_v26, %v3568_v54  ;;  %v4076_v58 = vpop.f32.mrf.mxu3 }
 0x392   : > { %v4150_v55 = vadd.f32 %v4076_v58, %v7749_v63  ;;  %v8951_v58 = vld [vmem:[#allocation25_spill] sm:$0xff] }
 0x393   : > { %5740 = vmatmul.msk.bf16.vlgmr.msrb.gmra.mxu1 %vm3466_vm15, %v8949_v0 }
 0x394   : > { %5759 = vmatmul.msk.bf16.gmra.mxu2 %vm3466_vm15, %v8913_v17  ;;  %v8070_v62 = vadd.f32 %v4210_v43, %v4150_v55 }
 0x396   : > { %v4215_v15 = vpop.f32.mrf.mxu0 }
 0x397   : > { %v3793_v23 = vpop.f32.mrf.mxu2 }
 0x398   : > { %v3570_v42 = vpop.f32.mrf.mxu1 }
 0x399   : > { %v8072_v46 = vadd.f32 %v3790_v6, %v3570_v42  ;;  %v4078_v4 = vpop.f32.mrf.mxu3  ;;  %5734 = vmatmul.msk.bf16.gmra.mxu0 %vm3466_vm15, %v7825_v25 }
 0x39a   : > { %v4151_v9 = vadd.f32 %v4078_v4, %v7777_v28 }
 0x39c   : > { %v8077_v40 = vadd.f32 %v4212_v47, %v4151_v9 }
 0x39e   : > { %5713 = vmatmul.msk.bf16.gmra.mxu3 %vm3466_vm15, %v7817_v11  ;;  %v4217_v63 = vpop.f32.mrf.mxu0 }
 0x39f   : > { %v3795_v44 = vpop.f32.mrf.mxu2 }
 0x3a0   : > { %v3573_v29 = vpop.f32.mrf.mxu1 }
 0x3a1   : > { %v8081_v36 = vadd.f32 %v3793_v23, %v3573_v29  ;;  %v4081_v1 = vpop.f32.mrf.mxu3 }
 0x3a2   : > { %v4152_v7 = vadd.f32 %v4081_v1, %v7807_v39 }
 0x3a3   : > { %5741 = vmatmul.msk.bf16.gmra.mxu1 %vm3466_vm15, %v8950_v13 }
 0x3a4   : > { %5760 = vmatmul.msk.bf16.gmra.mxu2 %vm3466_vm15, %v7432_v21  ;;  %v8088_v28 = vadd.f32 %v4215_v15, %v4152_v7  ;;  %v8952_v7 = vld [vmem:[#allocation27_spill] sm:$0xff] }
 0x3a6   : > { %v4220_v25 = vpop.f32.mrf.mxu0 }
 0x3a7   : > { %v3798_v3 = vpop.f32.mrf.mxu2 }
 0x3a8   : > { %v3575_v33 = vpop.f32.mrf.mxu1 }
 0x3a9   : > { %v8090_v43 = vadd.f32 %v3795_v44, %v3575_v33  ;;  %v4083_v57 = vpop.f32.mrf.mxu3  ;;  %5735 = vmatmul.msk.bf16.gmra.mxu0 %vm3466_vm15, %v7888_v59  ;;  %v8953_v33 = vld [vmem:[#allocation44_spill] sm:$0xff] }
 0x3aa   : > { %v4153_v26 = vadd.f32 %v4083_v57, %v7835_v35 }
 0x3ac   : > { %v8095_v31 = vadd.f32 %v4217_v63, %v4153_v26 }
 0x3ae   : > { %5714 = vmatmul.msk.bf16.gmra.mxu3 %vm3466_vm15, %v7880_v16  ;;  %v4222_v39 = vpop.f32.mrf.mxu0 }
 0x3af   : > { %v3800_v47 = vpop.f32.mrf.mxu2 }
 0x3b0   : > { %v3578_v32 = vpop.f32.mrf.mxu1 }
 0x3b1   : > { %v8099_v54 = vadd.f32 %v3798_v3, %v3578_v32  ;;  %v4086_v6 = vpop.f32.mrf.mxu3 }
 0x3b2   : > { %v4154_v0 = vadd.f32 %v4086_v6, %v7870_v52 }
 0x3b3   : > { %5742 = vmatmul.msk.bf16.gmra.mxu1 %vm3466_vm15, %v8951_v58 }
 0x3b4   : > { %5761 = vmatmul.msk.bf16.gmra.mxu2 %vm3466_vm15, %v7491_v2  ;;  %v8106_v35 = vadd.f32 %v4220_v25, %v4154_v0  ;;  %v8961_v2 = vld [vmem:[#allocation35_spill] sm:$0xff] }
 0x3b6   : > { %v4225_v59 = vpop.f32.mrf.mxu0 }
 0x3b7   : > { %v3803_v15 = vpop.f32.mrf.mxu2 }
 0x3b8   : > { %v3580_v55 = vpop.f32.mrf.mxu1 }
 0x3b9   : > { %v8108_v42 = vadd.f32 %v3800_v47, %v3580_v55  ;;  %v4088_v23 = vpop.f32.mrf.mxu3  ;;  %5736 = vmatmul.msk.bf16.gmra.mxu0 %vm3466_vm15, %v7941_v20 }
 0x3ba   : > { %v4155_v4 = vadd.f32 %v4088_v23, %v7898_v27 }
 0x3bc   : > { %v8113_v9 = vadd.f32 %v4222_v39, %v4155_v4  ;;  %v8955_v4 = vld [vmem:[#allocation20_spill] sm:$0xff] }
 0x3be   : > { %5715 = vmatmul.msk.bf16.gmra.mxu3 %vm3466_vm15, %v7932_v34  ;;  %v4227_v52 = vpop.f32.mrf.mxu0 }
 0x3bf   : > { %v3805_v29 = vpop.f32.mrf.mxu2 }
 0x3c0   : > { %v3583_v63 = vpop.f32.mrf.mxu1 }
 0x3c1   : > { %v8117_v44 = vadd.f32 %v3803_v15, %v3583_v63  ;;  %v4091_v1 = vpop.f32.mrf.mxu3  ;;  %v8954_v15 = vld [vmem:[#allocation30_spill] sm:$0xff] }
 0x3c2   : > { %v4156_v25 = vadd.f32 %v4091_v1, %v7934_v50  ;;  %v8144_v1 = vld [vmem:[#allocation2 + $0xc0] sm:$0xff] }
 0x3c3   : > { %5743 = vmatmul.msk.bf16.gmra.mxu1 %vm3466_vm15, %v8952_v7  ;;  %8956 = vst [vmem:[#allocation52_spill] sm:$0xff] %v8144_v1 }
 0x3c4   : > { %5762 = vmatmul.msk.bf16.gmra.mxu2 %vm3466_vm15, %v8953_v33  ;;  %v8124_v27 = vadd.f32 %v4225_v59, %v4156_v25  ;;  %v5943_v33 = vld [vmem:[#allocation2 + $0x18] sm:$0xff] }
 0x3c6   : > { %v4230_v20 = vpop.f32.mrf.mxu0 }
 0x3c7   : > { %v3808_v57 = vpop.f32.mrf.mxu2 }
 0x3c8   : > { %v3585_v3 = vpop.f32.mrf.mxu1 }
 0x3c9   : > { %v8126_v26 = vadd.f32 %v3805_v29, %v3585_v3  ;;  %v4093_v39 = vpop.f32.mrf.mxu3  ;;  %5737 = vmatmul.msk.bf16.gmra.mxu0 %vm3466_vm15, %v8004_v48  ;;  %v8960_v48 = vld [vmem:[#allocation45_spill] sm:$0xff] }
 0x3ca   : > { %v4157_v32 = vadd.f32 %v4093_v39, %v7953_v38 }
 0x3cc   : > { %v8131_v47 = vadd.f32 %v4227_v52, %v4157_v32 }
 0x3ce   : > { %5716 = vmatmul.msk.bf16.gmra.mxu3 %vm3466_vm15, %v7990_v60  ;;  %v4232_v50 = vpop.f32.mrf.mxu0 }
 0x3cf   : > { %v3810_v0 = vpop.f32.mrf.mxu2 }
 0x3d0   : > { %v3588_v6 = vpop.f32.mrf.mxu1 }
 0x3d1   : > { %v8135_v59 = vadd.f32 %v3808_v57, %v3588_v6  ;;  %v4096_v55 = vpop.f32.mrf.mxu3 }
 0x3d2   : > { %v4158_v23 = vadd.f32 %v4096_v55, %v7993_v61 }
 0x3d3   : > { %5744 = vmatmul.msk.bf16.gmra.mxu1 %vm3466_vm15, %v8954_v15 }
 0x3d4   : > { %5763 = vmatmul.msk.bf16.gmra.mxu2 %vm3466_vm15, %v8955_v4  ;;  %v8142_v38 = vadd.f32 %v4230_v20, %v4158_v23  ;;  %v8957_v23 = vld [vmem:[#allocation16_spill] sm:$0xff] }
 0x3d6   : > { %v4235_v52 = vpop.f32.mrf.mxu0 }
 0x3d7   : > { %v3813_v29 = vpop.f32.mrf.mxu2 }
 0x3d8   : > { %v3590_v63 = vpop.f32.mrf.mxu1 }
 0x3d9   : > { %v8146_v25 = vadd.f32 %v3810_v0, %v3590_v63  ;;  %v4098_v3 = vpop.f32.mrf.mxu3  ;;  %5738 = vmatmul.msk.bf16.gmra.mxu0 %vm3466_vm15, %v8144_v1  ;;  %v8958_v63 = vld [vmem:[#allocation42_spill] sm:$0xff] }
 0x3da   : > { %v4159_v57 = vadd.f32 %v4098_v3, %v8021_v53 }
 0x3dc   : > { %v8151_v39 = vadd.f32 %v4232_v50, %v4159_v57 }
 0x3de   : > { %5717 = vmatmul.msk.bf16.gmra.mxu3 %vm3466_vm15, %v8036_v56  ;;  %v4237_v61 = vpop.f32.mrf.mxu0 }
 0x3df   : > { %v3815_v32 = vpop.f32.mrf.mxu2 }
 0x3e0   : > { %v3593_v20 = vpop.f32.mrf.mxu1 }
 0x3e1   : > { %v8155_v6 = vadd.f32 %v3813_v29, %v3593_v20  ;;  %v4101_v55 = vpop.f32.mrf.mxu3 }
 0x3e2   : > { %v4160_v0 = vadd.f32 %v4101_v55, %v8045_v51 }
 0x3e3   : > { %5745 = vmatmul.msk.bf16.gmra.mxu1 %vm3466_vm15, %v8957_v23 }
 0x3e4   : > { %5764 = vmatmul.msk.bf16.gmra.mxu2 %vm3466_vm15, %v8958_v63  ;;  %v8162_v53 = vadd.f32 %v4235_v52, %v4160_v0 }
 0x3e6   : > { %v4240_v50 = vpop.f32.mrf.mxu0 }
 0x3e7   : > { %v3818_v57 = vpop.f32.mrf.mxu2 }
 0x3e8   : > { %v3595_v3 = vpop.f32.mrf.mxu1 }
 0x3e9   : > { %v8164_v4 = vadd.f32 %v3815_v32, %v3595_v3  ;;  %v4103_v1 = vpop.f32.mrf.mxu3  ;;  %5796 = vmatmul.msk.bf16.vlgmr.msra.gmra.mxu0 %vm3466_vm15, %v8950_v13 }
 0x3ea   : > { %v4161_v29 = vadd.f32 %v4103_v1, %v8054_v30 }
 0x3ec   : > { %v8169_v20 = vadd.f32 %v4237_v61, %v4161_v29 }
 0x3ee   : > { %5779 = vmatmul.msk.bf16.vlgmr.msra.gmra.mxu3 %vm3466_vm15, %v5943_v33  ;;  %v4242_v51 = vpop.f32.mrf.mxu0 }
 0x3ef   : > { %v3820_v52 = vpop.f32.mrf.mxu2 }
 0x3f0   : > { %v3598_v55 = vpop.f32.mrf.mxu1 }
 0x3f1   : > { %v8172_v0 = vadd.f32 %v3818_v57, %v3598_v55  ;;  %v4106_v63 = vpop.f32.mrf.mxu3  ;;  %v5944_v55 = vld [vmem:[#allocation2 + $0x24] sm:$0xff] }
 0x3f2   : > { %v4162_v32 = vadd.f32 %v4106_v63, %v8063_v19 }
 0x3f3   : > { %5746 = vmatmul.msk.bf16.gmra.mxu1 %vm3466_vm15, %v8959_v24 }
 0x3f4   : > { %5765 = vmatmul.msk.bf16.gmra.mxu2 %vm3466_vm15, %v7638_v22  ;;  %v8179_v30 = vadd.f32 %v4240_v50, %v4162_v32 }
 0x3f6   : > { %v4245_v13 = vpop.f32.mrf.mxu0 }
 0x3f7   : > { %v3823_v61 = vpop.f32.mrf.mxu2 }
 0x3f8   : > { %v3600_v1 = vpop.f32.mrf.mxu1 }
 0x3f9   : > { %v8181_v33 = vadd.f32 %v3820_v52, %v3600_v1  ;;  %v4108_v3 = vpop.f32.mrf.mxu3  ;;  %5797 = vmatmul.msk.bf16.gmra.mxu0 %vm3466_vm15, %v8951_v58 }
 0x3fa   : > { %v4163_v57 = vadd.f32 %v4108_v3, %v8072_v46 }
 0x3fc   : > { %v8186_v29 = vadd.f32 %v4242_v51, %v4163_v57 }
 0x3fe   : > { %5780 = vmatmul.msk.bf16.gmra.mxu3 %vm3466_vm15, %v5944_v55  ;;  %v4247_v19 = vpop.f32.mrf.mxu0 }
 0x3ff   : > { %v3825_v50 = vpop.f32.mrf.mxu2 }
 0x400   : > { %v3603_v63 = vpop.f32.mrf.mxu1 }
 0x401   : > { %v8189_v32 = vadd.f32 %v3823_v61, %v3603_v63  ;;  %v4111_v22 = vpop.f32.mrf.mxu3  ;;  %v5945_v63 = vld [vmem:[#allocation2 + $0x30] sm:$0xff] }
 0x402   : > { %v4164_v52 = vadd.f32 %v4111_v22, %v8081_v36 }
 0x403   : > { %5747 = vmatmul.msk.bf16.gmra.mxu1 %vm3466_vm15, %v8960_v48 }
 0x404   : > { %5766 = vmatmul.msk.bf16.gmra.mxu2 %vm3466_vm15, %v7692_v37  ;;  %v8196_v46 = vadd.f32 %v4245_v13, %v4164_v52 }
 0x406   : > { %v4250_v58 = vpop.f32.mrf.mxu0 }
 0x407   : > { %v4496_v1 = vpop.f32.mrf.mxu2 }
 0x408   : > { %v3605_v51 = vpop.f32.mrf.mxu1 }
 0x409   : > { %v8198_v3 = vadd.f32 %v3825_v50, %v3605_v51  ;;  %v4113_v57 = vpop.f32.mrf.mxu3  ;;  %5798 = vmatmul.msk.bf16.gmra.mxu0 %vm3466_vm15, %v8952_v7 }
 0x40a   : > { %v4165_v61 = vadd.f32 %v4113_v57, %v8090_v43 }
 0x40c   : > { %v8203_v55 = vadd.f32 %v4247_v19, %v4165_v61 }
 0x40e   : > { %5781 = vmatmul.msk.bf16.gmra.mxu3 %vm3466_vm15, %v5945_v63  ;;  %v4252_v22 = vpop.f32.mrf.mxu0 }
 0x40f   : > { %v4498_v13 = vpop.f32.mrf.mxu2 }
 0x410   : > { %v4356_v36 = vpop.f32.mrf.mxu1 }
 0x411   : > { %v4436_v52 = vadd.f32 %v4356_v36, %v8017_v45  ;;  %v4116_v37 = vpop.f32.mrf.mxu3 }
 0x412   : > { %v4166_v50 = vadd.f32 %v4116_v37, %v8099_v54  ;;  %v5946_v54 = vld [vmem:[#allocation2 + $0x3c] sm:$0xff] }
 0x413   : > { %5748 = vmatmul.msk.bf16.gmra.mxu1 %vm3466_vm15, %v8961_v2  ;;  %v8210_v51 = vadd.f32 %v4496_v1, %v4436_v52 }
 0x414   : > { %5767 = vmatmul.msk.bf16.gmra.mxu2 %vm3466_vm15, %v7759_v18  ;;  %v8214_v43 = vadd.f32 %v4250_v58, %v4166_v50 }
 0x416   : > { %v4255_v7 = vpop.f32.mrf.mxu0 }
 0x417   : > { %v4501_v57 = vpop.f32.mrf.mxu2 }
 0x418   : > { %v4358_v19 = vpop.f32.mrf.mxu1 }
 0x419   : > { %v4437_v61 = vadd.f32 %v4358_v19, %v8039_v49  ;;  %v4118_v63 = vpop.f32.mrf.mxu3  ;;  %5799 = vmatmul.msk.bf16.gmra.mxu0 %vm3466_vm15, %v8954_v15  ;;  %v8962_v49 = vld [vmem:[#allocation33_spill] sm:$0xff] }
 0x41a   : > { %v4167_v45 = vadd.f32 %v4118_v63, %v8108_v42 }
 0x41b   : > { %v8220_v36 = vadd.f32 %v4498_v13, %v4437_v61 }
 0x41c   : > { %v8222_v37 = vadd.f32 %v4252_v22, %v4167_v45 }
 0x41e   : > { %5782 = vmatmul.msk.bf16.gmra.mxu3 %vm3466_vm15, %v5946_v54  ;;  %v4257_v58 = vpop.f32.mrf.mxu0 }
 0x41f   : > { %v4503_v52 = vpop.f32.mrf.mxu2 }
 0x420   : > { %v4361_v1 = vpop.f32.mrf.mxu1 }
 0x421   : > { %v4438_v50 = vadd.f32 %v4361_v1, %v8052_v14  ;;  %v4121_v18 = vpop.f32.mrf.mxu3 }
 0x422   : > { %v4168_v15 = vadd.f32 %v4121_v18, %v8117_v44  ;;  %v5947_v44 = vld [vmem:[#allocation2 + $0x48] sm:$0xff] }
 0x423   : > { %5749 = vmatmul.msk.bf16.gmra.mxu1 %vm3466_vm15, %v8962_v49  ;;  %v8229_v19 = vadd.f32 %v4501_v57, %v4438_v50 }
 0x424   : > { %5768 = vmatmul.msk.bf16.gmra.mxu2 %vm3466_vm15, %v7817_v11  ;;  %v8233_v42 = vadd.f32 %v4255_v7, %v4168_v15 }
 0x426   : > { %v4260_v22 = vpop.f32.mrf.mxu0 }
 0x427   : > { %v4506_v61 = vpop.f32.mrf.mxu2 }
 0x428   : > { %v4363_v13 = vpop.f32.mrf.mxu1 }
 0x429   : > { %v4439_v63 = vadd.f32 %v4363_v13, %v8059_v10  ;;  %v4123_v45 = vpop.f32.mrf.mxu3  ;;  %5800 = vmatmul.msk.bf16.gmra.mxu0 %vm3466_vm15, %v8957_v23  ;;  %v8963_v10 = vld [vmem:[#allocation47_spill] sm:$0xff] }
 0x42a   : > { %v4169_v14 = vadd.f32 %v4123_v45, %v8126_v26 }
 0x42b   : > { %v8239_v54 = vadd.f32 %v4503_v52, %v4439_v63 }
 0x42c   : > { %v8241_v18 = vadd.f32 %v4257_v58, %v4169_v14 }
 0x42e   : > { %5783 = vmatmul.msk.bf16.gmra.mxu3 %vm3466_vm15, %v5947_v44  ;;  %v4262_v7 = vpop.f32.mrf.mxu0 }
 0x42f   : > { %v4508_v1 = vpop.f32.mrf.mxu2 }
 0x430   : > { %v4366_v57 = vpop.f32.mrf.mxu1 }
 0x431   : > { %v4440_v50 = vadd.f32 %v4366_v57, %v8070_v62  ;;  %v4126_v15 = vpop.f32.mrf.mxu3 }
 0x432   : > { %v4170_v23 = vadd.f32 %v4126_v15, %v8135_v59 }
 0x433   : > { %5750 = vmatmul.msk.bf16.gmra.mxu1 %vm3466_vm15, %v8963_v10  ;;  %v8248_v13 = vadd.f32 %v4506_v61, %v4440_v50  ;;  %v5948_v61 = vld [vmem:[#allocation2 + $0x54] sm:$0xff] }
 0x434   : > { %5769 = vmatmul.msk.bf16.gmra.mxu2 %vm3466_vm15, %v7880_v16  ;;  %v8252_v26 = vadd.f32 %v4260_v22, %v4170_v23 }
 0x436   : > { %v4265_v58 = vpop.f32.mrf.mxu0 }
 0x437   : > { %v4511_v63 = vpop.f32.mrf.mxu2 }
 0x438   : > { %v4368_v52 = vpop.f32.mrf.mxu1 }
 0x439   : > { %v4441_v45 = vadd.f32 %v4368_v52, %v8077_v40  ;;  %v4128_v14 = vpop.f32.mrf.mxu3  ;;  %5801 = vmatmul.msk.bf16.gmra.mxu0 %vm3466_vm15, %v8959_v24  ;;  %v8964_v40 = vld [vmem:[#allocation49_spill] sm:$0xff] }
 0x43a   : > { %v4171_v62 = vadd.f32 %v4128_v14, %v8146_v25 }
 0x43b   : > { %v8258_v44 = vadd.f32 %v4508_v1, %v4441_v45 }
 0x43c   : > { %v8260_v59 = vadd.f32 %v4262_v7, %v4171_v62 }
 0x43e   : > { %5784 = vmatmul.msk.bf16.gmra.mxu3 %vm3466_vm15, %v5948_v61  ;;  %v4267_v22 = vpop.f32.mrf.mxu0 }
 0x43f   : > { %v4513_v50 = vpop.f32.mrf.mxu2 }
 0x440   : > { %v4371_v57 = vpop.f32.mrf.mxu1 }
 0x441   : > { %v4442_v15 = vadd.f32 %v4371_v57, %v8088_v28  ;;  %v4131_v23 = vpop.f32.mrf.mxu3 }
 0x442   : > { %v4172_v24 = vadd.f32 %v4131_v23, %v8155_v6 }
 0x443   : > { %5751 = vmatmul.msk.bf16.gmra.mxu1 %vm3466_vm15, %v8964_v40  ;;  %v8267_v52 = vadd.f32 %v4511_v63, %v4442_v15  ;;  %v5949_v63 = vld [vmem:[#allocation2 + $0x60] sm:$0xff] }
 0x444   : > { %5770 = vmatmul.msk.bf16.gmra.mxu2 %vm3466_vm15, %v7932_v34  ;;  %v8271_v25 = vadd.f32 %v4265_v58, %v4172_v24  ;;  %v5951_v34 = vld [vmem:[#allocation2 + $0x78] sm:$0xff] }
 0x446   : > { %v4270_v7 = vpop.f32.mrf.mxu0 }
 0x447   : > { %v4516_v45 = vpop.f32.mrf.mxu2 }
 0x448   : > { %v4373_v1 = vpop.f32.mrf.mxu1 }
 0x449   : > { %v4443_v14 = vadd.f32 %v4373_v1, %v8095_v31  ;;  %v4133_v62 = vpop.f32.mrf.mxu3  ;;  %5802 = vmatmul.msk.bf16.gmra.mxu0 %vm3466_vm15, %v8960_v48  ;;  %v8965_v31 = vld [vmem:[#allocation48_spill] sm:$0xff] }
 0x44a   : > { %v4173_v28 = vadd.f32 %v4133_v62, %v8164_v4 }
 0x44b   : > { %v8277_v61 = vadd.f32 %v4513_v50, %v4443_v14 }
 0x44c   : > { %v8279_v6 = vadd.f32 %v4267_v22, %v4173_v28 }
 0x44e   : > { %5785 = vmatmul.msk.bf16.gmra.mxu3 %vm3466_vm15, %v5949_v63  ;;  %v4272_v58 = vpop.f32.mrf.mxu0 }
 0x44f   : > { %v4518_v15 = vpop.f32.mrf.mxu2 }
 0x450   : > { %v4376_v57 = vpop.f32.mrf.mxu1 }
 0x451   : > { %v4444_v23 = vadd.f32 %v4376_v57, %v8106_v35  ;;  %v4136_v24 = vpop.f32.mrf.mxu3 }
 0x452   : > { %v4174_v48 = vadd.f32 %v4136_v24, %v8172_v0 }
 0x453   : > { %5752 = vmatmul.msk.bf16.gmra.mxu1 %vm3466_vm15, %v8965_v31  ;;  %v8286_v1 = vadd.f32 %v4516_v45, %v4444_v23  ;;  %v5950_v45 = vld [vmem:[#allocation2 + $0x6c] sm:$0xff] }
 0x454   : > { %5771 = vmatmul.msk.bf16.gmra.mxu2 %vm3466_vm15, %v7990_v60  ;;  %v8290_v4 = vadd.f32 %v4270_v7, %v4174_v48  ;;  %v3026_v48 = vld [vmem:[#allocation2 + $0xc4] sm:$0xf] }
 0x455   : > { %8966 = vst [vmem:[#allocation36_spill] sm:$0xff] %v8286_v1 }
 0x456   : > { %v4275_v22 = vpop.f32.mrf.mxu0 }
 0x457   : > { %v4521_v14 = vpop.f32.mrf.mxu2 }
 0x458   : > { %v4378_v50 = vpop.f32.mrf.mxu1 }
 0x459   : > { %v4445_v62 = vadd.f32 %v4378_v50, %v8113_v9  ;;  %v4138_v28 = vpop.f32.mrf.mxu3  ;;  %5803 = vmatmul.msk.bf16.gmra.mxu0 %vm3466_vm15, %v8961_v2 }
 0x45a   : > { %v4175_v35 = vadd.f32 %v4138_v28, %v8181_v33 }
 0x45b   : > { %v8296_v63 = vadd.f32 %v4518_v15, %v4445_v62  ;;  %v4471_v15 = vrot.slane %v3026_v48, 5  ;;  %v3027_v62 = vld [vmem:[#allocation2 + $0xc8] sm:$0x1] }
 0x45c   : > { %v8298_v0 = vadd.f32 %v4272_v58, %v4175_v35 }
 0x45d   : > { %8967 = vst [vmem:[#allocation55_spill] sm:$0xff] %v8296_v63 }
 0x45e   : > { %5786 = vmatmul.msk.bf16.gmra.mxu3 %vm3466_vm15, %v5950_v45  ;;  %v4277_v7 = vpop.f32.mrf.mxu0 }
 0x45f   : > { %v4523_v23 = vpop.f32.mrf.mxu2 }
 0x460   : > { %v4381_v57 = vpop.f32.mrf.mxu1 }
 0x461   : > { %v4446_v24 = vadd.f32 %v4381_v57, %v8124_v27  ;;  %v4141_v9 = vpop.f32.mrf.mxu3  ;;  %v4473_v27 = vrot.slane %v4471_v15, 4  ;;  %v3025_v57 = vld [vmem:[#allocation2 + $0xc0] sm:$0xf] }
 0x462   : > { %v4176_v2 = vadd.f32 %v4141_v9, %v8189_v32  ;;  %v4474_v32 = vrot.slane %v3027_v62, 5 }
 0x463   : > { %5753 = vmatmul.msk.bf16.gmra.mxu1 %vm3466_vm15, %v7986_v5  ;;  %v8305_v33 = vadd.f32 %v4521_v14, %v4446_v24  ;;  %v4322_v14 = vshll.u32 %v3026_v48, 16  ;;  %v4326_v24 = vshrl.u32 %v3026_v48, 16 }
 0x464   : > { %5772 = vmatmul.msk.bf16.gmra.mxu2 %vm3466_vm15, %v8036_v56  ;;  %v8309_v58 = vadd.f32 %v4275_v22, %v4176_v2  ;;  %v5756_v22 = vrot.slane %v3025_v57, 9  ;;  %v4475_v2 = vsel %vm6132_vm4, %v4473_v27, %v4474_v32 }
 0x465   : > { %8968 = vst [vmem:[#allocation57_spill] sm:$0xff] %v8305_v33  ;;  %v4313_v33 = vshrl.u32 %v3025_v57, 16  ;;  %v4324_v60 = vrot.slane %v4322_v14, 5 }
 0x466   : > { %v4786_v50 = vpop.f32.mrf.mxu0 }
 0x467   : > { %v4526_v35 = vpop.f32.mrf.mxu2  ;;  %v4315_v32 = vrot.slane %v4313_v33, 4 }
 0x468   : > { %v4383_v28 = vpop.f32.mrf.mxu1 }
 0x469   : > { %v4447_v45 = vadd.f32 %v4383_v28, %v8131_v47  ;;  %v4143_v63 = vpop.f32.mrf.mxu3  ;;  %5804 = vmatmul.msk.bf16.gmra.mxu0 %vm3466_vm15, %v8962_v49  ;;  %v4472_v47 = vsel %vm6132_vm4, %v5756_v22, %v4471_v15  ;;  %v4316_v28 = vshll.u32 %v3025_v57, 16  ;;  %v4328_v49 = vrot.slane %v4326_v24, 4 }
 0x46a   : > { %v4177_v9 = vadd.f32 %v4143_v63, %v8198_v3  ;;  %v4479_v3 = vunpack.c.l.b16 %v4475_v2 }
 0x46b   : > { %v8315_v56 = vadd.f32 %v4523_v23, %v4447_v45 }
 0x46c   : > { %v8319_v1 = vadd.f32 %v4277_v7, %v4177_v9  ;;  %v4318_v7 = vrot.slane %v4316_v28, 5  ;;  %v4329_v9 = vor.u32 %v4328_v49, %v4324_v60 }
 0x46d   : > { %8969 = vst [vmem:[#allocation56_spill] sm:$0xff] %v8315_v56  ;;  %v4478_v56 = vunpack.c.l.b16 %v4472_v47 }
 0x46e   : > { %5787 = vmatmul.msk.bf16.gmra.mxu3 %vm3466_vm15, %v5951_v34  ;;  %v4788_v48 = vpop.f32.mrf.mxu0  ;;  %v4332_v34 = vshll.u32 %v3027_v62, 16  ;;  %v4330_v22 = vrot.slane %v4329_v9, 4 }
 0x46f   : > { %v4528_v23 = vpop.f32.mrf.mxu2  ;;  %v8328_v57 = vpack.c.b16 %v4479_v3, %v4478_v56 }
 0x470   : > { %v4386_v63 = vpop.f32.mrf.mxu1  ;;  %v4334_v47 = vrot.slane %v4332_v34, 5 }
 0x471   : > { %v4448_v45 = vadd.f32 %v4386_v63, %v8142_v38  ;;  %v4630_v27 = vpop.f32.mrf.mxu3  ;;  %v4319_v38 = vor.u32 %v4318_v7, %v4315_v32 }
 0x472   : > { %v4710_v15 = vadd.f32 %v4630_v27, %v8210_v51  ;;  %v4335_v51 = vsel %vm6160_vm7, %v4330_v22, %v4334_v47 }
 0x473   : > { %5754 = vmatmul.msk.bf16.gmra.mxu1 %vm3466_vm15, %v8043_v12  ;;  %v8330_v14 = vadd.f32 %v4526_v35, %v4448_v45  ;;  %v4320_v56 = vrot.slane %v4319_v38, 4  ;;  %v4339_v3 = vunpack.c.l.b16 %v4335_v51 }
 0x474   : > { %5773 = vmatmul.msk.bf16.gmra.mxu2 %vm3466_vm15, %v8328_v57  ;;  %v8334_v24 = vadd.f32 %v4786_v50, %v4710_v15 }
 0x475   : > { %v4325_v35 = vsel %vm6160_vm7, %v4320_v56, %v4324_v60 }
 0x476   : > { %v4791_v49 = vpop.f32.mrf.mxu0  ;;  %v4338_v27 = vunpack.c.l.b16 %v4325_v35 }
 0x477   : > { %v4531_v2 = vpop.f32.mrf.mxu2 }
 0x478   : > { %v4388_v33 = vpop.f32.mrf.mxu1  ;;  %v8350_v9 = vpack.c.b16 %v4339_v3, %v4338_v27 }
 0x479   : > { %v4449_v28 = vadd.f32 %v4388_v33, %v8151_v39  ;;  %v4632_v63 = vpop.f32.mrf.mxu3  ;;  %5805 = vmatmul.msk.bf16.gmra.mxu0 %vm3466_vm15, %v8963_v10  ;;  %v5952_v39 = vld [vmem:[#allocation2 + $0x84] sm:$0xff] }
 0x47a   : > { %v4711_v62 = vadd.f32 %v4632_v63, %v8220_v36  ;;  %v5953_v63 = vld [vmem:[#allocation2 + $0x90] sm:$0xff] }
 0x47b   : > { %v8342_v50 = vadd.f32 %v4528_v23, %v4449_v28 }
 0x47c   : > { %v8346_v45 = vadd.f32 %v4788_v48, %v4711_v62  ;;  %v8970_v48 = vld [vmem:[#allocation8_spill] sm:$0xff] }
 0x47e   : > { %5788 = vmatmul.msk.bf16.gmra.mxu3 %vm3466_vm15, %v5952_v39  ;;  %v4793_v60 = vpop.f32.mrf.mxu0 }
 0x47f   : > { %v4533_v10 = vpop.f32.mrf.mxu2 }
 0x480   : > { %v4391_v32 = vpop.f32.mrf.mxu1 }
 0x481   : > { %v4450_v7 = vadd.f32 %v4391_v32, %v8162_v53  ;;  %v4635_v15 = vpop.f32.mrf.mxu3 }
 0x482   : > { %v4712_v36 = vadd.f32 %v4635_v15, %v8229_v19 }
 0x483   : > { %5755 = vmatmul.msk.bf16.gmra.mxu1 %vm3466_vm15, %v8350_v9  ;;  %v8355_v23 = vadd.f32 %v4531_v2, %v4450_v7  ;;  %v5954_v7 = vld [vmem:[#allocation2 + $0x9c] sm:$0xff] }
 0x484   : > { %5830 = vmatmul.msk.bf16.vlgmr.msra.gmra.mxu2 %vm743_vm3, %v8970_v48  ;;  %v8359_v34 = vadd.f32 %v4791_v49, %v4712_v36 }
 0x486   : > { %v4796_v19 = vpop.f32.mrf.mxu0 }
 0x487   : > { %v4536_v22 = vpop.f32.mrf.mxu2 }
 0x488   : > { %v4393_v38 = vpop.f32.mrf.mxu1 }
 0x489   : > { %v4451_v53 = vadd.f32 %v4393_v38, %v8169_v20  ;;  %v4637_v33 = vpop.f32.mrf.mxu3  ;;  %5806 = vmatmul.msk.bf16.gmra.mxu0 %vm3466_vm15, %v8964_v40 }
 0x48a   : > { %v4713_v47 = vadd.f32 %v4637_v33, %v8239_v54  ;;  %v8971_v54 = vld [vmem:[#allocation10_spill] sm:$0xff] }
 0x48b   : > { %v8365_v28 = vadd.f32 %v4533_v10, %v4451_v53 }
 0x48c   : > { %v8367_v2 = vadd.f32 %v4793_v60, %v4713_v47 }
 0x48e   : > { %5789 = vmatmul.msk.bf16.gmra.mxu3 %vm3466_vm15, %v5953_v63  ;;  %v4798_v3 = vpop.f32.mrf.mxu0 }
 0x48f   : > { %v4538_v56 = vpop.f32.mrf.mxu2 }
 0x490   : > { %v4396_v49 = vpop.f32.mrf.mxu1 }
 0x491   : > { %v4452_v51 = vadd.f32 %v4396_v49, %v8179_v30  ;;  %v4640_v62 = vpop.f32.mrf.mxu3  ;;  %v5955_v49 = vld [vmem:[#allocation2 + $0xa8] sm:$0xff] }
 0x492   : > { %v4714_v20 = vadd.f32 %v4640_v62, %v8248_v13 }
 0x493   : > { %5814 = vmatmul.msk.bf16.vlgmr.msra.gmra.mxu1 %vm3466_vm15, %v8913_v17  ;;  %v8374_v40 = vadd.f32 %v4536_v22, %v4452_v51 }
 0x494   : > { %5831 = vmatmul.msk.bf16.gmra.mxu2 %vm743_vm3, %v8971_v54  ;;  %v8378_v35 = vadd.f32 %v4796_v19, %v4714_v20  ;;  %v8973_v20 = vld [vmem:[#allocation28_spill] sm:$0xff] }
 0x496   : > { %v4801_v48 = vpop.f32.mrf.mxu0 }
 0x497   : > { %v4541_v27 = vpop.f32.mrf.mxu2 }
 0x498   : > { %v4398_v39 = vpop.f32.mrf.mxu1 }
 0x499   : > { %v4453_v32 = vadd.f32 %v4398_v39, %v8186_v29  ;;  %v4642_v10 = vpop.f32.mrf.mxu3  ;;  %5807 = vmatmul.msk.bf16.gmra.mxu0 %vm3466_vm15, %v8965_v31 }
 0x49a   : > { %v4715_v17 = vadd.f32 %v4642_v10, %v8258_v44  ;;  %v8972_v44 = vld [vmem:[#allocation12_spill] sm:$0xff] }
 0x49b   : > { %v8384_v30 = vadd.f32 %v4538_v56, %v4453_v32 }
 0x49c   : > { %v8386_v13 = vadd.f32 %v4798_v3, %v4715_v17  ;;  %v2481_v17 = vld [vmem:[#allocation2 + $0xcc] sm:$0x1] }
 0x49e   : > { %5790 = vmatmul.msk.bf16.gmra.mxu3 %vm3466_vm15, %v5954_v7 }
 0x49f   : > { %v4543_v36 = vpop.f32.mrf.mxu2 }
 0x4a0   : > { %v4401_v15 = vpop.f32.mrf.mxu1 }
 0x4a1   : > { %v4454_v60 = vadd.f32 %v4401_v15, %v8196_v46  ;;  %v4645_v38 = vpop.f32.mrf.mxu3  ;;  %v2482_v15 = vsel %vm7009_vm12, 0, %v2481_v17 }
 0x4a2   : > { %v4716_v29 = vadd.f32 %v4645_v38, %v8267_v52  ;;  %v4803_v52 = vpop.f32.mrf.mxu0  ;;  %2483 = vst [vmem:[#allocation2 + $0xcc] sm:$0x1] %v2482_v15 }
 0x4a3   : > { %5815 = vmatmul.msk.bf16.gmra.mxu1 %vm3466_vm15, %v7432_v21  ;;  %v8393_v31 = vadd.f32 %v4541_v27, %v4454_v60  ;;  %v8975_v27 = vld [vmem:[#allocation51_spill] sm:$0xff] }
 0x4a4   : > { %5832 = vmatmul.msk.bf16.gmra.mxu2 %vm743_vm3, %v8972_v44  ;;  %v8397_v22 = vadd.f32 %v4801_v48, %v4716_v29  ;;  %v2537_v29 = vld [vmem:[#allocation2 + $0xd4] sm:$0x1]  ;;  %v8432_v44 = vld [vmem:[#allocation2 + $0xd0] sm:$0xf] }
 0x4a7   : > { %v4546_v33 = vpop.f32.mrf.mxu2 }
 0x4a8   : > { %v4403_v53 = vpop.f32.mrf.mxu1 }
 0x4a9   : > { %v4455_v47 = vadd.f32 %v4403_v53, %v8203_v55  ;;  %v4647_v19 = vpop.f32.mrf.mxu3  ;;  %5808 = vmatmul.msk.bf16.gmra.mxu0 %vm3466_vm15, %v7986_v5  ;;  %v8974_v5 = vld [vmem:[#allocation14_spill] sm:$0xff]  ;;  %v2538_v53 = vsel %vm7018_vm14, 0, %v2537_v29 }
 0x4aa   : > { %v4717_v46 = vadd.f32 %v4647_v19, %v8277_v61  ;;  %v4756_v19 = vshrl.u32 %v8432_v44, 16  ;;  %2539 = vst [vmem:[#allocation2 + $0xd4] sm:$0x1] %v2538_v53 }
 0x4ab   : > { %v8403_v21 = vadd.f32 %v4543_v36, %v4455_v47  ;;  %v8977_v36 = vld [vmem:[#allocation44_spill] sm:$0xff]  ;;  %v4752_v47 = vshll.u32 %v8432_v44, 16 }
 0x4ac   : > { %v8405_v63 = vadd.f32 %v4803_v52, %v4717_v46 }
 0x4ae   : > { %5791 = vmatmul.msk.bf16.gmra.mxu3 %vm3466_vm15, %v5955_v49  ;;  %v4754_v49 = vrot.slane %v4752_v47, 5 }
 0x4af   : > { %v4548_v51 = vpop.f32.mrf.mxu2 }
 0x4b0   : > { %v4406_v56 = vpop.f32.mrf.mxu1 }
 0x4b1   : > { %v4456_v62 = vadd.f32 %v4406_v56, %v8214_v43  ;;  %v4758_v56 = vrot.slane %v4756_v19, 4  ;;  %v5886_v19 = vld [vmem:[#allocation2 + $0xcc] sm:$0xff] }
 0x4b3   : > { %5816 = vmatmul.msk.bf16.gmra.mxu1 %vm3466_vm15, %v8973_v20  ;;  %v8411_v55 = vadd.f32 %v4546_v33, %v4456_v62  ;;  %v8438_v33 = vld [vmem:[#allocation2 + $0xcc] sm:$0xf]  ;;  %v8980_v62 = vld [vmem:[#allocation52_spill] sm:$0xff] }
 0x4b4   : > { %5833 = vmatmul.msk.bf16.gmra.mxu2 %vm743_vm3, %v8974_v5  ;;  %v4743_v46 = vshrl.u32 %v8438_v33, 16  ;;  %v4759_v5 = vor.u32 %v4758_v56, %v4754_v49  ;;  %v8983_v56 = vld [vmem:[#allocation42_spill] sm:$0xff] }
 0x4b6   : > { %v4760_v17 = vrot.slane %v4759_v5, 4 }
 0x4b7   : > { %v4551_v54 = vpop.f32.mrf.mxu2 }
 0x4b8   : > { %v4408_v61 = vpop.f32.mrf.mxu1 }
 0x4b9   : > { %v4457_v3 = vadd.f32 %v4408_v61, %v8222_v37  ;;  %5809 = vmatmul.msk.bf16.gmra.mxu0 %vm3466_vm15, %v8043_v12  ;;  %v8978_v12 = vld [vmem:[#allocation15_spill] sm:$0xff] }
 0x4bb   : > { %v8418_v39 = vadd.f32 %v4548_v51, %v4457_v3  ;;  %v4745_v51 = vrot.slane %v4743_v46, 4 }
 0x4be   : > { %5792 = vmatmul.msk.bf16.gmra.mxu3 %vm3466_vm15, %v8975_v27 }
 0x4bf   : > { %v4553_v32 = vpop.f32.mrf.mxu2 }
 0x4c0   : > { %v4411_v43 = vpop.f32.mrf.mxu1 }
 0x4c1   : > { %v4458_v10 = vadd.f32 %v4411_v43, %v8233_v42  ;;  %v8449_v43 = vld [vmem:[#allocation2 + $0xd4] sm:$0x1] }
 0x4c2   : > { %v4762_v7 = vshll.u32 %v8449_v43, 16 }
 0x4c3   : > { %5817 = vmatmul.msk.bf16.gmra.mxu1 %vm3466_vm15, %v8977_v36  ;;  %v8427_v37 = vadd.f32 %v4551_v54, %v4458_v10  ;;  %v8981_v10 = vld [vmem:[#allocation20_spill] sm:$0xff]  ;;  %v8982_v36 = vld [vmem:[#allocation17_spill] sm:$0xff] }
 0x4c4   : > { %5834 = vmatmul.msk.bf16.gmra.mxu2 %vm743_vm3, %v8978_v12  ;;  %v4764_v12 = vrot.slane %v4762_v7, 5 }
 0x4c7   : > { %v4556_v48 = vpop.f32.mrf.mxu2 }
 0x4c8   : > { %v4413_v60 = vpop.f32.mrf.mxu1 }
 0x4c9   : > { %v4459_v38 = vadd.f32 %v4413_v60, %v8241_v18  ;;  %5810 = vmatmul.msk.bf16.gmra.mxu0 %vm3466_vm15, %v8350_v9  ;;  %v4746_v18 = vshll.u32 %v8438_v33, 16 }
 0x4cb   : > { %v8444_v52 = vadd.f32 %v4553_v32, %v4459_v38  ;;  %v4748_v9 = vrot.slane %v4746_v18, 5 }
 0x4cd   : > { %v4749_v20 = vor.u32 %v4748_v9, %v4745_v51  ;;  %v8984_v51 = vld [vmem:[#allocation19_spill] sm:$0xff] }
 0x4ce   : > { %5793 = vmatmul.msk.bf16.gmra.mxu3 %vm3466_vm15, %v8980_v62 }
 0x4cf   : > { %v4558_v54 = vpop.f32.mrf.mxu2  ;;  %v4750_v27 = vrot.slane %v4749_v20, 4 }
 0x4d0   : > { %v4416_v61 = vpop.f32.mrf.mxu1 }
 0x4d1   : > { %v4460_v3 = vadd.f32 %v4416_v61, %v8252_v26  ;;  %v4755_v32 = vsel %vm6160_vm7, %v4750_v27, %v4754_v49  ;;  %v4765_v26 = vsel %vm6160_vm7, %v4760_v17, %v4764_v12  ;;  %v8986_v27 = vld [vmem:[#allocation21_spill] sm:$0xff] }
 0x4d2   : > { %v4768_v60 = vunpack.c.l.b16 %v4755_v32  ;;  %v4769_v42 = vunpack.c.l.b16 %v4765_v26  ;;  %v8988_v26 = vld [vmem:[#allocation26_spill] sm:$0xff] }
 0x4d3   : > { %5818 = vmatmul.msk.bf16.gmra.mxu1 %vm3466_vm15, %v8981_v10  ;;  %v8456_v15 = vadd.f32 %v4556_v48, %v4460_v3  ;;  %v8985_v3 = vld [vmem:[#allocation18_spill] sm:$0xff] }
 0x4d4   : > { %5835 = vmatmul.msk.bf16.gmra.mxu2 %vm743_vm3, %v8982_v36  ;;  %v4770_v47 = vpack.c.b16 %v4769_v42, %v4768_v60  ;;  %v8987_v60 = vld [vmem:[#allocation43_spill] sm:$0xff] }
 0x4d7   : > { %v4561_v29 = vpop.f32.mrf.mxu2 }
 0x4d8   : > { %v4418_v38 = vpop.f32.mrf.mxu1 }
 0x4d9   : > { %v4461_v53 = vadd.f32 %v4418_v38, %v8260_v59  ;;  %5811 = vmatmul.msk.bf16.gmra.mxu0 %vm3466_vm15, %v4770_v47 }
 0x4db   : > { %v8463_v46 = vadd.f32 %v4558_v54, %v4461_v53 }
 0x4de   : > { %5794 = vmatmul.msk.bf16.gmra.mxu3 %vm3466_vm15, %v5886_v19  ;;  %v8989_v19 = vld [vmem:[#allocation50_spill] sm:$0xff] }
 0x4df   : > { %v4563_v18 = vpop.f32.mrf.mxu2 }
 0x4e0   : > { %v4421_v48 = vpop.f32.mrf.mxu1 }
 0x4e1   : > { %v4462_v49 = vadd.f32 %v4421_v48, %v8271_v25 }
 0x4e3   : > { %5819 = vmatmul.msk.bf16.gmra.mxu1 %vm3466_vm15, %v8983_v56  ;;  %v8470_v41 = vadd.f32 %v4561_v29, %v4462_v49  ;;  %v8501_v49 = vpop.f32.mrf.mxu3  ;;  %v8503_v56 = vpop.f32.mrf.mxu0 }
 0x4e4   : > { %5836 = vmatmul.msk.bf16.gmra.mxu2 %vm743_vm3, %v8984_v51 }
 0x4e7   : > { %v4566_v9 = vpop.f32.mrf.mxu2 }
 0x4e8   : > { %v4423_v59 = vpop.f32.mrf.mxu1 }
 0x4e9   : > { %v4463_v62 = vadd.f32 %v4423_v59, %v8279_v6 }
 0x4eb   : > { %v8475_v20 = vadd.f32 %v4563_v18, %v4463_v62  ;;  %v8507_v62 = vpop.f32.mrf.mxu3 }
 0x4ef   : > { %v4568_v61 = vpop.f32.mrf.mxu2 }
 0x4f0   : > { %v4426_v5 = vpop.f32.mrf.mxu1 }
 0x4f1   : > { %v4464_v54 = vadd.f32 %v4426_v5, %v8290_v4 }
 0x4f3   : > { %5820 = vmatmul.msk.bf16.gmra.mxu1 %vm3466_vm15, %v8985_v3  ;;  %v8480_v25 = vadd.f32 %v4566_v9, %v4464_v54  ;;  %v8991_v3 = vld [vmem:[#allocation34_spill] sm:$0xff] }
 0x4f4   : > { %5837 = vmatmul.msk.bf16.gmra.mxu2 %vm743_vm3, %v8986_v27 }
 0x4f7   : > { %v4571_v32 = vpop.f32.mrf.mxu2 }
 0x4f8   : > { %v4428_v10 = vpop.f32.mrf.mxu1 }
 0x4f9   : > { %v4465_v17 = vadd.f32 %v4428_v10, %v8298_v0 }
 0x4fb   : > { %v8485_v7 = vadd.f32 %v4568_v61, %v4465_v17 }
 0x4ff   : > { %v4573_v36 = vpop.f32.mrf.mxu2 }
 0x500   : > { %v4431_v6 = vpop.f32.mrf.mxu1 }
 0x501   : > { %v4466_v12 = vadd.f32 %v4431_v6, %v8309_v58  ;;  %v8990_v58 = vld [vmem:[#allocation31_spill] sm:$0xff] }
 0x503   : > { %5821 = vmatmul.msk.bf16.gmra.mxu1 %vm3466_vm15, %v8987_v60  ;;  %v8490_v4 = vadd.f32 %v4571_v32, %v4466_v12  ;;  %v8515_v32 = vpop.f32.mrf.mxu0 }
 0x504   : > { %5838 = vmatmul.msk.bf16.gmra.mxu2 %vm743_vm3, %v8988_v26 }
 0x507   : > { %v5051_v29 = vpop.f32.mrf.mxu2 }
 0x508   : > { %v4433_v38 = vpop.f32.mrf.mxu1 }
 0x509   : > { %v4467_v42 = vadd.f32 %v4433_v38, %v8319_v1 }
 0x50b   : > { %v8495_v53 = vadd.f32 %v4573_v36, %v4467_v42  ;;  %v4655_v36 = vpop.f32.mrf.mxu3  ;;  %v4811_v26 = vpop.f32.mrf.mxu0 }
 0x50f   : > { %v5053_v47 = vpop.f32.mrf.mxu2 }
 0x510   : > { %v4926_v0 = vpop.f32.mrf.mxu1 }
 0x511   : > { %v5006_v51 = vadd.f32 %v4926_v0, %v8334_v24  ;;  %v8527_v0 = vld [vmem:[%s8687_s5] ss:$0 sm:$0xff] }
 0x513   : > { %5822 = vmatmul.msk.bf16.gmra.mxu1 %vm3466_vm15, %v8989_v19  ;;  %v5131_v5 = vadd.f32 %v5051_v29, %v5006_v51 }
 0x514   : > { %5839 = vmatmul.msk.bf16.gmra.mxu2 %vm743_vm3, %v8990_v58 }
 0x517   : > { %v5056_v18 = vpop.f32.mrf.mxu2 }
 0x518   : > { %v4928_v48 = vpop.f32.mrf.mxu1 }
 0x519   : > { %v5007_v27 = vadd.f32 %v4928_v48, %v8346_v45  ;;  %v8992_v45 = vld [vmem:[#allocation7_spill] sm:$0xff]  ;;  %v4813_v48 = vpop.f32.mrf.mxu0 }
 0x51b   : > { %v5132_v17 = vadd.f32 %v5053_v47, %v5007_v27  ;;  %v8994_v27 = vld [vmem:[#allocation9_spill] sm:$0xff] }
 0x51f   : > { %v5058_v1 = vpop.f32.mrf.mxu2 }
 0x520   : > { %v4931_v59 = vpop.f32.mrf.mxu1 }
 0x521   : > { %v5008_v9 = vadd.f32 %v4931_v59, %v8359_v34 }
 0x523   : > { %v5133_v61 = vadd.f32 %v5056_v18, %v5008_v9  ;;  %5823 = vmatmul.msk.bf16.gmra.mxu1 %vm3466_vm15, %v7817_v11 }
 0x524   : > { %5840 = vmatmul.msk.bf16.gmra.mxu2 %vm743_vm3, %v8991_v3 }
 0x525   : > { %v5163_v54 = vadd.f32 %v5133_v61, %v5131_v5 }
 0x527   : > { %5179 = vst.msk [vmem:[#allocation3] sm:$0xff] %vm3466_vm15, %v5163_v54  ;;  %v5061_v10 = vpop.f32.mrf.mxu2  ;;  %v8993_v54 = vld [vmem:[#allocation23_spill] sm:$0xff] }
 0x528   : > { %v4933_v24 = vpop.f32.mrf.mxu1 }
 0x529   : > { %v5009_v34 = vadd.f32 %v4933_v24, %v8367_v2  ;;  %v4657_v2 = vpop.f32.mrf.mxu3  ;;  %v8544_v24 = vpop.f32.mrf.mxu0 }
 0x52b   : > { %v5134_v6 = vadd.f32 %v5058_v1, %v5009_v34 }
 0x52d   : > { %v5164_v11 = vadd.f32 %v5134_v6, %v5132_v17 }
 0x52f   : > { %5180 = vst.msk [vmem:[#allocation3 + $0x8] sm:$0xff] %vm3466_vm15, %v5164_v11  ;;  %v5063_v60 = vpop.f32.mrf.mxu2 }
 0x530   : > { %v4936_v12 = vpop.f32.mrf.mxu1 }
 0x531   : > { %v5010_v18 = vadd.f32 %v4936_v12, %v8378_v35  ;;  %v8537_v1 = vpop.f32.mrf.mxu3 }
 0x533   : > { %5824 = vmatmul.msk.bf16.gmra.mxu1 %vm3466_vm15, %v7880_v16  ;;  %v5135_v5 = vadd.f32 %v5061_v10, %v5010_v18  ;;  %v8997_v18 = vld [vmem:[#allocation36_spill] sm:$0xff] }
 0x534   : > { %5841 = vmatmul.msk.bf16.gmra.mxu2 %vm743_vm3, %v8992_v45 }
 0x536   : > { %v5195_v38 = vld [vmem:[#allocation3] ss:$2 sm:$0xff]  ;;  %v5211_v29 = vld [vmem:[#allocation3 + $0x1] ss:$2 sm:$0xff] }
 0x537   : > { %v5226_v42 = vadd.f32 %v5211_v29, %v5195_v38  ;;  %v5066_v19 = vpop.f32.mrf.mxu2  ;;  %v8552_v29 = vpop.f32.mrf.mxu0 }
 0x538   : > { %v4938_v47 = vpop.f32.mrf.mxu1 }
 0x539   : > { %v5234_v58 = vmul.f32 0.25, %v5226_v42  ;;  %v5011_v34 = vadd.f32 %v4938_v47, %v8386_v13  ;;  %v8995_v42 = vld [vmem:[#allocation54_spill] sm:$0xff]  ;;  %v8996_v47 = vld [vmem:[#allocation11_spill] sm:$0xff] }
 0x53b   : > { %v5246_v16 = vadd.f32 %v8527_v0, %v5234_v58  ;;  %v5136_v10 = vadd.f32 %v5063_v60, %v5011_v34 }
 0x53d   : > { %5254 = vst.msk [vmem:[%s8532_s17] sm:$0xff] %vm3466_vm15, %v5246_v16 }
 0x53f   : > { %v5068_v59 = vpop.f32.mrf.mxu2 }
 0x540   : > { %v4941_v51 = vpop.f32.mrf.mxu1 }
 0x541   : > { %v5012_v9 = vadd.f32 %v4941_v51, %v8397_v22  ;;  %v8549_v22 = vpop.f32.mrf.mxu3  ;;  %v4718_v51 = vadd.f32 %v8501_v49, %v8997_v18  ;;  %v9000_v49 = vld [vmem:[#allocation56_spill] sm:$0xff] }
 0x543   : > { %v5137_v61 = vadd.f32 %v5066_v19, %v5012_v9  ;;  %5825 = vmatmul.msk.bf16.gmra.mxu1 %vm3466_vm15, %v8993_v54  ;;  %v8998_v9 = vld [vmem:[#allocation57_spill] sm:$0xff] }
 0x544   : > { %5842 = vmatmul.msk.bf16.gmra.mxu2 %vm743_vm3, %v8994_v27 }
 0x545   : > { %v5165_v3 = vadd.f32 %v5137_v61, %v5135_v5  ;;  %v4720_v5 = vadd.f32 %v4655_v36, %v8998_v9  ;;  %v4821_v61 = vpop.f32.mrf.mxu0 }
 0x547   : > { %5181 = vst.msk [vmem:[#allocation3 + $0x10] sm:$0xff] %vm3466_vm15, %v5165_v3  ;;  %v5071_v17 = vpop.f32.mrf.mxu2  ;;  %v4874_v3 = vadd.f32 %v8503_v56, %v4718_v51  ;;  %v9002_v51 = vld [vmem:[#allocation13_spill] sm:$0xff] }
 0x548   : > { %v4943_v35 = vpop.f32.mrf.mxu1 }
 0x549   : > { %v5013_v6 = vadd.f32 %v4943_v35, %v8405_v63  ;;  %v4665_v13 = vpop.f32.mrf.mxu3  ;;  %v4876_v35 = vadd.f32 %v4811_v26, %v4720_v5 }
 0x54b   : > { %v5138_v11 = vadd.f32 %v5068_v59, %v5013_v6 }
 0x54d   : > { %v5166_v12 = vadd.f32 %v5138_v11, %v5136_v10  ;;  %v8999_v11 = vld [vmem:[#allocation55_spill] sm:$0xff] }
 0x54f   : > { %5182 = vst.msk [vmem:[#allocation3 + $0x18] sm:$0xff] %vm3466_vm15, %v5166_v12  ;;  %v5073_v38 = vpop.f32.mrf.mxu2  ;;  %v4719_v12 = vadd.f32 %v8507_v62, %v8999_v11 }
 0x550   : > { %v4946_v45 = vpop.f32.mrf.mxu1 }
 0x551   : > { %v4667_v27 = vpop.f32.mrf.mxu3  ;;  %v5014_v34 = vadd.f32 %v4946_v45, %v4874_v3  ;;  %v4875_v56 = vadd.f32 %v8515_v32, %v4719_v12 }
 0x553   : > { %5826 = vmatmul.msk.bf16.gmra.mxu1 %vm3466_vm15, %v8995_v42 }
 0x554   : > { %5843 = vmatmul.msk.bf16.gmra.mxu2 %vm743_vm3, %v8996_v47  ;;  %v4721_v47 = vadd.f32 %v4657_v2, %v9000_v49 }
 0x556   : > { %v5197_v63 = vld [vmem:[#allocation3 + $0x10] ss:$2 sm:$0xff]  ;;  %v5213_v19 = vld [vmem:[#allocation3 + $0x11] ss:$2 sm:$0xff]  ;;  %v4877_v45 = vadd.f32 %v4813_v48, %v4721_v47  ;;  %v5812_v48 = vrot.slane %v8438_v33, 9  ;;  %v4722_v33 = vadd.f32 %v8537_v1, %v8330_v14  ;;  %v4723_v14 = vadd.f32 %v8549_v22, %v8342_v50 }
 0x557   : > { %v5227_v58 = vadd.f32 %v5213_v19, %v5197_v63  ;;  %v5076_v16 = vpop.f32.mrf.mxu2  ;;  %v5139_v63 = vadd.f32 %v5071_v17, %v5014_v34  ;;  %v9001_v19 = vld [vmem:[#allocation53_spill] sm:$0xff]  ;;  %v4901_v34 = vrot.slane %v8432_v44, 5 }
 0x558   : > { %v4948_v60 = vpop.f32.mrf.mxu1 }
 0x559   : > { %v5235_v59 = vmul.f32 0.25, %v5227_v58  ;;  %v4823_v58 = vpop.f32.mrf.mxu0  ;;  %v5015_v26 = vadd.f32 %v4948_v60, %v4875_v56  ;;  %v8574_v9 = vpop.f32.mrf.mxu3  ;;  %v4902_v44 = vsel %vm6132_vm4, %v5812_v48, %v4901_v34 }
 0x55b   : > { %v5247_v54 = vadd.f32 %v8527_v0, %v5235_v59  ;;  %v5140_v17 = vadd.f32 %v5073_v38, %v5015_v26  ;;  %v4904_v38 = vrot.slane %v8449_v43, 5 }
 0x55d   : > { %5255 = vst.msk [vmem:[%s8532_s17 + $0x8] sm:$0xff] %vm3466_vm15, %v5247_v54 }
 0x55f   : > { %v5078_v10 = vpop.f32.mrf.mxu2 }
 0x560   : > { %v4951_v6 = vpop.f32.mrf.mxu1 }
 0x561   : > { %v5016_v42 = vadd.f32 %v4951_v6, %v4876_v35  ;;  %v8576_v54 = vpop.f32.mrf.mxu0  ;;  %v8580_v60 = vpop.f32.mrf.mxu3  ;;  %v4903_v35 = vrot.slane %v4901_v34, 4  ;;  %v9003_v6 = vld [vmem:[#allocation46_spill] sm:$0xff] }
 0x563   : > { %v5141_v36 = vadd.f32 %v5076_v16, %v5016_v42  ;;  %5827 = vmatmul.msk.bf16.gmra.mxu1 %vm3466_vm15, %v9001_v19  ;;  %v4908_v19 = vunpack.c.l.b16 %v4902_v44 }
 0x564   : > { %5844 = vmatmul.msk.bf16.gmra.mxu2 %vm743_vm3, %v9002_v51  ;;  %v4878_v51 = vadd.f32 %v8544_v24, %v4722_v33  ;;  %v4879_v24 = vadd.f32 %v8552_v29, %v4723_v14 }
 0x565   : > { %v5167_v18 = vadd.f32 %v5141_v36, %v5139_v63  ;;  %v4724_v63 = vadd.f32 %v4665_v13, %v8355_v23  ;;  %v4725_v23 = vadd.f32 %v4667_v27, %v8365_v28 }
 0x567   : > { %5183 = vst.msk [vmem:[#allocation3 + $0x20] sm:$0xff] %vm3466_vm15, %v5167_v18  ;;  %v5081_v59 = vpop.f32.mrf.mxu2 }
 0x568   : > { %v4953_v62 = vpop.f32.mrf.mxu1 }
 0x569   : > { %v5017_v2 = vadd.f32 %v4953_v62, %v4877_v45  ;;  %v4828_v47 = vpop.f32.mrf.mxu0  ;;  %v4675_v18 = vpop.f32.mrf.mxu3  ;;  %v4880_v45 = vadd.f32 %v4821_v61, %v4724_v63  ;;  %v4881_v61 = vadd.f32 %v4823_v58, %v4725_v23  ;;  %v4726_v58 = vadd.f32 %v8574_v9, %v8374_v40 }
 0x56b   : > { %v5142_v16 = vadd.f32 %v5078_v10, %v5017_v2  ;;  %v4882_v63 = vadd.f32 %v8576_v54, %v4726_v58 }
 0x56d   : > { %v5168_v5 = vadd.f32 %v5142_v16, %v5140_v17 }
 0x56f   : > { %5184 = vst.msk [vmem:[#allocation3 + $0x28] sm:$0xff] %vm3466_vm15, %v5168_v5  ;;  %v5083_v3 = vpop.f32.mrf.mxu2 }
 0x570   : > { %v4956_v32 = vpop.f32.mrf.mxu1 }
 0x571   : > { %v5018_v26 = vadd.f32 %v4956_v32, %v4878_v51  ;;  %v4831_v13 = vpop.f32.mrf.mxu0  ;;  %v4677_v34 = vpop.f32.mrf.mxu3 }
 0x572   : > { %v4729_v40 = vadd.f32 %v4677_v34, %v8403_v21 }
 0x573   : > { %5828 = vmatmul.msk.bf16.gmra.mxu1 %vm3466_vm15, %v8328_v57  ;;  %v4905_v57 = vsel %vm6132_vm4, %v4903_v35, %v4904_v38  ;;  %v5143_v17 = vadd.f32 %v5081_v59, %v5018_v26  ;;  %v4727_v26 = vadd.f32 %v8580_v60, %v8384_v30 }
 0x574   : > { %5845 = vmatmul.msk.bf16.gmra.mxu2 %vm743_vm3, %v9003_v6  ;;  %v4909_v56 = vunpack.c.l.b16 %v4905_v57 }
 0x576   : > { %v5199_v10 = vld [vmem:[#allocation3 + $0x20] ss:$2 sm:$0xff]  ;;  %v5215_v11 = vld [vmem:[#allocation3 + $0x21] ss:$2 sm:$0xff]  ;;  %v4910_v8 = vpack.c.b16 %v4909_v56, %v4908_v19 }
 0x577   : > { %v5228_v12 = vadd.f32 %v5215_v11, %v5199_v10  ;;  %v5086_v49 = vpop.f32.mrf.mxu2 }
 0x578   : > { %v4958_v42 = vpop.f32.mrf.mxu1 }
 0x579   : > { %v5236_v43 = vmul.f32 0.25, %v5228_v12  ;;  %v5019_v32 = vadd.f32 %v4958_v42, %v4879_v24  ;;  %v4833_v6 = vpop.f32.mrf.mxu0  ;;  %v4680_v10 = vpop.f32.mrf.mxu3 }
 0x57a   : > { %v4885_v54 = vadd.f32 %v4833_v6, %v4729_v40 }
 0x57b   : > { %v5248_v36 = vadd.f32 %v8527_v0, %v5236_v43  ;;  %v5144_v50 = vadd.f32 %v5083_v3, %v5019_v32  ;;  %v4728_v3 = vadd.f32 %v4675_v18, %v8393_v31 }
 0x57d   : > { %5256 = vst.msk [vmem:[%s8532_s17 + $0x10] sm:$0xff] %vm3466_vm15, %v5248_v36  ;;  %v4884_v19 = vadd.f32 %v4831_v13, %v4728_v3 }
 0x57f   : > { %v5088_v2 = vpop.f32.mrf.mxu2 }
 0x580   : > { %v4961_v62 = vpop.f32.mrf.mxu1 }
 0x581   : > { %v5020_v1 = vadd.f32 %v4961_v62, %v4880_v45  ;;  %v4836_v12 = vpop.f32.mrf.mxu0  ;;  %v4682_v33 = vpop.f32.mrf.mxu3  ;;  %v4883_v62 = vadd.f32 %v4828_v47, %v4727_v26 }
 0x583   : > { %v5145_v16 = vadd.f32 %v5086_v49, %v5020_v1  ;;  %5829 = vmatmul.msk.bf16.gmra.mxu1 %vm3466_vm15, %v4910_v8 }
 0x585   : > { %v5169_v5 = vadd.f32 %v5145_v16, %v5143_v17 }
 0x587   : > { %5185 = vst.msk [vmem:[#allocation3 + $0x30] sm:$0xff] %vm3466_vm15, %v5169_v5  ;;  %v5091_v35 = vpop.f32.mrf.mxu2 }
 0x588   : > { %v4963_v48 = vpop.f32.mrf.mxu1 }
 0x589   : > { %v5021_v38 = vadd.f32 %v4963_v48, %v4881_v61  ;;  %v4838_v45 = vpop.f32.mrf.mxu0  ;;  %v4685_v18 = vpop.f32.mrf.mxu3 }
 0x58a   : > { %v4732_v6 = vadd.f32 %v4685_v18, %v8427_v37 }
 0x58b   : > { %v5146_v22 = vadd.f32 %v5088_v2, %v5021_v38  ;;  %v4730_v38 = vadd.f32 %v4680_v10, %v8411_v55 }
 0x58d   : > { %v5170_v28 = vadd.f32 %v5146_v22, %v5144_v50 }
 0x58f   : > { %5186 = vst.msk [vmem:[#allocation3 + $0x38] sm:$0xff] %vm3466_vm15, %v5170_v28  ;;  %v5093_v59 = vpop.f32.mrf.mxu2 }
 0x590   : > { %v4966_v27 = vpop.f32.mrf.mxu1 }
 0x591   : > { %v5022_v36 = vadd.f32 %v4966_v27, %v4882_v63  ;;  %v4841_v17 = vpop.f32.mrf.mxu0  ;;  %v4687_v60 = vpop.f32.mrf.mxu3  ;;  %v4886_v27 = vadd.f32 %v4836_v12, %v4730_v38 }
 0x593   : > { %v5147_v9 = vadd.f32 %v5091_v35, %v5022_v36 }
 0x596   : > { %v5201_v29 = vld [vmem:[#allocation3 + $0x30] ss:$2 sm:$0xff]  ;;  %v5217_v11 = vld [vmem:[#allocation3 + $0x31] ss:$2 sm:$0xff] }
 0x597   : > { %v5229_v42 = vadd.f32 %v5217_v11, %v5201_v29  ;;  %v5096_v44 = vpop.f32.mrf.mxu2  ;;  %v4888_v11 = vadd.f32 %v4841_v17, %v4732_v6 }
 0x598   : > { %v4968_v49 = vpop.f32.mrf.mxu1 }
 0x599   : > { %v5237_v57 = vmul.f32 0.25, %v5229_v42  ;;  %v5023_v14 = vadd.f32 %v4968_v49, %v4883_v62  ;;  %v4843_v34 = vpop.f32.mrf.mxu0  ;;  %v4690_v50 = vpop.f32.mrf.mxu3 }
 0x59b   : > { %v5249_v43 = vadd.f32 %v8527_v0, %v5237_v57  ;;  %v5148_v16 = vadd.f32 %v5093_v59, %v5023_v14  ;;  %v4733_v57 = vadd.f32 %v4687_v60, %v8444_v52 }
 0x59d   : > { %5257 = vst.msk [vmem:[%s8532_s17 + $0x18] sm:$0xff] %vm3466_vm15, %v5249_v43  ;;  %v4889_v12 = vadd.f32 %v4843_v34, %v4733_v57 }
 0x59f   : > { %v5098_v51 = vpop.f32.mrf.mxu2 }
 0x5a0   : > { %v4971_v56 = vpop.f32.mrf.mxu1 }
 0x5a1   : > { %v5024_v8 = vadd.f32 %v4971_v56, %v4884_v19  ;;  %v4846_v59 = vpop.f32.mrf.mxu0  ;;  %v4692_v55 = vpop.f32.mrf.mxu3 }
 0x5a3   : > { %v5149_v31 = vadd.f32 %v5096_v44, %v5024_v8  ;;  %v4731_v44 = vadd.f32 %v4682_v33, %v8418_v39 }
 0x5a5   : > { %v5171_v2 = vadd.f32 %v5149_v31, %v5147_v9  ;;  %v4887_v43 = vadd.f32 %v4838_v45, %v4731_v44 }
 0x5a7   : > { %5187 = vst.msk [vmem:[#allocation3 + $0x40] sm:$0xff] %vm3466_vm15, %v5171_v2  ;;  %v5101_v23 = vpop.f32.mrf.mxu2 }
 0x5a8   : > { %v4973_v1 = vpop.f32.mrf.mxu1 }
 0x5a9   : > { %v5025_v13 = vadd.f32 %v4973_v1, %v4885_v54  ;;  %v4695_v40 = vpop.f32.mrf.mxu3  ;;  %v4734_v54 = vadd.f32 %v4690_v50, %v8456_v15 }
 0x5ab   : > { %v5150_v24 = vadd.f32 %v5098_v51, %v5025_v13  ;;  %v4848_v51 = vpop.f32.mrf.mxu0  ;;  %v4890_v17 = vadd.f32 %v4846_v59, %v4734_v54 }
 0x5ad   : > { %v5172_v30 = vadd.f32 %v5150_v24, %v5148_v16 }
 0x5af   : > { %5188 = vst.msk [vmem:[#allocation3 + $0x48] sm:$0xff] %vm3466_vm15, %v5172_v30  ;;  %v5103_v5 = vpop.f32.mrf.mxu2 }
 0x5b0   : > { %v4976_v21 = vpop.f32.mrf.mxu1 }
 0x5b1   : > { %v5026_v29 = vadd.f32 %v4976_v21, %v4886_v27  ;;  %v4697_v18 = vpop.f32.mrf.mxu3  ;;  %v4735_v21 = vadd.f32 %v4692_v55, %v8463_v46 }
 0x5b3   : > { %v5151_v10 = vadd.f32 %v5101_v23, %v5026_v29  ;;  %v4851_v9 = vpop.f32.mrf.mxu0  ;;  %v4736_v23 = vadd.f32 %v4695_v40, %v8470_v41 }
 0x5b5   : > { %v4892_v30 = vadd.f32 %v4851_v9, %v4736_v23 }
 0x5b6   : > { %v5203_v47 = vld [vmem:[#allocation3 + $0x40] ss:$2 sm:$0xff]  ;;  %v5219_v32 = vld [vmem:[#allocation3 + $0x41] ss:$2 sm:$0xff] }
 0x5b7   : > { %v5230_v61 = vadd.f32 %v5219_v32, %v5203_v47  ;;  %v5106_v35 = vpop.f32.mrf.mxu2  ;;  %v4737_v32 = vadd.f32 %v4697_v18, %v8475_v20 }
 0x5b8   : > { %v4978_v48 = vpop.f32.mrf.mxu1 }
 0x5b9   : > { %v5238_v22 = vmul.f32 0.25, %v5230_v61  ;;  %v5027_v63 = vadd.f32 %v4978_v48, %v4887_v43  ;;  %v4891_v48 = vadd.f32 %v4848_v51, %v4735_v21 }
 0x5bb   : > { %v5250_v28 = vadd.f32 %v8527_v0, %v5238_v22  ;;  %v5152_v26 = vadd.f32 %v5103_v5, %v5027_v63  ;;  %v4853_v16 = vpop.f32.mrf.mxu0  ;;  %v4700_v5 = vpop.f32.mrf.mxu3 }
 0x5bc   : > { %v4893_v38 = vadd.f32 %v4853_v16, %v4737_v32 }
 0x5bd   : > { %5258 = vst.msk [vmem:[%s8532_s17 + $0x20] sm:$0xff] %vm3466_vm15, %v5250_v28 }
 0x5bf   : > { %v5108_v49 = vpop.f32.mrf.mxu2 }
 0x5c0   : > { %v4981_v42 = vpop.f32.mrf.mxu1 }
 0x5c1   : > { %v5028_v58 = vadd.f32 %v4981_v42, %v4888_v11 }
 0x5c3   : > { %v5153_v3 = vadd.f32 %v5106_v35, %v5028_v58  ;;  %v4856_v50 = vpop.f32.mrf.mxu0  ;;  %v4702_v28 = vpop.f32.mrf.mxu3 }
 0x5c5   : > { %v5173_v37 = vadd.f32 %v5153_v3, %v5151_v10  ;;  %v4738_v10 = vadd.f32 %v4700_v5, %v8480_v25 }
 0x5c7   : > { %5189 = vst.msk [vmem:[#allocation3 + $0x50] sm:$0xff] %vm3466_vm15, %v5173_v37  ;;  %v5111_v19 = vpop.f32.mrf.mxu2 }
 0x5c8   : > { %v4983_v36 = vpop.f32.mrf.mxu1 }
 0x5c9   : > { %v5029_v56 = vadd.f32 %v4983_v36, %v4889_v12  ;;  %v4894_v12 = vadd.f32 %v4856_v50, %v4738_v10 }
 0x5cb   : > { %v5154_v8 = vadd.f32 %v5108_v49, %v5029_v56  ;;  %v4858_v11 = vpop.f32.mrf.mxu0  ;;  %v4705_v42 = vpop.f32.mrf.mxu3 }
 0x5cc   : > { %v4740_v37 = vadd.f32 %v4705_v42, %v8490_v4 }
 0x5cd   : > { %v5174_v39 = vadd.f32 %v5154_v8, %v5152_v26  ;;  %v4739_v8 = vadd.f32 %v4702_v28, %v8485_v7 }
 0x5cf   : > { %5190 = vst.msk [vmem:[#allocation3 + $0x58] sm:$0xff] %vm3466_vm15, %v5174_v39  ;;  %v5113_v33 = vpop.f32.mrf.mxu2  ;;  %v4895_v4 = vadd.f32 %v4858_v11, %v4739_v8 }
 0x5d0   : > { %v4986_v52 = vpop.f32.mrf.mxu1 }
 0x5d1   : > { %v5030_v24 = vadd.f32 %v4986_v52, %v4890_v17 }
 0x5d3   : > { %v5155_v15 = vadd.f32 %v5111_v19, %v5030_v24  ;;  %v4861_v43 = vpop.f32.mrf.mxu0  ;;  %v4707_v19 = vpop.f32.mrf.mxu3 }
 0x5d4   : > { %v4896_v36 = vadd.f32 %v4861_v43, %v4740_v37  ;;  %v4741_v39 = vadd.f32 %v4707_v19, %v8495_v53 }
 0x5d6   : > { %v5205_v45 = vld [vmem:[#allocation3 + $0x50] ss:$2 sm:$0xff]  ;;  %v5221_v31 = vld [vmem:[#allocation3 + $0x51] ss:$2 sm:$0xff] }
 0x5d7   : > { %v5231_v62 = vadd.f32 %v5221_v31, %v5205_v45  ;;  %v5116_v14 = vpop.f32.mrf.mxu2 }
 0x5d8   : > { %v4988_v2 = vpop.f32.mrf.mxu1 }
 0x5d9   : > { %v5239_v1 = vmul.f32 0.25, %v5231_v62  ;;  %v5031_v35 = vadd.f32 %v4988_v2, %v4891_v48 }
 0x5db   : > { %v5251_v13 = vadd.f32 %v8527_v0, %v5239_v1  ;;  %v5156_v27 = vadd.f32 %v5113_v33, %v5031_v35  ;;  %v4863_v33 = vpop.f32.mrf.mxu0 }
 0x5dc   : > { %v4897_v45 = vadd.f32 %v4863_v33, %v4741_v39 }
 0x5dd   : > { %5259 = vst.msk [vmem:[%s8532_s17 + $0x28] sm:$0xff] %vm3466_vm15, %v5251_v13 }
 0x5df   : > { %v5118_v47 = vpop.f32.mrf.mxu2 }
 0x5e0   : > { %v4991_v60 = vpop.f32.mrf.mxu1 }
 0x5e1   : > { %v5032_v34 = vadd.f32 %v4991_v60, %v4892_v30 }
 0x5e3   : > { %v5157_v61 = vadd.f32 %v5116_v14, %v5032_v34 }
 0x5e5   : > { %v5175_v41 = vadd.f32 %v5157_v61, %v5155_v15 }
 0x5e7   : > { %5191 = vst.msk [vmem:[#allocation3 + $0x60] sm:$0xff] %vm3466_vm15, %v5175_v41  ;;  %v5121_v46 = vpop.f32.mrf.mxu2 }
 0x5e8   : > { %v4993_v22 = vpop.f32.mrf.mxu1 }
 0x5e9   : > { %v5033_v6 = vadd.f32 %v4993_v22, %v4893_v38 }
 0x5eb   : > { %v5158_v59 = vadd.f32 %v5118_v47, %v5033_v6 }
 0x5ed   : > { %v5176_v29 = vadd.f32 %v5158_v59, %v5156_v27 }
 0x5ef   : > { %5192 = vst.msk [vmem:[#allocation3 + $0x68] sm:$0xff] %vm3466_vm15, %v5176_v29  ;;  %v5123_v58 = vpop.f32.mrf.mxu2 }
 0x5f0   : > { %v4996_v20 = vpop.f32.mrf.mxu1 }
 0x5f1   : > { %v5034_v56 = vadd.f32 %v4996_v20, %v4894_v12 }
 0x5f3   : > { %v5159_v25 = vadd.f32 %v5121_v46, %v5034_v56 }
 0x5f6   : > { %v5207_v49 = vld [vmem:[#allocation3 + $0x60] ss:$2 sm:$0xff]  ;;  %v5223_v44 = vld [vmem:[#allocation3 + $0x61] ss:$2 sm:$0xff] }
 0x5f7   : > { %v5232_v57 = vadd.f32 %v5223_v44, %v5207_v49  ;;  %v5126_v51 = vpop.f32.mrf.mxu2 }
 0x5f8   : > { %v4998_v55 = vpop.f32.mrf.mxu1 }
 0x5f9   : > { %v5240_v3 = vmul.f32 0.25, %v5232_v57  ;;  %v5035_v31 = vadd.f32 %v4998_v55, %v4895_v4 }
 0x5fb   : > { %v5252_v63 = vadd.f32 %v8527_v0, %v5240_v3  ;;  %v5160_v14 = vadd.f32 %v5123_v58, %v5035_v31 }
 0x5fd   : > { %5260 = vst.msk [vmem:[%s8532_s17 + $0x30] sm:$0xff] %vm3466_vm15, %v5252_v63 }
 0x5ff   : > { %v5128_v2 = vpop.f32.mrf.mxu2 }
 0x600   : > { %v5001_v26 = vpop.f32.mrf.mxu1 }
 0x601   : > { %v5036_v40 = vadd.f32 %v5001_v26, %v4896_v36 }
 0x603   : > { %v5161_v52 = vadd.f32 %v5126_v51, %v5036_v40 }
 0x605   : > { %v5177_v9 = vadd.f32 %v5161_v52, %v5159_v25 }
 0x607   : > { %5193 = vst.msk [vmem:[#allocation3 + $0x70] sm:$0xff] %vm3466_vm15, %v5177_v9 }
 0x608   : > { %v5003_v18 = vpop.f32.mrf.mxu1 }
 0x609   : > { %v5037_v62 = vadd.f32 %v5003_v18, %v4897_v45 }
 0x60b   : > { %v5162_v7 = vadd.f32 %v5128_v2, %v5037_v62 }
 0x60d   : > { %v5178_v54 = vadd.f32 %v5162_v7, %v5160_v14 }
 0x60f   : > { %5194 = vst.msk [vmem:[#allocation3 + $0x78] sm:$0xff] %vm3466_vm15, %v5178_v54 }
 0x616   : > { %v5209_v53 = vld [vmem:[#allocation3 + $0x70] ss:$2 sm:$0xff]  ;;  %v5225_v1 = vld [vmem:[#allocation3 + $0x71] ss:$2 sm:$0xff] }
 0x617   : > { %v5233_v23 = vadd.f32 %v5225_v1, %v5209_v53 }
 0x619   : > { %v5241_v13 = vmul.f32 0.25, %v5233_v23 }
 0x61b   : > { %v5253_v17 = vadd.f32 %v8527_v0, %v5241_v13 }
 0x61d   : > { %5261 = vst.msk [vmem:[%s8532_s17 + $0x38] sm:$0xff] %vm3466_vm15, %v5253_v17 }
 0x61e   : > { %5983 = shalt.err (!%p5980_p3)
}
 0x61f   : > { %s6021_s14 = smov 128   ;;  %s6022_s17 = smov 8  }
 0x620   : > { %5892 = dma.vmem_to_hbm [thread:$0]  (%p6096_p5), %s5276_s29, 1024, %s5278_s9, %s5263_s10, %s6021_s14, %s6021_s14, %s6022_s17  }
 0x621 PF: > { %p5898_p4 = scmp.ge.s32.totalorder %s6018_s24, 2  ;;  %s5292_s18 = sand.u32 1, %s6006_s21  }
 0x622   : > { %s5293_s19 = scalar_lea.sflag [#allocation5], %s5292_s18 }
 0x623   : > { %p5895_p7 = pnand %p5898_p4, %p6100_p6 }
 0x625   : > { %p5896_p8 = pneg %p5895_p7 }
 0x627   : > { %6001 = dma.done.wait (%p5896_p8), %s5293_s19, 1024  }
 0x628   : > { %6003 = vsyncadd (%p5896_p8), %s5293_s19, 4294966272  ;;  %p16_p9 = scmp.ge.s32.totalorder %s6083_s27, 4   ;;  %s9004_s21 = smov %s6010_s22 }
 0x629   : > { %s9005_s22 = smov %s6014_s23  ;;  %s9006_s23 = smov %s6094_s30 }
 0x62a   : > { %s9007_s24 = smov %s6083_s27  ;;  %18 = sbr.rel (!%p16_p9) target bundleno = 3 (0x3), region = 112 }
 0x62f   :  { %5299 = vsyncpa [#allocation5], 1 }
 0x630   :  { %5301 = vsyncpa [#allocation5 + $0x1], 1 }

</bundles_post_ra>
